<compile_context>
chip_gen: v6e
topology: v6e:2x2x1
jax: 0.10.0
libtpu: 0.0.40
codegen_flags: <defaults>
</compile_context>

<pallas_src>
import functools

import jax
import jax.numpy as jnp
import numpy as np
from jax.experimental import pallas as pl
from jax.experimental.pallas import tpu as pltpu


# ----------------------------- PyTorch-equivalent helpers -------------------

def sort_and_return_indices(arr):
    indices = list(range(len(arr)))
    pairs = sorted(zip(arr, indices))
    return [p[0] for p in pairs], [p[1] for p in pairs]


# ----------------------------- Block-size selection --------------------------

def _pick_block_n(n, t, d, heads, dim_heads,
                  vmem_budget_bytes=16 * 1024 * 1024):
    """Largest divisor of n that (a) leaves >= 2 grid steps (v7x has 2
    TensorCores; a parallel grid axis is the only way to use both) and
    (b) keeps the per-step working set inside a conservative VMEM budget
    sized for v7x (64 MiB physical / 32 MiB default-scoped VMEM)."""
    dh = heads * dim_heads
    best = 1
    for bn in range(1, max(1, n // 2) + 1):
        if n % bn:
            continue
        work_bytes = 4 * (                 # f32 accounting
            2 * 2 * bn * t * d             # double-buffered input + output tiles
            + bn * t * 3 * dh              # fused QKV activations
            + heads * bn * t * t           # attention scores / probabilities
            + bn * t * dh)                 # context
        if work_bytes <= vmem_budget_bytes:
            best = bn
    return best


# ----------------------------- Pallas kernel --------------------------------

def _axial_self_attention_kernel(x_ref, wqkv_ref, wo_ref, bo_ref, o_ref, *,
                                 heads, dim_heads):
    """Multi-head self-attention over axis t for a block of batch rows.

    x_ref:    (bn, t, d)   input tile (model dtype, f32 here)
    wqkv_ref: (d, 3*dh)    fused Q/K/V weights, bf16
    wo_ref:   (dh, d)      output projection weights, bf16
    bo_ref:   (1, d)       output projection bias, f32
    o_ref:    (bn, t, d)   output tile
    """
    bn, t, d = x_ref.shape
    e = dim_heads
    dh = heads * e
    scale = e ** -0.5

    # --- fused QKV projection (bf16 MXU inputs, f32 accumulation) -----------
    # (bn, t, d) -> (bn*t, d): merges leading dims only (t % 8 == 0), free.
    x2 = x_ref[...].reshape(bn * t, d).astype(jnp.bfloat16)
    qkv = jnp.dot(x2, wqkv_ref[...],
                  preferred_element_type=jnp.float32)          # (bn*t, 3*dh) f32
    qkv = qkv.reshape(bn, t, 3 * dh)

    # Scale q once here (bn*t*dh elements) rather than the (t, t) scores.
    q = qkv[..., 0 * dh:1 * dh] * scale                        # (bn, t, dh) f32
    k = qkv[..., 1 * dh:2 * dh]
    v = qkv[..., 2 * dh:3 * dh]

    # --- per-head scaled dot-product attention (softmax kept in f32) --------
    # heads is tiny (2); the static loop uses only cheap lane slices.
    head_ctx = []
    for hh in range(heads):
        sl = slice(hh * e, (hh + 1) * e)
        qh, kh, vh = q[..., sl], k[..., sl], v[..., sl]        # (bn, t, e)
        s = jnp.einsum('bie,bje->bij', qh, kh,
                       preferred_element_type=jnp.float32)     # (bn, t, t)
        s = s - jnp.max(s, axis=-1, keepdims=True)
        p = jnp.exp(s)
        denom = jnp.sum(p, axis=-1, keepdims=True)
        p = p * pl.reciprocal(denom, approx=True)              # EUP, ~free
        head_ctx.append(jnp.einsum('bij,bje->bie', p, vh,
                                   preferred_element_type=jnp.float32))
    ctx = jnp.concatenate(head_ctx, axis=-1)                   # (bn, t, dh) f32

    # --- output projection + bias (bf16 MXU inputs, f32 accumulation) -------
    out = jnp.dot(ctx.reshape(bn * t, dh).astype(jnp.bfloat16), wo_ref[...],
                  preferred_element_type=jnp.float32)
    out = out + bo_ref[...].astype(jnp.float32)                # (bn*t, d)
    o_ref[...] = out.reshape(bn, t, d).astype(o_ref.dtype)


# ----------------------------- Wrapper (PermuteToFrom) ----------------------

def permute_to_from_self_attention(x, params, permutation, *, heads,
                                   dim_heads, block_n=None):
    """PermuteToFrom.forward with fn = multi-head SelfAttention (Pallas)."""
    perm = list(permutation)
    _, inv_perm = sort_and_return_indices(perm)

    # permute + flatten to (-1, t, d)  (glue, plain JAX)
    axial = jnp.transpose(x, perm)
    axial_shape = axial.shape
    t, d = axial_shape[-2], axial_shape[-1]
    axial = axial.reshape(-1, t, d)
    n = axial.shape[0]

    wq, wk, wv, wo, bo = params
    dh = heads * dim_heads

    # Fuse QKV into one (d, 3*dh) weight so the MXU sees N = 3*dh; cast the
    # matmul weights to bf16 once (f32 accumulation happens in the kernel).
    w_qkv = jnp.concatenate([wq, wk, wv], axis=1).astype(jnp.bfloat16)
    wo_b = wo.astype(jnp.bfloat16)
    bo_f = bo.astype(jnp.float32)

    if block_n is None:
        block_n = _pick_block_n(n, t, d, heads, dim_heads)
    assert n % block_n == 0, "batch rows must tile evenly"

    kernel = functools.partial(_axial_self_attention_kernel,
                               heads=heads, dim_heads=dim_heads)

    out = pl.pallas_call(
        kernel,
        out_shape=jax.ShapeDtypeStruct((n, t, d), x.dtype),
        grid=(n // block_n,),
        in_specs=[
            pl.BlockSpec((block_n, t, d), lambda i: (i, 0, 0)),
            # Weights/bias: constant index_map (resident across grid steps).
            pl.BlockSpec((d, 3 * dh), lambda i: (0, 0)),
            pl.BlockSpec((dh, d), lambda i: (0, 0)),
            pl.BlockSpec((1, d), lambda i: (0, 0)),
        ],
        out_specs=pl.BlockSpec((block_n, t, d), lambda i: (i, 0, 0)),
        compiler_params=pltpu.CompilerParams(
            dimension_semantics=("parallel",)),
    )(axial, w_qkv, wo_b, bo_f)

    # un-flatten + inverse permute (glue)
    out = out.reshape(axial_shape)
    return jnp.transpose(out, inv_perm)


# ----------------------------- Pure-JAX reference ----------------------------

def reference(x, params, permutation, *, heads, dim_heads):
    perm = list(permutation)
    _, inv_perm = sort_and_return_indices(perm)
    axial = jnp.transpose(x, perm)
    shp = axial.shape
    t, d = shp[-2], shp[-1]
    a = axial.reshape(-1, t, d).astype(jnp.float32)
    wq, wk, wv, wo, bo = params
    b, e = a.shape[0], dim_heads
    q, k, v = a @ wq, a @ wk, a @ wv

    def split(z):
        return jnp.transpose(z.reshape(b, t, heads, e), (0, 2, 1, 3))

    qh, kh, vh = split(q), split(k), split(v)
    dots = jnp.einsum('bhie,bhje->bhij', qh, kh) * (e ** -0.5)
    p = jax.nn.softmax(dots, axis=-1)
    o = jnp.einsum('bhij,bhje->bhie', p, vh)
    o = jnp.transpose(o, (0, 2, 1, 3)).reshape(b, t, heads * e)
    o = o @ wo + bo
    return jnp.transpose(o.reshape(shp), inv_perm).astype(x.dtype)


# ----------------------------- Main ------------------------------------------

if __name__ == "__main__":
    B, DIM, H, W = 2, 32, 16, 16          # NCHW
    HEADS, DIM_HEADS = 2, 16
    DH = HEADS * DIM_HEADS                 # hidden = 32

    # permutation that attends along H (axial_dim=2, emb_dim=1): (0, 3, 2, 1)
    permutation = (0, 3, 2, 1)

    key = jax.random.PRNGKey(0)
    kx, kq, kk, kv, ko, kb = jax.random.split(key, 6)
    x = jax.random.normal(kx, (B, DIM, H, W), dtype=jnp.float32)

    scale = 1.0 / np.sqrt(DIM)
    wq = jax.random.normal(kq, (DIM, DH), dtype=jnp.float32) * scale
    wk = jax.random.normal(kk, (DIM, DH), dtype=jnp.float32) * scale
    wv = jax.random.normal(kv, (DIM, DH), dtype=jnp.float32) * scale
    wo = jax.random.normal(ko, (DH, DIM), dtype=jnp.float32) * scale
    bo = (jax.random.normal(kb, (1, DIM), dtype=jnp.float32) * 0.01)
    params = (wq, wk, wv, wo, bo)

    out = permute_to_from_self_attention(
        x, params, permutation, heads=HEADS, dim_heads=DIM_HEADS)
    out = jax.block_until_ready(out)

    ref = jax.block_until_ready(
        reference(x, params, permutation, heads=HEADS, dim_heads=DIM_HEADS))

    assert out.shape == x.shape and out.dtype == x.dtype
    # Tolerance loosened vs. the pure-f32 version: the projection / output
    # matmuls use bf16 MXU inputs (f32 accumulation, f32 softmax).
    np.testing.assert_allclose(np.asarray(out), np.asarray(ref),
                               rtol=5e-2, atol=1e-1)
    print("KERNEL_OK")
</pallas_src>

<mosaic_0001>
module attributes {stable_mosaic.version = 11 : i64} {
  func.func @_axial_self_attention_kernel(%arg0: i32, %arg1: memref<16x16x32xf32, #tpu.memory_space<vmem>>, %arg2: memref<32x96xbf16, #tpu.memory_space<vmem>>, %arg3: memref<32x32xbf16, #tpu.memory_space<vmem>>, %arg4: memref<1x32xf32, #tpu.memory_space<vmem>>, %arg5: memref<16x16x32xf32, #tpu.memory_space<vmem>>) attributes {dimension_semantics = [#tpu.dimension_semantics<parallel>], iteration_bounds = array<i64: 2>, scalar_prefetch = 0 : i64, scratch_operands = 0 : i64, tpu.core_type = #tpu.core_type<tc>, window_params = [{transform_indices = @transform_0, window_bounds = array<i64: 16, 16, 32>}, {pipeline_mode = #tpu.pipeline_mode<synchronous>, transform_indices = @transform_1, window_bounds = array<i64: 32, 96>}, {pipeline_mode = #tpu.pipeline_mode<synchronous>, transform_indices = @transform_2, window_bounds = array<i64: 32, 32>}, {pipeline_mode = #tpu.pipeline_mode<synchronous>, transform_indices = @transform_3, window_bounds = array<i64: 1, 32>}, {transform_indices = @transform_4, window_bounds = array<i64: 16, 16, 32>}]} {
    %c0 = arith.constant 0 : index
    %c0_0 = arith.constant 0 : index
    %c0_1 = arith.constant 0 : index
    %0 = vector.load %arg1[%c0, %c0_0, %c0_1] : memref<16x16x32xf32, #tpu.memory_space<vmem>>, vector<16x16x32xf32>
    %1 = vector.shape_cast %0 : vector<16x16x32xf32> to vector<256x32xf32>
    %2 = arith.truncf %1 : vector<256x32xf32> to vector<256x32xbf16>
    %c0_2 = arith.constant 0 : index
    %c0_3 = arith.constant 0 : index
    %3 = vector.load %arg2[%c0_2, %c0_3] : memref<32x96xbf16, #tpu.memory_space<vmem>>, vector<32x96xbf16>
    %cst = arith.constant dense<0.000000e+00> : vector<256x96xf32>
    %4 = tpu.matmul %2, %3, %cst {dimension_numbers = #tpu.dot_dimension_numbers<[1], [0], [0], [1], [0, 0, 1, 1], [], []>} : vector<256x32xbf16>, vector<32x96xbf16>, vector<256x96xf32> -> vector<256x96xf32>
    %5 = vector.shape_cast %4 : vector<256x96xf32> to vector<16x16x96xf32>
    %6 = vector.extract_strided_slice %5 {offsets = [0, 0, 0], sizes = [16, 16, 32], strides = [1, 1, 1]} : vector<16x16x96xf32> to vector<16x16x32xf32>
    %cst_4 = arith.constant 2.500000e-01 : f32
    %7 = vector.broadcast %cst_4 : f32 to vector<16x16x32xf32>
    %8 = arith.mulf %6, %7 : vector<16x16x32xf32>
    %9 = vector.extract_strided_slice %5 {offsets = [0, 0, 32], sizes = [16, 16, 32], strides = [1, 1, 1]} : vector<16x16x96xf32> to vector<16x16x32xf32>
    %10 = vector.extract_strided_slice %5 {offsets = [0, 0, 64], sizes = [16, 16, 32], strides = [1, 1, 1]} : vector<16x16x96xf32> to vector<16x16x32xf32>
    %11 = vector.extract_strided_slice %8 {offsets = [0, 0, 0], sizes = [16, 16, 16], strides = [1, 1, 1]} : vector<16x16x32xf32> to vector<16x16x16xf32>
    %12 = vector.extract_strided_slice %9 {offsets = [0, 0, 0], sizes = [16, 16, 16], strides = [1, 1, 1]} : vector<16x16x32xf32> to vector<16x16x16xf32>
    %13 = vector.extract_strided_slice %10 {offsets = [0, 0, 0], sizes = [16, 16, 16], strides = [1, 1, 1]} : vector<16x16x32xf32> to vector<16x16x16xf32>
    "tpu.trace_start"() <{level = 10 : i32, message = "bie,bje->bij"}> : () -> ()
    %cst_5 = arith.constant dense<0.000000e+00> : vector<16x16x16xf32>
    %14 = tpu.matmul %11, %12, %cst_5 {dimension_numbers = #tpu.dot_dimension_numbers<[2], [2], [1], [1], [0, 0, 0, 1, 1, 1], [0], [0]>} : vector<16x16x16xf32>, vector<16x16x16xf32>, vector<16x16x16xf32> -> vector<16x16x16xf32>
    "tpu.trace_stop"() : () -> ()
    %cst_6 = arith.constant dense<0xFF800000> : vector<16x16xf32>
    %15 = vector.multi_reduction <maximumf>, %14, %cst_6 [2] : vector<16x16x16xf32> to vector<16x16xf32>
    %16 = vector.shape_cast %15 : vector<16x16xf32> to vector<16x16x1xf32>
    %17 = vector.broadcast %16 : vector<16x16x1xf32> to vector<16x16x16xf32>
    %18 = arith.subf %14, %17 : vector<16x16x16xf32>
    %19 = math.exp %18 : vector<16x16x16xf32>
    %cst_7 = arith.constant dense<0.000000e+00> : vector<16x16xf32>
    %20 = vector.multi_reduction <add>, %19, %cst_7 [2] : vector<16x16x16xf32> to vector<16x16xf32>
    %21 = vector.shape_cast %20 : vector<16x16xf32> to vector<16x16x1xf32>
    %22 = tpu.reciprocal %21 {approx = true} : vector<16x16x1xf32> -> vector<16x16x1xf32>
    %23 = vector.broadcast %22 : vector<16x16x1xf32> to vector<16x16x16xf32>
    %24 = arith.mulf %19, %23 : vector<16x16x16xf32>
    "tpu.trace_start"() <{level = 10 : i32, message = "bij,bje->bie"}> : () -> ()
    %cst_8 = arith.constant dense<0.000000e+00> : vector<16x16x16xf32>
    %25 = tpu.matmul %24, %13, %cst_8 {dimension_numbers = #tpu.dot_dimension_numbers<[2], [1], [1], [2], [0, 0, 0, 1, 1, 2], [0], [0]>} : vector<16x16x16xf32>, vector<16x16x16xf32>, vector<16x16x16xf32> -> vector<16x16x16xf32>
    "tpu.trace_stop"() : () -> ()
    %26 = vector.extract_strided_slice %8 {offsets = [0, 0, 16], sizes = [16, 16, 16], strides = [1, 1, 1]} : vector<16x16x32xf32> to vector<16x16x16xf32>
    %27 = vector.extract_strided_slice %9 {offsets = [0, 0, 16], sizes = [16, 16, 16], strides = [1, 1, 1]} : vector<16x16x32xf32> to vector<16x16x16xf32>
    %28 = vector.extract_strided_slice %10 {offsets = [0, 0, 16], sizes = [16, 16, 16], strides = [1, 1, 1]} : vector<16x16x32xf32> to vector<16x16x16xf32>
    "tpu.trace_start"() <{level = 10 : i32, message = "bie,bje->bij"}> : () -> ()
    %cst_9 = arith.constant dense<0.000000e+00> : vector<16x16x16xf32>
    %29 = tpu.matmul %26, %27, %cst_9 {dimension_numbers = #tpu.dot_dimension_numbers<[2], [2], [1], [1], [0, 0, 0, 1, 1, 1], [0], [0]>} : vector<16x16x16xf32>, vector<16x16x16xf32>, vector<16x16x16xf32> -> vector<16x16x16xf32>
    "tpu.trace_stop"() : () -> ()
    %cst_10 = arith.constant dense<0xFF800000> : vector<16x16xf32>
    %30 = vector.multi_reduction <maximumf>, %29, %cst_10 [2] : vector<16x16x16xf32> to vector<16x16xf32>
    %31 = vector.shape_cast %30 : vector<16x16xf32> to vector<16x16x1xf32>
    %32 = vector.broadcast %31 : vector<16x16x1xf32> to vector<16x16x16xf32>
    %33 = arith.subf %29, %32 : vector<16x16x16xf32>
    %34 = math.exp %33 : vector<16x16x16xf32>
    %cst_11 = arith.constant dense<0.000000e+00> : vector<16x16xf32>
    %35 = vector.multi_reduction <add>, %34, %cst_11 [2] : vector<16x16x16xf32> to vector<16x16xf32>
    %36 = vector.shape_cast %35 : vector<16x16xf32> to vector<16x16x1xf32>
    %37 = tpu.reciprocal %36 {approx = true} : vector<16x16x1xf32> -> vector<16x16x1xf32>
    %38 = vector.broadcast %37 : vector<16x16x1xf32> to vector<16x16x16xf32>
    %39 = arith.mulf %34, %38 : vector<16x16x16xf32>
    "tpu.trace_start"() <{level = 10 : i32, message = "bij,bje->bie"}> : () -> ()
    %cst_12 = arith.constant dense<0.000000e+00> : vector<16x16x16xf32>
    %40 = tpu.matmul %39, %28, %cst_12 {dimension_numbers = #tpu.dot_dimension_numbers<[2], [1], [1], [2], [0, 0, 0, 1, 1, 2], [0], [0]>} : vector<16x16x16xf32>, vector<16x16x16xf32>, vector<16x16x16xf32> -> vector<16x16x16xf32>
    "tpu.trace_stop"() : () -> ()
    %41 = tpu.concatenate %25, %40 in 2 : vector<16x16x16xf32>, vector<16x16x16xf32> -> vector<16x16x32xf32>
    %42 = vector.shape_cast %41 : vector<16x16x32xf32> to vector<256x32xf32>
    %43 = arith.truncf %42 : vector<256x32xf32> to vector<256x32xbf16>
    %c0_13 = arith.constant 0 : index
    %c0_14 = arith.constant 0 : index
    %44 = vector.load %arg3[%c0_13, %c0_14] : memref<32x32xbf16, #tpu.memory_space<vmem>>, vector<32x32xbf16>
    %cst_15 = arith.constant dense<0.000000e+00> : vector<256x32xf32>
    %45 = tpu.matmul %43, %44, %cst_15 {dimension_numbers = #tpu.dot_dimension_numbers<[1], [0], [0], [1], [0, 0, 1, 1], [], []>} : vector<256x32xbf16>, vector<32x32xbf16>, vector<256x32xf32> -> vector<256x32xf32>
    %c0_16 = arith.constant 0 : index
    %c0_17 = arith.constant 0 : index
    %46 = vector.load %arg4[%c0_16, %c0_17] : memref<1x32xf32, #tpu.memory_space<vmem>>, vector<1x32xf32>
    %47 = vector.broadcast %46 : vector<1x32xf32> to vector<256x32xf32>
    %48 = arith.addf %45, %47 : vector<256x32xf32>
    %49 = vector.shape_cast %48 : vector<256x32xf32> to vector<16x16x32xf32>
    %c0_18 = arith.constant 0 : index
    %c0_19 = arith.constant 0 : index
    %c0_20 = arith.constant 0 : index
    %50 = vector.load %arg5[%c0_18, %c0_19, %c0_20] : memref<16x16x32xf32, #tpu.memory_space<vmem>>, vector<16x16x32xf32>
    tpu.vector_store %arg5[%c0_18, %c0_19, %c0_20], %49 {strides = array<i32>} : memref<16x16x32xf32, #tpu.memory_space<vmem>>, vector<16x16x32xf32>,
    return
  }
  func.func @transform_0(%arg0: i32) -> (i32, i32, i32) {
    %c0_i32 = arith.constant 0 : i32
    %c0_i32_0 = arith.constant 0 : i32
    %c0_i32_1 = arith.constant 0 : i32
    return %arg0, %c0_i32, %c0_i32_0 : i32, i32, i32
  }
  func.func @transform_1(%arg0: i32) -> (i32, i32) {
    %c0_i32 = arith.constant 0 : i32
    %c0_i32_0 = arith.constant 0 : i32
    %c0_i32_1 = arith.constant 0 : i32
    return %c0_i32, %c0_i32_0 : i32, i32
  }
  func.func @transform_2(%arg0: i32) -> (i32, i32) {
    %c0_i32 = arith.constant 0 : i32
    %c0_i32_0 = arith.constant 0 : i32
    %c0_i32_1 = arith.constant 0 : i32
    return %c0_i32, %c0_i32_0 : i32, i32
  }
  func.func @transform_3(%arg0: i32) -> (i32, i32) {
    %c0_i32 = arith.constant 0 : i32
    %c0_i32_0 = arith.constant 0 : i32
    %c0_i32_1 = arith.constant 0 : i32
    return %c0_i32, %c0_i32_0 : i32, i32
  }
  func.func @transform_4(%arg0: i32) -> (i32, i32, i32) {
    %c0_i32 = arith.constant 0 : i32
    %c0_i32_0 = arith.constant 0 : i32
    %c0_i32_1 = arith.constant 0 : i32
    return %arg0, %c0_i32, %c0_i32_0 : i32, i32, i32
  }
}

</mosaic_0001>

<bundles_post_ra>
// kernel: tpu_custom_call.1
= control target key start
LH: loop header
LB: loop body
LE: loop exit
PB: predicated region body
PF: predicated region fallthrough
CT: control target
= control target key end

     0   :  { %9 = vsyncpa [#allocation3], 0  ;;  %s11485_s0 = inlined_call_operand.hbm [shape: f32[32,16,32], index: 0, kind: input, shape index: {}]   ;;  %s11486_s1 = inlined_call_operand.hbm [shape: bf16[32,96], index: 1, kind: input, shape index: {}]   ;;  %s11487_s2 = inlined_call_operand.hbm [shape: bf16[32,32], index: 2, kind: input, shape index: {}]   ;;  %s11488_s3 = inlined_call_operand.vmem [shape: f32[1,32], index: 3, kind: input, shape index: {}]   ;;  %s11489_s4 = inlined_call_operand.hbm [shape: f32[32,16,32], index: 4, kind: output, shape index: {}]  }
   0x1   :  { %11 = vsyncpa [#allocation3 + $0x1], 0 }
   0x2   :  { %12 = vsyncpa [#allocation6], 0 }
   0x3   :  { %13 = vsyncpa [#allocation4], 0 }
   0x4   :  { %15 = vsyncpa [#allocation4 + $0x1], 0  ;;  %s9182_s15 = smov 0   ;;  %s9184_s16 = smov 0  }
   0x5   :  { %s9186_s17 = smov 0   ;;  %s9188_s18 = smov 0  }
   0x6 LB: > { %s9203_s19 = sadd.s32 4294967295, %s9139_s18   ;;  %s7503_s20 = sadd.s32 4294967294, %s9139_s18   ;;  %s9139_s18 = sphi %s9188_s18, %s11867_s18   ;;  %s9135_s17 = sphi %s9186_s17, %s11866_s17   ;;  %s9131_s16 = sphi %s9184_s16, %s11865_s16   ;;  %s9127_s15 = sphi %s9182_s15, %s11864_s15  }
   0x7   : > { %p41_p0 = scmp.ne.s32.totalorder %s9131_s16, %s9127_s15  ;;  %p11490_p1 = scmp.eq.s32.totalorder %s9203_s19, 0 }
   0x8   : > { %p134_p3 = scmp.eq.s32.totalorder %s7503_s20, 1  ;;  %p7504_p5 = scmp.ge.s32.totalorder %s9139_s18, 1 }
   0x9   : > { %p9212_p4 = por %p11490_p1, %p41_p0  ;;  %p141_p7 = scmp.lt.s32.totalorder %s9139_s18, 3 }
   0xa   : > { %p9217_p6 = por %p134_p3, %p41_p0  ;;  %s9141_s24 = smov [#allocation5]  }
   0xb   : > { %s11590_s21 = scalar_select %p9212_p4, 1, 0 }
   0xc   : > { %s11591_s22 = scalar_select %p9217_p6, 1, 0 }
   0xd   : > { %p9222_p8 = pnand %p7504_p5, %p141_p7  ;;  %s153_s25 = sshll.u32 %s9141_s24, 4  ;;  %s154_s25 = int_to_ptr.vmem [resolvable:$true] %s153_s25 }
   0xe   : > { %s9142_s27 = smov [#allocation7]   ;;  %s9002_s29 = scalar_lea.vmem %s154_s25, 256 }
   0xf   : > { %s11592_s23 = scalar_select %p9222_p8, 1, 0 }
  0x10   : > { %p8584_p9 = pneg %p9222_p8  ;;  %s166_s28 = sshll.u32 %s9142_s27, 4  ;;  %s167_s28 = int_to_ptr.vmem [resolvable:$true] %s166_s28 }
  0x11   : > { %p9003_p13 = scmp.ne.s32.totalorder %s154_s25, %s9002_s29  ;;  %p9010_p5 = scmp.lt.s32.totalorder %s154_s25, %s154_s25 }
  0x12   : > { %p9231_p11 = pnand %p8584_p9, %p11490_p1  ;;  %p9011_p7 = scmp.lt.s32.totalorder %s9002_s29, %s9002_s29 }
  0x14   : > { %p8993_p12 = pneg %p9231_p11  ;;  %p9012_p10 = por %p9011_p7, %p9010_p5 }
  0x16   : > { %p9005_p0 = pnand %p9003_p13, %p8993_p12 }
  0x18   : > { %p9006_p3 = pneg %p9005_p0 }
  0x1a   : > { %p9013_p9 = pnand %p9012_p10, %p9006_p3 }
  0x1c   : > { %9016 = shalt.err (!%p9013_p9)
}
  0x1d   : > { %s9143_s30 = smov 64   ;;  %s9144_s5 = smov 4  }
  0x1e   : > { %8587 = dma.hbm_to_vmem [thread:$0]  (!%p9231_p11), %s11486_s1, 256, %s154_s25, [#allocation6], %s9143_s30, %s9143_s30, %s9144_s5  }
  0x1f   : > { %s9028_s8 = scalar_lea.vmem %s167_s28, 256  ;;  %p9036_p2 = scmp.lt.s32.totalorder %s167_s28, %s167_s28 }
  0x20   : > { %p9029_p1 = scmp.ne.s32.totalorder %s167_s28, %s9028_s8  ;;  %p9037_p6 = scmp.lt.s32.totalorder %s9028_s8, %s9028_s8 }
  0x22   : > { %p9031_p13 = pnand %p9029_p1, %p8993_p12  ;;  %p9038_p5 = por %p9037_p6, %p9036_p2 }
  0x24   : > { %p9032_p0 = pneg %p9031_p13 }
  0x26   : > { %p9039_p10 = pnand %p9038_p5, %p9032_p0 }
  0x28   : > { %9042 = shalt.err (!%p9039_p10)
}
  0x29   : > { %8590 = dma.hbm_to_vmem [thread:$0]  (!%p9231_p11), %s11487_s2, 256, %s167_s28, [#allocation6], %s9143_s30, %s9143_s30, %s9144_s5  }
  0x2a   : > { %s9254_s11 = sadd.s32 1, %s9139_s18   ;;  %s28_s12 = sadd.s32 1, %s9135_s17 }
  0x2b   : > { %s25_s13 = ssub.s32 %s9139_s18, %s9254_s11  ;;  %p35_p1 = scmp.ne.s32.totalorder %s9135_s17, %s9131_s16 }
  0x2c   : > { %p26_p2 = scmp.eq.s32.totalorder %s25_s13, 0  ;;  %p36_p6 = scmp.eq.s32.totalorder %s9139_s18, 0 }
  0x2d   : > { %p11594_p12 = scmp.eq.s32.totalorder %s9203_s19, 1  ;;  %p8601_p7 = scmp.lt.s32.totalorder %s9139_s18, 2 }
  0x2e   : > { %s9270_s20 = scalar_select %p26_p2, %s9135_s17, %s28_s12  }
  0x2f   : > { %p9264_p3 = por %p11594_p12, %p35_p1  ;;  %p37_p9 = por %p36_p6, %p35_p1 }
  0x30   : > { %s183_s24 = sand.u32 1, %s9135_s17   ;;  %s7753_s26 = sshll.u32 %s9139_s18, 12 }
  0x31   : > { %s11595_s14 = scalar_select %p9264_p3, 1, 0 }
  0x32   : > { %s7508_s25 = sshll.u32 %s183_s24, 8  ;;  %s9277_s29 = scalar_lea.hbm %s11485_s0, %s7753_s26 }
  0x33   : > { %s187_s30 = scalar_lea.vmem [#allocation2], %s7508_s25  ;;  %p9281_p11 = pnand %p8601_p7, %p37_p9 }
  0x34   : > { %s195_s5 = sshll.u32 %s187_s30, 4  ;;  %s9285_s7 = scalar_lea.sflag [#allocation3], %s183_s24  ;;  %s9279_s5 = int_to_ptr.vmem [resolvable:$true] %s195_s5 }
  0x35   : > { %s9043_s8 = scalar_lea.hbm %s9277_s29, 4096  ;;  %p9045_p0 = pneg %p9281_p11 }
  0x36   : > { %p9044_p13 = scmp.ne.s32.totalorder %s9277_s29, %s9043_s8  ;;  %s9048_s12 = scalar_lea.hbm %s11485_s0, 8192 }
  0x37   : > { %p9049_p1 = scmp.lt.s32.totalorder %s9277_s29, %s11485_s0  ;;  %p9050_p2 = scmp.lt.s32.totalorder %s9048_s12, %s9043_s8 }
  0x38   : > { %p9046_p5 = pnand %p9045_p0, %p9044_p13 }
  0x39   : > { %p9051_p6 = por %p9050_p2, %p9049_p1 }
  0x3a   : > { %p9047_p10 = pneg %p9046_p5 }
  0x3c   : > { %p9052_p12 = pnand %p9051_p6, %p9047_p10 }
  0x3e   : > { %9055 = shalt.err (!%p9052_p12)
}
  0x3f   : > { %s9056_s24 = scalar_lea.vmem %s9279_s5, 4096  ;;  %s9145_s26 = smov [#allocation2]  }
  0x40   : > { %p9057_p7 = scmp.ne.s32.totalorder %s9279_s5, %s9056_s24  ;;  %s9061_s27 = sshll.u32 %s9145_s26, 4  ;;  %s9062_s27 = int_to_ptr.vmem [resolvable:$false] %s9061_s27 }
  0x41   : > { %s9063_s28 = scalar_lea.vmem %s9062_s27, 8192  ;;  %p9064_p5 = scmp.lt.s32.totalorder %s9279_s5, %s9062_s27 }
  0x42   : > { %p9059_p9 = pnand %p9057_p7, %p9045_p0  ;;  %p9065_p3 = scmp.lt.s32.totalorder %s9063_s28, %s9056_s24 }
  0x44   : > { %p9060_p13 = pneg %p9059_p9  ;;  %p9066_p4 = por %p9065_p3, %p9064_p5 }
  0x46   : > { %p9067_p8 = pnand %p9066_p4, %p9060_p13 }
  0x48   : > { %9070 = shalt.err (!%p9067_p8)
}
  0x49   : > { %s9146_s30 = smov 128   ;;  %s9147_s8 = smov 8  }
  0x4a   : > { %8594 = dma.hbm_to_vmem [thread:$0]  (!%p9281_p11), %s9277_s29, 4096, %s9279_s5, %s9285_s7, %s9146_s30, %s9146_s30, %s9147_s8  }
  0x4b   : > { %p11597_p0 = scmp.ne.s32.totalorder %s11592_s23, 0 }
  0x4d   : > { %207 = sbr.rel (%p11597_p0) target bundleno = 2250 (0x8ca), region = 36 }
  0x52   : > { %s9309_s9 = sand.u32 1, %s9131_s16   ;;  %p11598_p4 = scmp.ne.s32.totalorder %s11590_s21, 0 }
  0x53   : > { %s7513_s10 = sshll.u32 %s9309_s9, 8  ;;  %s210_s12 = scalar_lea.sflag [#allocation3], %s9309_s9 }
  0x54   : > { %s9315_s13 = scalar_lea.vmem [#allocation2], %s7513_s10 }
  0x55   : > { %9114 = dma.done.wait (%p11598_p4), %s210_s12, 4096  }
  0x56   : > { %9116 = vsyncadd (%p11598_p4), %s210_s12, 4294963200  ;;  %p11599_p8 = scmp.eq.s32.totalorder %s9203_s19, 0 }
  0x58   : > { %9118 = dma.done.wait (%p11599_p8), [#allocation6], 512   ;;  %p11600_p3 = pmov %p11599_p8 }
  0x59   : > { %v8731_v0 = vld [vmem:[#allocation5 + $0x8] sm:$0xff]   ;;  %v8732_v1 = vld [vmem:[#allocation5] sm:$0xff]   ;;  %vm313_vm0 = vcmask 261120   ;;  %v251_v5 = vld [vmem:[%s9315_s13 + $0x10] sm:$0xff]  ;;  %vm561_vm1 = vcmask 130048   ;;  %s9148_s21 = smov 96  }
  0x5a   : > { %9120 = vsyncadd (%p11600_p3), [#allocation6], 4294966784  ;;  %8048 = vmatprep.subr.bf16.mxu0 %v8731_v0  ;;  %v249_v2 = vld [vmem:[%s9315_s13] sm:$0xff]  ;;  %v250_v3 = vld [vmem:[%s9315_s13 + $0x8] sm:$0xff]  ;;  %8568 = vmatprep.subr.bf16.mxu1 %v8731_v0  ;;  %s9149_s23 = smov 64   ;;  %s9150_s29 = smov 80  }
  0x5b   : > { %8049 = vmatpush3.bf16.msra.mxu0 %v8731_v0  ;;  %v281_v4 = vpack.c.bf16 %v250_v3, %v249_v2  ;;  %v252_v6 = vld [vmem:[%s9315_s13 + $0x18] sm:$0xff]  ;;  %8570 = vmatpush3.bf16.msra.mxu1 %v8731_v0  ;;  %v253_v7 = vld [vmem:[%s9315_s13 + $0x20] sm:$0xff]  ;;  %v254_v8 = vld [vmem:[%s9315_s13 + $0x28] sm:$0xff]  ;;  %s9151_s5 = smov 112   ;;  %s9152_s6 = smov 48  }
  0x5c   : > { %8050 = vmatprep.subr.bf16.mxu0 %v8732_v1  ;;  %8569 = vmatprep.subr.bf16.mxu1 %v8732_v1  ;;  %v282_v9 = vpack.c.bf16 %v252_v6, %v251_v5  ;;  %v283_v10 = vpack.c.bf16 %v254_v8, %v253_v7  ;;  %v265_v11 = vld [vmem:[%s9315_s13 + $0x80] sm:$0xff]  ;;  %v266_v12 = vld [vmem:[%s9315_s13 + $0x88] sm:$0xff]  ;;  %v267_v14 = vld [vmem:[%s9315_s13 + $0x90] sm:$0xff]  ;;  %s9153_s7 = smov 16   ;;  %s11338_s26 = scalar_lea.vmem [#allocation8], %s7513_s10 }
  0x5d   : > { %8052 = vmatprep.mubr.msk.bf16.mxu0 %vm313_vm0, %v281_v4  ;;  %v289_v13 = vpack.c.bf16 %v266_v12, %v265_v11  ;;  %v268_v15 = vld [vmem:[%s9315_s13 + $0x98] sm:$0xff]  ;;  %v269_v16 = vld [vmem:[%s9315_s13 + $0xa0] sm:$0xff]  ;;  %v270_v18 = vld [vmem:[%s9315_s13 + $0xa8] sm:$0xff]  ;;  %s7755_s27 = sshll.u32 %s9203_s19, 12  ;;  %s7411_s28 = sshll.u32 %s11338_s26, 4  ;;  %s11437_s28 = int_to_ptr.vmem [resolvable:$true] %s7411_s28 }
  0x5e   : > { %v290_v17 = vpack.c.bf16 %v268_v15, %v267_v14  ;;  %v255_v19 = vld [vmem:[%s9315_s13 + $0x30] sm:$0xff]  ;;  %v256_v20 = vld [vmem:[%s9315_s13 + $0x38] sm:$0xff]  ;;  %v257_v21 = vld [vmem:[%s9315_s13 + $0x40] sm:$0xff]  ;;  %v291_v22 = vpack.c.bf16 %v270_v18, %v269_v16  ;;  %s11435_s10 = scalar_lea.hbm %s11489_s4, %s7755_s27  ;;  %s7397_s19 = scalar_lea.sflag [#allocation4], %s9309_s9 }
  0x5f   : > { %8051 = vmatpush3.bf16.msra.mxu0 %v8732_v1  ;;  %8571 = vmatpush3.bf16.msra.mxu1 %v8732_v1  ;;  %v258_v23 = vld [vmem:[%s9315_s13 + $0x48] sm:$0xff]  ;;  %v271_v24 = vld [vmem:[%s9315_s13 + $0xb0] sm:$0xff]  ;;  %v272_v25 = vld [vmem:[%s9315_s13 + $0xb8] sm:$0xff]  ;;  %v284_v28 = vpack.c.bf16 %v256_v20, %v255_v19  ;;  %s9071_s12 = scalar_lea.vmem %s11437_s28, 4096  ;;  %p11861_p10 = scmp.ne.s32.totalorder %s11595_s14, 0 }
  0x60   : > { %8068 = vmatprep.mubr.msk.bf16.mxu1 %vm313_vm0, %v289_v13  ;;  %v273_v26 = vld [vmem:[%s9315_s13 + $0xc0] sm:$0xff]  ;;  %v274_v27 = vld [vmem:[%s9315_s13 + $0xc8] sm:$0xff]  ;;  %v285_v29 = vpack.c.bf16 %v258_v23, %v257_v21  ;;  %v292_v30 = vpack.c.bf16 %v272_v25, %v271_v24  ;;  %v259_v32 = vld [vmem:[%s9315_s13 + $0x50] sm:$0xff]  ;;  %p9072_p11 = scmp.ne.s32.totalorder %s11437_s28, %s9071_s12 }
  0x61   : > { %v293_v31 = vpack.c.bf16 %v274_v27, %v273_v26  ;;  %v260_v33 = vld [vmem:[%s9315_s13 + $0x58] sm:$0xff]  ;;  %v261_v34 = vld [vmem:[%s9315_s13 + $0x60] sm:$0xff]  ;;  %v262_v35 = vld [vmem:[%s9315_s13 + $0x68] sm:$0xff] }
  0x62   : > { %8053 = vmatmul.mubr.msk.bf16.vlgmr.msra.gmra.mxu0 %vm313_vm0, %v282_v9  ;;  %8069 = vmatmul.mubr.msk.bf16.vlgmr.msra.gmra.mxu1 %vm313_vm0, %v290_v17  ;;  %v275_v36 = vld [vmem:[%s9315_s13 + $0xd0] sm:$0xff]  ;;  %v276_v37 = vld [vmem:[%s9315_s13 + $0xd8] sm:$0xff]  ;;  %v277_v38 = vld [vmem:[%s9315_s13 + $0xe0] sm:$0xff]  ;;  %v286_v40 = vpack.c.bf16 %v260_v33, %v259_v32  ;;  %v287_v41 = vpack.c.bf16 %v262_v35, %v261_v34  ;;  %p9073_p1 = pnand %p9072_p11, %p11861_p10 }
  0x63   : > { %8056 = vmatprep.mubr.msk.bf16.mxu0 %vm313_vm0, %v283_v10  ;;  %8072 = vmatprep.mubr.msk.bf16.mxu1 %vm313_vm0, %v291_v22  ;;  %v278_v39 = vld [vmem:[%s9315_s13 + $0xe8] sm:$0xff]  ;;  %v294_v42 = vpack.c.bf16 %v276_v37, %v275_v36  ;;  %v263_v44 = vld [vmem:[%s9315_s13 + $0x70] sm:$0xff]  ;;  %v264_v45 = vld [vmem:[%s9315_s13 + $0x78] sm:$0xff] }
  0x64   : > { %v295_v43 = vpack.c.bf16 %v278_v39, %v277_v38  ;;  %v279_v46 = vld [vmem:[%s9315_s13 + $0xf0] sm:$0xff]  ;;  %v280_v47 = vld [vmem:[%s9315_s13 + $0xf8] sm:$0xff]  ;;  %v288_v48 = vpack.c.bf16 %v264_v45, %v263_v44  ;;  %p9074_p2 = pneg %p9073_p1  ;;  %s9154_s13 = smov [#allocation8]  }
  0x65   : > { %v296_v49 = vpack.c.bf16 %v280_v47, %v279_v46 }
  0x6a   : > { %8057 = vmatmul.mubr.msk.bf16.gmra.mxu0 %vm313_vm0, %v284_v28  ;;  %8073 = vmatmul.mubr.msk.bf16.gmra.mxu1 %vm313_vm0, %v292_v30 }
  0x6b   : > { %8060 = vmatprep.mubr.msk.bf16.mxu0 %vm313_vm0, %v285_v29  ;;  %8076 = vmatprep.mubr.msk.bf16.mxu1 %vm313_vm0, %v293_v31 }
  0x72   : > { %8061 = vmatmul.mubr.msk.bf16.gmra.mxu0 %vm313_vm0, %v286_v40  ;;  %8077 = vmatmul.mubr.msk.bf16.gmra.mxu1 %vm313_vm0, %v294_v42 }
  0x73   : > { %8064 = vmatprep.mubr.msk.bf16.mxu0 %vm313_vm0, %v287_v41  ;;  %8080 = vmatprep.mubr.msk.bf16.mxu1 %vm313_vm0, %v295_v43 }
  0x7a   : > { %8065 = vmatmul.mubr.msk.bf16.gmra.mxu0 %vm313_vm0, %v288_v48  ;;  %8081 = vmatmul.mubr.msk.bf16.gmra.mxu1 %vm313_vm0, %v296_v49 }
 0x122   : > { %v9373_v50 = vpop.f32.mrf.mxu0  ;;  %v9375_v51 = vpop.f32.mrf.mxu1 }
 0x123   : > { %11601 = vst [vmem:[#allocation12_spill] sm:$0xff] %v9373_v50  ;;  %11602 = vst [vmem:[#allocation13_spill] sm:$0xff] %v9375_v51  ;;  %v525_v27 = vmul.f32 0.25, %v9373_v50 }
 0x124   : > { %v9377_v52 = vpop.f32.mrf.mxu0  ;;  %v9382_v54 = vpop.f32.mrf.mxu1 }
 0x125   : > { %11603 = vst [vmem:[#allocation14_spill] sm:$0xff] %v9377_v52  ;;  %v9380_v53 = vmul.f32 0.25, %v9377_v52  ;;  %v9387_v56 = vmul.f32 0.25, %v9382_v54 }
 0x126   : > { %v9384_v55 = vpop.f32.mrf.mxu0  ;;  %v9409_v61 = vpop.f32.mrf.mxu1 }
 0x127   : > { %11604 = vst [vmem:[#allocation15_spill] sm:$0xff] %v9384_v55  ;;  %8088 = vmatprep.mubr.msk.f32.mxu1 %vm561_vm1, %v9380_v53  ;;  %651 = vrot.lane.b32.xlu1 %v9384_v55, %s9148_s21  ;;  %v526_v31 = vmul.f32 0.25, %v9384_v55 }
 0x128   : > { %v9393_v57 = vpop.f32.mrf.mxu0  ;;  %8144 = vmatprep.mubr.msk.f32.mxu0 %vm561_vm1, %v9387_v56  ;;  %v9419_v0 = vpop.f32.mrf.mxu1 }
 0x129   : > { %11605 = vst [vmem:[#allocation16_spill] sm:$0xff] %v9393_v57  ;;  %559 = vrot.lane.b32.xlu0 %v9393_v57, %s9148_s21  ;;  %v524_v25 = vmul.f32 0.25, %v9393_v57 }
 0x12a   : > { %v9399_v58 = vpop.f32.mrf.mxu0  ;;  %v9425_v2 = vpop.f32.mrf.mxu1 }
 0x12b   : > { %11606 = vst [vmem:[#allocation17_spill] sm:$0xff] %v9399_v58  ;;  %649 = vrot.lane.b32.xlu1 %v9373_v50, %s9148_s21  ;;  %11612 = vst [vmem:[#allocation23_spill] sm:$0xff] %v9425_v2  ;;  %v529_v39 = vmul.f32 0.25, %v9399_v58 }
 0x12c   : > { %v9403_v59 = vpop.f32.mrf.mxu0  ;;  %v9435_v5 = vpop.f32.mrf.mxu1 }
 0x12d   : > { %11607 = vst [vmem:[#allocation18_spill] sm:$0xff] %v9403_v59  ;;  %557 = vrot.lane.b32.xlu0 %v9377_v52, %s9148_s21  ;;  %v527_v33 = vmul.f32 0.25, %v9403_v59 }
 0x12e   : > { %v9407_v60 = vpop.f32.mrf.mxu0  ;;  %v9445_v8 = vpop.f32.mrf.mxu1 }
 0x12f   : > { %11608 = vst [vmem:[#allocation19_spill] sm:$0xff] %v9407_v60  ;;  %740 = vrot.lane.b32.xlu1 %v9403_v59, %s9148_s21  ;;  %11617 = vst [vmem:[#allocation28_spill] sm:$0xff] %v9445_v8  ;;  %v530_v43 = vmul.f32 0.25, %v9407_v60 }
 0x130   : > { %v9413_v62 = vpop.f32.mrf.mxu0  ;;  %v9455_v11 = vpop.f32.mrf.mxu1 }
 0x131   : > { %11609 = vst [vmem:[#allocation20_spill] sm:$0xff] %v9413_v62  ;;  %742 = vrot.lane.b32.xlu0 %v9413_v62, %s9148_s21  ;;  %11620 = vst [vmem:[#allocation31_spill] sm:$0xff] %v9455_v11  ;;  %v528_v37 = vmul.f32 0.25, %v9413_v62 }
 0x132   : > { %v9417_v63 = vpop.f32.mrf.mxu0  ;;  %v9459_v12 = vpop.f32.mrf.mxu1 }
 0x133   : > { %11610 = vst [vmem:[#allocation21_spill] sm:$0xff] %v9417_v63  ;;  %831 = vrot.lane.b32.xlu1 %v9399_v58, %s9148_s21  ;;  %11621 = vst [vmem:[#allocation32_spill] sm:$0xff] %v9459_v12 }
 0x134   : > { %v9423_v1 = vpop.f32.mrf.mxu0  ;;  %v9465_v13 = vpop.f32.mrf.mxu1 }
 0x135   : > { %11611 = vst [vmem:[#allocation22_spill] sm:$0xff] %v9423_v1  ;;  %833 = vrot.lane.b32.xlu0 %v9407_v60, %s9148_s21  ;;  %v531_v45 = vmul.f32 0.25, %v9423_v1 }
 0x136   : > { %v9429_v3 = vpop.f32.mrf.mxu0  ;;  %v9471_v14 = vpop.f32.mrf.mxu1 }
 0x137   : > { %11613 = vst [vmem:[#allocation24_spill] sm:$0xff] %v9429_v3  ;;  %922 = vrot.lane.b32.xlu1 %v9423_v1, %s9148_s21  ;;  %11622 = vst [vmem:[#allocation33_spill] sm:$0xff] %v9471_v14 }
 0x138   : > { %v9433_v4 = vpop.f32.mrf.mxu0  ;;  %v9477_v15 = vpop.f32.mrf.mxu1 }
 0x139   : > { %11614 = vst [vmem:[#allocation25_spill] sm:$0xff] %v9433_v4  ;;  %924 = vrot.lane.b32.xlu0 %v9433_v4, %s9148_s21  ;;  %11623 = vst [vmem:[#allocation34_spill] sm:$0xff] %v9477_v15  ;;  %v532_v49 = vmul.f32 0.25, %v9433_v4 }
 0x13a   : > { %v9439_v6 = vpop.f32.mrf.mxu0  ;;  %v9483_v16 = vpop.f32.mrf.mxu1 }
 0x13b   : > { %11615 = vst [vmem:[#allocation26_spill] sm:$0xff] %v9439_v6  ;;  %1013 = vrot.lane.b32.xlu1 %v9417_v63, %s9148_s21  ;;  %11624 = vst [vmem:[#allocation35_spill] sm:$0xff] %v9483_v16 }
 0x13c   : > { %v9443_v7 = vpop.f32.mrf.mxu0  ;;  %v9489_v17 = vpop.f32.mrf.mxu1 }
 0x13d   : > { %11616 = vst [vmem:[#allocation27_spill] sm:$0xff] %v9443_v7  ;;  %1015 = vrot.lane.b32.xlu0 %v9429_v3, %s9148_s21 }
 0x13e   : > { %v9449_v9 = vpop.f32.mrf.mxu0  ;;  %v9495_v18 = vpop.f32.mrf.mxu1 }
 0x13f   : > { %11618 = vst [vmem:[#allocation29_spill] sm:$0xff] %v9449_v9  ;;  %1104 = vrot.lane.b32.xlu1 %v9443_v7, %s9148_s21  ;;  %11625 = vst [vmem:[#allocation36_spill] sm:$0xff] %v9495_v18 }
 0x140   : > { %v9453_v10 = vpop.f32.mrf.mxu0  ;;  %v9501_v19 = vpop.f32.mrf.mxu1 }
 0x141   : > { %11619 = vst [vmem:[#allocation30_spill] sm:$0xff] %v9453_v10  ;;  %1106 = vrot.lane.b32.xlu0 %v9453_v10, %s9148_s21  ;;  %11626 = vst [vmem:[#allocation37_spill] sm:$0xff] %v9501_v19 }
 0x143   : > { %1195 = vrot.lane.b32.xlu1 %v9439_v6, %s9148_s21 }
 0x145   : > { %1197 = vrot.lane.b32.xlu0 %v9449_v9, %s9148_s21 }
 0x147   : > { %1379 = vrot.lane.b32.xlu1 %v9409_v61, %s9148_s21 }
 0x149   : > { %1288 = vrot.lane.b32.xlu0 %v9419_v0, %s9148_s21 }
 0x14b   : > { %1377 = vrot.lane.b32.xlu1 %v9375_v51, %s9148_s21 }
 0x14d   : > { %1286 = vrot.lane.b32.xlu0 %v9382_v54, %s9148_s21 }
 0x14f   : > { %1561 = vrot.lane.b32.xlu1 %v9445_v8, %s9148_s21 }
 0x151   : > { %1470 = vrot.lane.b32.xlu0 %v9455_v11, %s9148_s21 }
 0x153   : > { %1559 = vrot.lane.b32.xlu1 %v9425_v2, %s9148_s21 }
 0x155   : > { %1468 = vrot.lane.b32.xlu0 %v9435_v5, %s9148_s21 }
 0x157   : > { %1743 = vrot.lane.b32.xlu1 %v9471_v14, %s9148_s21 }
 0x159   : > { %1652 = vrot.lane.b32.xlu0 %v9477_v15, %s9148_s21 }
 0x15b   : > { %1741 = vrot.lane.b32.xlu1 %v9459_v12, %s9148_s21 }
 0x15d   : > { %1650 = vrot.lane.b32.xlu0 %v9465_v13, %s9148_s21 }
 0x15f   : > { %1925 = vrot.lane.b32.xlu1 %v9495_v18, %s9148_s21 }
 0x161   : > { %1834 = vrot.lane.b32.xlu0 %v9501_v19, %s9148_s21 }
 0x163   : > { %1923 = vrot.lane.b32.xlu1 %v9483_v16, %s9148_s21 }
 0x165   : > { %1832 = vrot.lane.b32.xlu0 %v9489_v17, %s9148_s21  ;;  %s9075_s21 = sshll.u32 %s9154_s13, 4  ;;  %s9076_s21 = int_to_ptr.vmem [resolvable:$false] %s9075_s21 }
 0x166   : > { %p9078_p6 = scmp.lt.s32.totalorder %s11437_s28, %s9076_s21 }
 0x167   : > { %2453 = vrot.lane.b32.xlu1 %v9384_v55, %s9149_s23 }
 0x169   : > { %2366 = vrot.lane.b32.xlu0 %v9393_v57, %s9149_s23 }
 0x16b   : > { %2364 = vrot.lane.b32.xlu1 %v9377_v52, %s9149_s23 }
 0x16d   : > { %2540 = vrot.lane.b32.xlu0 %v9413_v62, %s9149_s23 }
 0x16f   : > { %2451 = vrot.lane.b32.xlu1 %v9373_v50, %s9149_s23 }
 0x171   : > { %2627 = vrot.lane.b32.xlu0 %v9407_v60, %s9149_s23 }
 0x173   : > { %2625 = vrot.lane.b32.xlu1 %v9399_v58, %s9149_s23 }
 0x175   : > { %2538 = vrot.lane.b32.xlu0 %v9403_v59, %s9149_s23 }
 0x177   : > { %2975 = vrot.lane.b32.xlu1 %v9449_v9, %s9149_s23 }
 0x179   : > { %2714 = vrot.lane.b32.xlu0 %v9433_v4, %s9149_s23 }
 0x17b   : > { %2973 = vrot.lane.b32.xlu1 %v9439_v6, %s9149_s23 }
 0x17d   : > { %2801 = vrot.lane.b32.xlu0 %v9429_v3, %s9149_s23 }
 0x17f   : > { %3149 = vrot.lane.b32.xlu1 %v9409_v61, %s9149_s23 }
 0x181   : > { %2712 = vrot.lane.b32.xlu0 %v9423_v1, %s9149_s23 }
 0x183   : > { %3147 = vrot.lane.b32.xlu1 %v9375_v51, %s9149_s23 }
 0x185   : > { %2799 = vrot.lane.b32.xlu0 %v9417_v63, %s9149_s23 }
 0x187   : > { %3323 = vrot.lane.b32.xlu1 %v9445_v8, %s9149_s23 }
 0x189   : > { %2886 = vrot.lane.b32.xlu0 %v9443_v7, %s9149_s23 }
 0x18b   : > { %3321 = vrot.lane.b32.xlu1 %v9425_v2, %s9149_s23 }
 0x18d   : > { %3062 = vrot.lane.b32.xlu0 %v9419_v0, %s9149_s23 }
 0x18f   : > { %3497 = vrot.lane.b32.xlu1 %v9471_v14, %s9149_s23 }
 0x191   : > { %3060 = vrot.lane.b32.xlu0 %v9382_v54, %s9149_s23 }
 0x193   : > { %3495 = vrot.lane.b32.xlu1 %v9459_v12, %s9149_s23 }
 0x195   : > { %3236 = vrot.lane.b32.xlu0 %v9455_v11, %s9149_s23 }
 0x197   : > { %3671 = vrot.lane.b32.xlu1 %v9495_v18, %s9149_s23 }
 0x199   : > { %v652_v20 = vpop.permute.xlu1 %651  ;;  %3234 = vrot.lane.b32.xlu0 %v9435_v5, %s9149_s23 }
 0x19b   : > { %v560_v21 = vpop.permute.xlu0 %559  ;;  %3669 = vrot.lane.b32.xlu1 %v9483_v16, %s9149_s23 }
 0x19c   : > { %8084 = vmatprep.subr.msk.mxu1 %vm561_vm1, %v560_v21 }
 0x19d   : > { %v650_v22 = vpop.permute.xlu1 %649  ;;  %8085 = vmatpush3.xpose.msk.msra.mxu1 %vm561_vm1, %v560_v21  ;;  %3410 = vrot.lane.b32.xlu0 %v9477_v15, %s9149_s23  ;;  %v533_v21 = vmul.f32 0.25, %v9417_v63 }
 0x19f   : > { %v558_v23 = vpop.permute.xlu0 %557  ;;  %3853 = vrot.lane.b32.xlu1 %v9384_v55, %s9150_s29 }
 0x1a0   : > { %8086 = vmatprep.subr.msk.mxu1 %vm561_vm1, %v558_v23 }
 0x1a1   : > { %8087 = vmatpush3.xpose.msk.msra.mxu1 %vm561_vm1, %v558_v23  ;;  %v741_v24 = vpop.permute.xlu1 %740  ;;  %3408 = vrot.lane.b32.xlu0 %v9465_v13, %s9149_s23  ;;  %v9670_v23 = vmul.f32 0.25, %v9435_v5 }
 0x1a2   : > { %8091 = vmatprep.subr.msk.mxu1 %vm561_vm1, %v652_v20 }
 0x1a3   : > { %v743_v26 = vpop.permute.xlu0 %742  ;;  %3851 = vrot.lane.b32.xlu1 %v9373_v50, %s9150_s29 }
 0x1a4   : > { %8089 = vmatmul.mubr.msk.f32.vlgmr.msra.gmra.mxu1 %vm561_vm1, %v524_v25 }
 0x1a5   : > { %8092 = vmatpush3.xpose.msk.msra.mxu1 %vm561_vm1, %v652_v20  ;;  %8095 = vmatprep.mubr.msk.f32.mxu1 %vm561_vm1, %v525_v27  ;;  %v832_v28 = vpop.permute.xlu1 %831 }
 0x1a6   : > { %3582 = vrot.lane.b32.xlu0 %v9489_v17, %s9149_s23  ;;  %8093 = vmatprep.subr.msk.mxu1 %vm561_vm1, %v650_v22 }
 0x1a7   : > { %v834_v29 = vpop.permute.xlu0 %833  ;;  %3758 = vrot.lane.b32.xlu1 %v524_v25, %s9151_s5 }
 0x1a9   : > { %8094 = vmatpush3.xpose.msk.msra.mxu1 %vm561_vm1, %v650_v22  ;;  %v923_v30 = vpop.permute.xlu1 %922 }
 0x1aa   : > { %3762 = vrot.lane.b32.xlu0 %v9393_v57, %s9150_s29  ;;  %8098 = vmatprep.subr.msk.mxu1 %vm561_vm1, %v743_v26 }
 0x1ab   : > { %v925_v32 = vpop.permute.xlu0 %924  ;;  %3944 = vrot.lane.b32.xlu1 %v9413_v62, %s9150_s29 }
 0x1ac   : > { %8096 = vmatmul.mubr.msk.f32.vlgmr.msra.gmra.mxu1 %vm561_vm1, %v526_v31 }
 0x1ad   : > { %8099 = vmatpush3.xpose.msk.msra.mxu1 %vm561_vm1, %v743_v26  ;;  %8102 = vmatprep.mubr.msk.f32.mxu1 %vm561_vm1, %v527_v33  ;;  %v9598_v34 = vpop.permute.xlu1 %1013  ;;  %v534_v26 = vmul.f32 0.25, %v9429_v3 }
 0x1ae   : > { %3760 = vrot.lane.b32.xlu0 %v9377_v52, %s9150_s29  ;;  %8100 = vmatprep.subr.msk.mxu1 %vm561_vm1, %v741_v24 }
 0x1af   : > { %v1016_v35 = vpop.permute.xlu0 %1015  ;;  %4035 = vrot.lane.b32.xlu1 %v9407_v60, %s9150_s29 }
 0x1b1   : > { %8101 = vmatpush3.xpose.msk.msra.mxu1 %vm561_vm1, %v741_v24  ;;  %v9606_v36 = vpop.permute.xlu1 %1104 }
 0x1b2   : > { %3756 = vrot.lane.b32.xlu0 %v9380_v53, %s9151_s5  ;;  %8105 = vmatprep.subr.msk.mxu1 %vm561_vm1, %v834_v29  ;;  %v9656_v53 = vmul.f32 0.25, %v9419_v0 }
 0x1b3   : > { %4033 = vrot.lane.b32.xlu1 %v9399_v58, %s9150_s29  ;;  %v9614_v38 = vpop.permute.xlu0 %1106 }
 0x1b4   : > { %8103 = vmatmul.mubr.msk.f32.vlgmr.msra.gmra.mxu1 %vm561_vm1, %v528_v37  ;;  %11627 = vst [vmem:[#allocation38_spill] sm:$0xff] %v9656_v53 }
 0x1b5   : > { %8106 = vmatpush3.xpose.msk.msra.mxu1 %vm561_vm1, %v834_v29  ;;  %8109 = vmatprep.mubr.msk.f32.mxu1 %vm561_vm1, %v529_v39  ;;  %v9620_v40 = vpop.permute.xlu1 %1195  ;;  %v9694_v29 = vmul.f32 0.25, %v9455_v11 }
 0x1b6   : > { %3847 = vrot.lane.b32.xlu0 %v525_v27, %s9151_s5  ;;  %8107 = vmatprep.subr.msk.mxu1 %vm561_vm1, %v832_v28 }
 0x1b7   : > { %3940 = vrot.lane.b32.xlu1 %v528_v37, %s9151_s5  ;;  %v9625_v41 = vpop.permute.xlu0 %1197  ;;  %11628 = vst [vmem:[#allocation39_spill] sm:$0xff] %v9694_v29  ;;  %v9731_v37 = vmul.f32 0.25, %v9477_v15 }
 0x1b9   : > { %8108 = vmatpush3.xpose.msk.msra.mxu1 %vm561_vm1, %v832_v28  ;;  %v9628_v42 = vpop.permute.xlu1 %1379  ;;  %v9691_v28 = vmul.f32 0.25, %v9443_v7  ;;  %11629 = vst [vmem:[#allocation40_spill] sm:$0xff] %v9731_v37 }
 0x1ba   : > { %3849 = vrot.lane.b32.xlu0 %v526_v31, %s9151_s5  ;;  %8112 = vmatprep.subr.msk.mxu1 %vm561_vm1, %v925_v32  ;;  %v9709_v31 = vmul.f32 0.25, %v9465_v13 }
 0x1bb   : > { %4126 = vrot.lane.b32.xlu1 %v9433_v4, %s9150_s29  ;;  %v1289_v44 = vpop.permute.xlu0 %1288 }
 0x1bc   : > { %8110 = vmatmul.mubr.msk.f32.vlgmr.msra.gmra.mxu1 %vm561_vm1, %v530_v43  ;;  %8140 = vmatprep.subr.msk.mxu0 %vm561_vm1, %v1289_v44 }
 0x1bd   : > { %8113 = vmatpush3.xpose.msk.msra.mxu1 %vm561_vm1, %v925_v32  ;;  %8116 = vmatprep.mubr.msk.f32.mxu1 %vm561_vm1, %v531_v45  ;;  %v9640_v46 = vpop.permute.xlu1 %1377 }
 0x1be   : > { %3942 = vrot.lane.b32.xlu0 %v9403_v59, %s9150_s29  ;;  %8141 = vmatpush3.xpose.msk.msra.mxu0 %vm561_vm1, %v1289_v44 }
 0x1bf   : > { %8114 = vmatprep.subr.msk.mxu1 %vm561_vm1, %v923_v30  ;;  %4217 = vrot.lane.b32.xlu1 %v9429_v3, %s9150_s29  ;;  %v1287_v47 = vpop.permute.xlu0 %1286 }
 0x1c0   : > { %8142 = vmatprep.subr.msk.mxu0 %vm561_vm1, %v1287_v47 }
 0x1c1   : > { %8115 = vmatpush3.xpose.msk.msra.mxu1 %vm561_vm1, %v923_v30  ;;  %v9650_v48 = vpop.permute.xlu1 %1561 }
 0x1c2   : > { %3938 = vrot.lane.b32.xlu0 %v527_v33, %s9151_s5  ;;  %8143 = vmatpush3.xpose.msk.msra.mxu0 %vm561_vm1, %v1287_v47  ;;  %v9769_v47 = vmul.f32 0.25, %v9501_v19 }
 0x1c3   : > { %8119 = vmatprep.subr.msk.mxu1 %vm561_vm1, %v1016_v35  ;;  %4215 = vrot.lane.b32.xlu1 %v9417_v63, %s9150_s29  ;;  %v1471_v20 = vpop.permute.xlu0 %1470 }
 0x1c4   : > { %8117 = vmatmul.mubr.msk.f32.vlgmr.msra.gmra.mxu1 %vm561_vm1, %v532_v49  ;;  %8154 = vmatprep.subr.msk.mxu0 %vm561_vm1, %v1471_v20  ;;  %11630 = vst [vmem:[#allocation41_spill] sm:$0xff] %v9769_v47 }
 0x1c5   : > { %8145 = vmatmul.mubr.msk.f32.vlgmr.msra.gmra.mxu0 %vm561_vm1, %v9656_v53  ;;  %8120 = vmatpush3.xpose.msk.msra.mxu1 %vm561_vm1, %v1016_v35  ;;  %v9667_v22 = vpop.permute.xlu1 %1559  ;;  %v9728_v35 = vmul.f32 0.25, %v9453_v10 }
 0x1c6   : > { %8123 = vmatprep.mubr.msk.f32.mxu1 %vm561_vm1, %v533_v21  ;;  %4029 = vrot.lane.b32.xlu0 %v529_v39, %s9151_s5  ;;  %v9749_v39 = vmul.f32 0.25, %v9489_v17 }
 0x1c7   : > { %8155 = vmatpush3.xpose.msk.msra.mxu0 %vm561_vm1, %v1471_v20  ;;  %8158 = vmatprep.mubr.msk.f32.mxu0 %vm561_vm1, %v9670_v23  ;;  %v1469_v24 = vpop.permute.xlu0 %1468 }
 0x1c8   : > { %8121 = vmatprep.subr.msk.mxu1 %vm561_vm1, %v9598_v34  ;;  %4122 = vrot.lane.b32.xlu1 %v532_v49, %s9151_s5  ;;  %v9774_v49 = vmul.f32 0.25, %v9375_v51 }
 0x1c9   : > { %8156 = vmatprep.subr.msk.mxu0 %vm561_vm1, %v1469_v24  ;;  %8122 = vmatpush3.xpose.msk.msra.mxu1 %vm561_vm1, %v9598_v34  ;;  %v9683_v25 = vpop.permute.xlu1 %1743 }
 0x1ca   : > { %4031 = vrot.lane.b32.xlu0 %v530_v43, %s9151_s5  ;;  %8126 = vmatprep.subr.msk.mxu1 %vm561_vm1, %v9614_v38 }
 0x1cb   : > { %8157 = vmatpush3.xpose.msk.msra.mxu0 %vm561_vm1, %v1469_v24  ;;  %v1653_v27 = vpop.permute.xlu0 %1652  ;;  %v9819_v24 = vmul.f32 0.25, %v9459_v12 }
 0x1cc   : > { %4399 = vrot.lane.b32.xlu1 %v9449_v9, %s9150_s29  ;;  %8124 = vmatmul.mubr.msk.f32.vlgmr.msra.gmra.mxu1 %vm561_vm1, %v534_v26 }
 0x1cd   : > { %8168 = vmatprep.subr.msk.mxu0 %vm561_vm1, %v1653_v27  ;;  %v9700_v30 = vpop.permute.xlu1 %1741  ;;  %8130 = vmatprep.mubr.msk.f32.mxu1 %vm561_vm1, %v9691_v28 }
 0x1ce   : > { %8159 = vmatmul.mubr.msk.f32.vlgmr.msra.gmra.mxu0 %vm561_vm1, %v9694_v29  ;;  %4124 = vrot.lane.b32.xlu0 %v9423_v1, %s9150_s29 }
 0x1cf   : > { %8127 = vmatpush3.xpose.msk.msra.mxu1 %vm561_vm1, %v9614_v38  ;;  %8169 = vmatpush3.xpose.msk.msra.mxu0 %vm561_vm1, %v1653_v27  ;;  %v1651_v32 = vpop.permute.xlu0 %1650 }
 0x1d0   : > { %8172 = vmatprep.mubr.msk.f32.mxu0 %vm561_vm1, %v9709_v31  ;;  %8128 = vmatprep.subr.msk.mxu1 %vm561_vm1, %v9606_v36 }
 0x1d1   : > { %4397 = vrot.lane.b32.xlu1 %v9439_v6, %s9150_s29  ;;  %8170 = vmatprep.subr.msk.mxu0 %vm561_vm1, %v1651_v32  ;;  %v9721_v33 = vpop.permute.xlu1 %1925 }
 0x1d2   : > { %4120 = vrot.lane.b32.xlu0 %v531_v45, %s9151_s5  ;;  %v9763_v45 = vmul.f32 0.25, %v9449_v9 }
 0x1d3   : > { %8129 = vmatpush3.xpose.msk.msra.mxu1 %vm561_vm1, %v9606_v36  ;;  %8171 = vmatpush3.xpose.msk.msra.mxu0 %vm561_vm1, %v1651_v32  ;;  %v1835_v34 = vpop.permute.xlu0 %1834  ;;  %v9743_v36 = vmul.f32 0.25, %v9439_v6 }
 0x1d4   : > { %8133 = vmatprep.subr.msk.mxu1 %vm561_vm1, %v9625_v41  ;;  %8182 = vmatprep.subr.msk.mxu0 %vm561_vm1, %v1835_v34 }
 0x1d5   : > { %4308 = vrot.lane.b32.xlu1 %v9453_v10, %s9150_s29  ;;  %v1924_v38 = vpop.permute.xlu1 %1923 }
 0x1d6   : > { %8131 = vmatmul.mubr.msk.f32.vlgmr.msra.gmra.mxu1 %vm561_vm1, %v9728_v35  ;;  %8173 = vmatmul.mubr.msk.f32.vlgmr.msra.gmra.mxu0 %vm561_vm1, %v9731_v37 }
 0x1d7   : > { %4211 = vrot.lane.b32.xlu0 %v533_v21, %s9151_s5  ;;  %8134 = vmatpush3.xpose.msk.msra.mxu1 %vm561_vm1, %v9625_v41  ;;  %v1833_v43 = vpop.permute.xlu0 %1832  ;;  %v9799_v21 = vmul.f32 0.25, %v9425_v2 }
 0x1d8   : > { %8137 = vmatprep.mubr.msk.f32.mxu1 %vm561_vm1, %v9743_v36  ;;  %8183 = vmatpush3.xpose.msk.msra.mxu0 %vm561_vm1, %v1835_v34 }
 0x1d9   : > { %8186 = vmatprep.mubr.msk.f32.mxu0 %vm561_vm1, %v9749_v39  ;;  %8135 = vmatprep.subr.msk.mxu1 %vm561_vm1, %v9620_v40  ;;  %v2454_v44 = vpop.permute.xlu1 %2453 }
 0x1da   : > { %8184 = vmatprep.subr.msk.mxu0 %vm561_vm1, %v1833_v43 }
 0x1db   : > { %4213 = vrot.lane.b32.xlu0 %v534_v26, %s9151_s5  ;;  %8136 = vmatpush3.xpose.msk.msra.mxu1 %vm561_vm1, %v9620_v40  ;;  %v2367_v41 = vpop.permute.xlu0 %2366 }
 0x1dc   : > { %8185 = vmatpush3.xpose.msk.msra.mxu0 %vm561_vm1, %v1833_v43  ;;  %8147 = vmatprep.subr.msk.mxu1 %vm561_vm1, %v9628_v42 }
 0x1dd   : > { %8196 = vmatprep.subr.mxu0 %v2367_v41  ;;  %v2365_v40 = vpop.permute.xlu1 %2364 }
 0x1de   : > { %8138 = vmatmul.mubr.msk.f32.vlgmr.msra.gmra.mxu1 %vm561_vm1, %v9763_v45 }
 0x1df   : > { %8187 = vmatmul.mubr.msk.f32.vlgmr.msra.gmra.mxu0 %vm561_vm1, %v9769_v47  ;;  %4306 = vrot.lane.b32.xlu0 %v9443_v7, %s9150_s29  ;;  %v9786_v20 = vpop.permute.xlu0 %2540 }
 0x1e0   : > { %8148 = vmatpush3.xpose.msk.msra.mxu1 %vm561_vm1, %v9628_v42  ;;  %8151 = vmatprep.mubr.msk.f32.mxu1 %vm561_vm1, %v9774_v49  ;;  %11631 = vst [vmem:[#allocation42_spill] sm:$0xff] %v9786_v20  ;;  %v9794_v42 = vmul.f32 0.25, %v9409_v61 }
 0x1e1   : > { %8197 = vmatpush3.msra.mxu0 %v2367_v41  ;;  %8149 = vmatprep.subr.msk.mxu1 %vm561_vm1, %v9640_v46  ;;  %v2452_v26 = vpop.permute.xlu1 %2451 }
 0x1e2   : > { %8198 = vmatprep.subr.mxu0 %v2365_v40 }
 0x1e3   : > { %8199 = vmatpush3.msra.mxu0 %v2365_v40  ;;  %2888 = vrot.lane.b32.xlu0 %v9453_v10, %s9149_s23  ;;  %v9852_v27 = vpop.permute.xlu0 %2627 }
 0x1e4   : > { %8210 = vmatprep.subr.mxu0 %v9786_v20  ;;  %8150 = vmatpush3.xpose.msk.msra.mxu1 %vm561_vm1, %v9640_v46  ;;  %v9814_v46 = vmul.f32 0.25, %v9445_v8  ;;  %11633 = vst [vmem:[#allocation44_spill] sm:$0xff] %v9852_v27 }
 0x1e5   : > { %8161 = vmatprep.subr.msk.mxu1 %vm561_vm1, %v9650_v48 }
 0x1e7   : > { %8152 = vmatmul.mubr.msk.f32.vlgmr.msra.gmra.mxu1 %vm561_vm1, %v9794_v42  ;;  %3584 = vrot.lane.b32.xlu0 %v9501_v19, %s9149_s23  ;;  %s9077_s23 = scalar_lea.vmem %s9076_s21, 8192 }
 0x1e8   : > { %8162 = vmatpush3.xpose.msk.msra.mxu1 %vm561_vm1, %v9650_v48  ;;  %8165 = vmatprep.mubr.msk.f32.mxu1 %vm561_vm1, %v9799_v21  ;;  %v9832_v48 = vmul.f32 0.25, %v9471_v14  ;;  %p9079_p12 = scmp.lt.s32.totalorder %s9077_s23, %s9071_s12 }
 0x1e9   : > { %8163 = vmatprep.subr.msk.mxu1 %vm561_vm1, %v9667_v22 }
 0x1ea   : > { %p9080_p7 = por %p9079_p12, %p9078_p6 }
 0x1ec   : > { %8164 = vmatpush3.xpose.msk.msra.mxu1 %vm561_vm1, %v9667_v22  ;;  %v9837_v22 = vmul.f32 0.25, %v9483_v16  ;;  %p9081_p9 = pnand %p9080_p7, %p9074_p2 }
 0x1ed   : > { %8175 = vmatprep.subr.msk.mxu1 %vm561_vm1, %v9683_v25 }
 0x1ef   : > { %8166 = vmatmul.mubr.msk.f32.vlgmr.msra.gmra.mxu1 %vm561_vm1, %v9814_v46 }
 0x1f0   : > { %8176 = vmatpush3.xpose.msk.msra.mxu1 %vm561_vm1, %v9683_v25  ;;  %8179 = vmatprep.mubr.msk.f32.mxu1 %vm561_vm1, %v9819_v24  ;;  %v9848_v25 = vmul.f32 0.25, %v9495_v18 }
 0x1f1   : > { %8177 = vmatprep.subr.msk.mxu1 %vm561_vm1, %v9700_v30 }
 0x1f2   : > { %11632 = vst [vmem:[#allocation43_spill] sm:$0xff] %v9848_v25 }
 0x1f4   : > { %8178 = vmatpush3.xpose.msk.msra.mxu1 %vm561_vm1, %v9700_v30  ;;  %v9855_v30 = vpop.permute.xlu1 %2625 }
 0x1f5   : > { %8189 = vmatprep.subr.msk.mxu1 %vm561_vm1, %v9721_v33  ;;  %11634 = vst [vmem:[#allocation45_spill] sm:$0xff] %v9855_v30 }
 0x1f7   : > { %8180 = vmatmul.mubr.msk.f32.vlgmr.msra.gmra.mxu1 %vm561_vm1, %v9832_v48 }
 0x1f8   : > { %8190 = vmatpush3.xpose.msk.msra.mxu1 %vm561_vm1, %v9721_v33  ;;  %8193 = vmatprep.mubr.msk.f32.mxu1 %vm561_vm1, %v9837_v22  ;;  %v9857_v32 = vpop.permute.xlu1 %2975  ;;  %v9859_v33 = vpop.permute.xlu0 %2538 }
 0x1f9   : > { %8191 = vmatprep.subr.msk.mxu1 %vm561_vm1, %v1924_v38  ;;  %11635 = vst [vmem:[#allocation46_spill] sm:$0xff] %v9857_v32  ;;  %11636 = vst [vmem:[#allocation47_spill] sm:$0xff] %v9859_v33 }
 0x1fc   : > { %8192 = vmatpush3.xpose.msk.msra.mxu1 %vm561_vm1, %v1924_v38  ;;  %v9865_v43 = vpop.permute.xlu1 %2973 }
 0x1fd   : > { %8203 = vmatprep.subr.mxu1 %v2454_v44  ;;  %11637 = vst [vmem:[#allocation48_spill] sm:$0xff] %v9865_v43 }
 0x1ff   : > { %8194 = vmatmul.mubr.msk.f32.vlgmr.msra.gmra.mxu1 %vm561_vm1, %v9848_v25 }
 0x200   : > { %8204 = vmatpush3.msra.mxu1 %v2454_v44  ;;  %v9867_v44 = vpop.permute.xlu0 %2714  ;;  %v9869_v41 = vpop.permute.xlu1 %3149 }
 0x201   : > { %8205 = vmatprep.subr.mxu1 %v2452_v26  ;;  %11638 = vst [vmem:[#allocation49_spill] sm:$0xff] %v9867_v44  ;;  %11639 = vst [vmem:[#allocation50_spill] sm:$0xff] %v9869_v41 }
 0x202   : > { %8206 = vmatpush3.msra.mxu1 %v2452_v26 }
 0x203   : > { %8217 = vmatprep.subr.mxu1 %v9852_v27 }
 0x204   : > { %v9871_v40 = vpop.permute.xlu0 %2801  ;;  %v9873_v26 = vpop.permute.xlu1 %3147 }
 0x205   : > { %11640 = vst [vmem:[#allocation51_spill] sm:$0xff] %v9871_v40  ;;  %11641 = vst [vmem:[#allocation52_spill] sm:$0xff] %v9873_v26 }
 0x208   : > { %v9875_v6 = vpop.permute.xlu0 %2712  ;;  %v9877_v9 = vpop.permute.xlu1 %3323 }
 0x209   : > { %11642 = vst [vmem:[#allocation53_spill] sm:$0xff] %v9875_v6  ;;  %11643 = vst [vmem:[#allocation54_spill] sm:$0xff] %v9877_v9 }
 0x20c   : > { %v9879_v63 = vpop.permute.xlu0 %2799  ;;  %v9881_v3 = vpop.permute.xlu1 %3321 }
 0x20d   : > { %11644 = vst [vmem:[#allocation55_spill] sm:$0xff] %v9879_v63  ;;  %11645 = vst [vmem:[#allocation56_spill] sm:$0xff] %v9881_v3 }
 0x210   : > { %v9889_v50 = vpop.permute.xlu1 %3497 }
 0x211   : > { %11647 = vst [vmem:[#allocation58_spill] sm:$0xff] %v9889_v50 }
 0x264   : > { %v9861_v34 = vpop.f32.mrf.mxu1 }
 0x265   : > { %v2015_v38 = vsel %vm561_vm1, %v9861_v34, -inf }
 0x266   : > { %2016 = vmax.xlane.f32.xlu1 %v2015_v38  ;;  %v9883_v58 = vpop.f32.mrf.mxu1  ;;  %v9887_v38 = vpop.permute.xlu0 %2886 }
 0x267   : > { %11646 = vst [vmem:[#allocation57_spill] sm:$0xff] %v9887_v38  ;;  %v2012_v50 = vsel %vm561_vm1, %v9883_v58, -inf  ;;  %v9907_v38 = vpop.permute.xlu1 %3495 }
 0x268   : > { %11649 = vst [vmem:[#allocation60_spill] sm:$0xff] %v9907_v38 }
 0x26a   : > { %v9901_v3 = vpop.permute.xlu0 %3062 }
 0x26b   : > { %11648 = vst [vmem:[#allocation59_spill] sm:$0xff] %v9901_v3 }
 0x26c   : > { %v9885_v60 = vpop.f32.mrf.mxu1 }
 0x26d   : > { %v2021_v3 = vsel %vm561_vm1, %v9885_v60, -inf }
 0x26e   : > { %v9891_v41 = vpop.f32.mrf.mxu1  ;;  %v9913_v16 = vpop.permute.xlu0 %3060 }
 0x26f   : > { %11650 = vst [vmem:[#allocation61_spill] sm:$0xff] %v9913_v16 }
 0x272   : > { %v9931_v19 = vpop.permute.xlu0 %3236 }
 0x273   : > { %11652 = vst [vmem:[#allocation63_spill] sm:$0xff] %v9931_v19 }
 0x274   : > { %v9897_v9 = vpop.f32.mrf.mxu1 }
 0x276   : > { %v9909_v47 = vpop.f32.mrf.mxu1  ;;  %v9949_v19 = vpop.permute.xlu0 %3234 }
 0x277   : > { %11654 = vst [vmem:[#allocation65_spill] sm:$0xff] %v9949_v19 }
 0x27c   : > { %v9911_v32 = vpop.f32.mrf.mxu1 }
 0x27e   : > { %v9923_v18 = vpop.f32.mrf.mxu1 }
 0x284   : > { %v9929_v16 = vpop.f32.mrf.mxu1 }
 0x285   : > { %v9893_v55 = vpop.f32.mrf.mxu0 }
 0x286   : > { %v2063_v26 = vsel %vm561_vm1, %v9893_v55, -inf }
 0x287   : > { %2064 = vmax.xlane.f32.xlu0 %v2063_v26  ;;  %v9899_v43 = vpop.f32.mrf.mxu0 }
 0x288   : > { %v2060_v25 = vsel %vm561_vm1, %v9899_v43, -inf }
 0x289   : > { %2061 = vmax.xlane.f32.xlu1 %v2060_v25  ;;  %v9921_v25 = vpop.permute.xlu1 %3671 }
 0x28a   : > { %11651 = vst [vmem:[#allocation62_spill] sm:$0xff] %v9921_v25  ;;  %v2018_v25 = vsel %vm561_vm1, %v9891_v41, -inf }
 0x28b   : > { %2013 = vmax.xlane.f32.xlu0 %v2012_v50 }
 0x28d   : > { %v9939_v6 = vpop.permute.xlu1 %3669 }
 0x28e   : > { %v9915_v26 = vpop.f32.mrf.mxu0  ;;  %11653 = vst [vmem:[#allocation64_spill] sm:$0xff] %v9939_v6 }
 0x28f   : > { %2022 = vmax.xlane.f32.xlu0 %v2021_v3  ;;  %v2075_v50 = vsel %vm561_vm1, %v9915_v26, -inf  ;;  %v2024_v3 = vsel %vm561_vm1, %v9909_v47, -inf }
 0x290   : > { %v9919_v63 = vpop.f32.mrf.mxu0 }
 0x291   : > { %v2072_v38 = vsel %vm561_vm1, %v9919_v63, -inf  ;;  %v9953_v14 = vpop.permute.xlu1 %3853 }
 0x292   : > { %2073 = vmax.xlane.f32.xlu1 %v2072_v38  ;;  %v9941_v38 = vpop.f32.mrf.mxu1  ;;  %11655 = vst [vmem:[#allocation66_spill] sm:$0xff] %v9953_v14  ;;  %v2033_v14 = vsel %vm561_vm1, %v9911_v32, -inf }
 0x293   : > { %2076 = vmax.xlane.f32.xlu0 %v2075_v50 }
 0x294   : > { %v9945_v7 = vpop.f32.mrf.mxu1 }
 0x295   : > { %v9973_v30 = vpop.permute.xlu1 %3851 }
 0x296   : > { %2025 = vmax.xlane.f32.xlu1 %v2024_v3  ;;  %v9935_v37 = vpop.f32.mrf.mxu0  ;;  %v2027_v3 = vsel %vm561_vm1, %v9897_v9, -inf  ;;  %v9955_v6 = vpop.f32.mrf.mxu1  ;;  %11657 = vst [vmem:[#allocation68_spill] sm:$0xff] %v9973_v30 }
 0x297   : > { %2019 = vmax.xlane.f32.xlu0 %v2018_v25  ;;  %v2030_v25 = vsel %vm561_vm1, %v9923_v18, -inf  ;;  %v2087_v40 = vsel %vm561_vm1, %v9935_v37, -inf }
 0x298   : > { %v9943_v12 = vpop.f32.mrf.mxu0  ;;  %v9961_v10 = vpop.f32.mrf.mxu1 }
 0x299   : > { %v2084_v50 = vsel %vm561_vm1, %v9943_v12, -inf  ;;  %v9985_v29 = vpop.permute.xlu1 %3758 }
 0x29a   : > { %2085 = vmax.xlane.f32.xlu1 %v2084_v50  ;;  %v9965_v50 = vpop.permute.xlu0 %3410  ;;  %11659 = vst [vmem:[#allocation70_spill] sm:$0xff] %v9985_v29 }
 0x29b   : > { %2028 = vmax.xlane.f32.xlu0 %v2027_v3  ;;  %11656 = vst [vmem:[#allocation67_spill] sm:$0xff] %v9965_v50 }
 0x29d   : > { %v10001_v29 = vpop.permute.xlu1 %3944 }
 0x29e   : > { %2031 = vmax.xlane.f32.xlu1 %v2030_v25  ;;  %v9975_v25 = vpop.f32.mrf.mxu1  ;;  %v9979_v1 = vpop.permute.xlu0 %3408  ;;  %11661 = vst [vmem:[#allocation72_spill] sm:$0xff] %v10001_v29 }
 0x29f   : > { %v9963_v15 = vpop.f32.mrf.mxu0  ;;  %2088 = vmax.xlane.f32.xlu0 %v2087_v40  ;;  %11658 = vst [vmem:[#allocation69_spill] sm:$0xff] %v9979_v1  ;;  %v2036_v40 = vsel %vm561_vm1, %v9941_v38, -inf }
 0x2a0   : > { %v9977_v27 = vpop.f32.mrf.mxu1  ;;  %v2099_v50 = vsel %vm561_vm1, %v9963_v15, -inf }
 0x2a1   : > { %v9967_v19 = vpop.f32.mrf.mxu0 }
 0x2a2   : > { %v2096_v3 = vsel %vm561_vm1, %v9967_v19, -inf  ;;  %v9987_v4 = vpop.f32.mrf.mxu1  ;;  %v9995_v1 = vpop.permute.xlu0 %3582 }
 0x2a3   : > { %2097 = vmax.xlane.f32.xlu1 %v2096_v3  ;;  %2034 = vmax.xlane.f32.xlu0 %v2033_v14  ;;  %v2042_v3 = vsel %vm561_vm1, %v9955_v6, -inf  ;;  %v2039_v14 = vsel %vm561_vm1, %v9929_v16, -inf  ;;  %11660 = vst [vmem:[#allocation71_spill] sm:$0xff] %v9995_v1  ;;  %v10013_v1 = vpop.permute.xlu1 %4035 }
 0x2a4   : > { %11663 = vst [vmem:[#allocation74_spill] sm:$0xff] %v10013_v1 }
 0x2a6   : > { %v10007_v59 = vpop.permute.xlu0 %3762 }
 0x2a7   : > { %2037 = vmax.xlane.f32.xlu1 %v2036_v40  ;;  %2100 = vmax.xlane.f32.xlu0 %v2099_v50  ;;  %v9993_v30 = vpop.f32.mrf.mxu1  ;;  %v2048_v40 = vsel %vm561_vm1, %v9975_v25, -inf  ;;  %v2045_v50 = vsel %vm561_vm1, %v9945_v7, -inf  ;;  %11662 = vst [vmem:[#allocation73_spill] sm:$0xff] %v10007_v59  ;;  %v10029_v1 = vpop.permute.xlu1 %4033 }
 0x2a8   : > { %11665 = vst [vmem:[#allocation76_spill] sm:$0xff] %v10029_v1 }
 0x2a9   : > { %v10003_v2 = vpop.f32.mrf.mxu1 }
 0x2aa   : > { %v10023_v59 = vpop.permute.xlu0 %3760 }
 0x2ab   : > { %2043 = vmax.xlane.f32.xlu1 %v2042_v3  ;;  %2040 = vmax.xlane.f32.xlu0 %v2039_v14  ;;  %v2054_v3 = vsel %vm561_vm1, %v9987_v4, -inf  ;;  %v2051_v14 = vsel %vm561_vm1, %v9961_v10, -inf  ;;  %11664 = vst [vmem:[#allocation75_spill] sm:$0xff] %v10023_v59  ;;  %v10039_v59 = vpop.permute.xlu1 %3940 }
 0x2ac   : > { %11667 = vst [vmem:[#allocation78_spill] sm:$0xff] %v10039_v59 }
 0x2ae   : > { %v10033_v20 = vpop.permute.xlu0 %3756 }
 0x2af   : > { %2049 = vmax.xlane.f32.xlu1 %v2048_v40  ;;  %2046 = vmax.xlane.f32.xlu0 %v2045_v50  ;;  %v10005_v44 = vpop.f32.mrf.mxu1  ;;  %v2066_v40 = vsel %vm561_vm1, %v10003_v2, -inf  ;;  %v2057_v50 = vsel %vm561_vm1, %v9977_v27, -inf  ;;  %11666 = vst [vmem:[#allocation77_spill] sm:$0xff] %v10033_v20  ;;  %v10049_v20 = vpop.permute.xlu1 %4126 }
 0x2b0   : > { %11669 = vst [vmem:[#allocation80_spill] sm:$0xff] %v10049_v20 }
 0x2b1   : > { %v10015_v8 = vpop.f32.mrf.mxu1 }
 0x2b3   : > { %2055 = vmax.xlane.f32.xlu1 %v2054_v3  ;;  %2052 = vmax.xlane.f32.xlu0 %v2051_v14  ;;  %v2078_v3 = vsel %vm561_vm1, %v10015_v8, -inf  ;;  %v2069_v14 = vsel %vm561_vm1, %v9993_v30, -inf }
 0x2b7   : > { %2067 = vmax.xlane.f32.xlu1 %v2066_v40  ;;  %v10021_v29 = vpop.f32.mrf.mxu1  ;;  %2058 = vmax.xlane.f32.xlu0 %v2057_v50  ;;  %v2081_v50 = vsel %vm561_vm1, %v10005_v44, -inf }
 0x2b8   : > { %v2093_v62 = vsel %vm561_vm1, %v10021_v29, -inf }
 0x2b9   : > { %v10031_v33 = vpop.f32.mrf.mxu1 }
 0x2ba   : > { %v2090_v40 = vsel %vm561_vm1, %v10031_v33, -inf }
 0x2bb   : > { %2079 = vmax.xlane.f32.xlu1 %v2078_v3  ;;  %2070 = vmax.xlane.f32.xlu0 %v2069_v14  ;;  %v10045_v3 = vpop.permute.xlu0 %3847 }
 0x2bc   : > { %11668 = vst [vmem:[#allocation79_spill] sm:$0xff] %v10045_v3 }
 0x2bf   : > { %2091 = vmax.xlane.f32.xlu1 %v2090_v40  ;;  %2082 = vmax.xlane.f32.xlu0 %v2081_v50  ;;  %v10043_v1 = vpop.f32.mrf.mxu1  ;;  %v10051_v11 = vpop.permute.xlu0 %3849 }
 0x2c0   : > { %v2105_v14 = vsel %vm561_vm1, %v10043_v1, -inf  ;;  %11670 = vst [vmem:[#allocation81_spill] sm:$0xff] %v10051_v11  ;;  %v10053_v40 = vpop.permute.xlu1 %4217 }
 0x2c1   : > { %11671 = vst [vmem:[#allocation82_spill] sm:$0xff] %v10053_v40 }
 0x2c3   : > { %2094 = vmax.xlane.f32.xlu0 %v2093_v62  ;;  %v10055_v50 = vpop.permute.xlu0 %3942 }
 0x2c4   : > { %11672 = vst [vmem:[#allocation83_spill] sm:$0xff] %v10055_v50  ;;  %v10059_v59 = vpop.permute.xlu1 %4215 }
 0x2c5   : > { %11673 = vst [vmem:[#allocation84_spill] sm:$0xff] %v10059_v59 }
 0x2c7   : > { %2106 = vmax.xlane.f32.xlu0 %v2105_v14  ;;  %v10061_v62 = vpop.permute.xlu0 %3938 }
 0x2c8   : > { %11674 = vst [vmem:[#allocation85_spill] sm:$0xff] %v10061_v62  ;;  %v10063_v3 = vpop.permute.xlu1 %4122  ;;  %v10081_v62 = vpop.f32.mrf.mxu1 }
 0x2c9   : > { %11675 = vst [vmem:[#allocation86_spill] sm:$0xff] %v10063_v3 }
 0x2cb   : > { %v10065_v52 = vpop.permute.xlu0 %4029 }
 0x2cc   : > { %11676 = vst [vmem:[#allocation87_spill] sm:$0xff] %v10065_v52  ;;  %v10069_v14 = vpop.permute.xlu1 %4399 }
 0x2cd   : > { %11677 = vst [vmem:[#allocation88_spill] sm:$0xff] %v10069_v14 }
 0x2cf   : > { %v10071_v11 = vpop.permute.xlu0 %4031 }
 0x2d0   : > { %4304 = vrot.lane.b32.xlu1 %v9728_v35, %s9151_s5  ;;  %11678 = vst [vmem:[#allocation89_spill] sm:$0xff] %v10071_v11  ;;  %v10073_v40 = vpop.permute.xlu1 %4397 }
 0x2d1   : > { %11679 = vst [vmem:[#allocation90_spill] sm:$0xff] %v10073_v40 }
 0x2d3   : > { %v10075_v20 = vpop.permute.xlu0 %4124 }
 0x2d4   : > { %11680 = vst [vmem:[#allocation91_spill] sm:$0xff] %v10075_v20  ;;  %v10077_v35 = vpop.permute.xlu1 %4308 }
 0x2d5   : > { %11681 = vst [vmem:[#allocation92_spill] sm:$0xff] %v10077_v35 }
 0x2d7   : > { %v10079_v59 = vpop.permute.xlu0 %4120 }
 0x2d8   : > { %11682 = vst [vmem:[#allocation93_spill] sm:$0xff] %v10079_v59 }
 0x2db   : > { %v10086_v14 = vpop.permute.xlu0 %4211 }
 0x2dc   : > { %11683 = vst [vmem:[#allocation94_spill] sm:$0xff] %v10086_v14 }
 0x2dd   : > { %4302 = vrot.lane.b32.xlu0 %v9691_v28, %s9151_s5  ;;  %v2102_v28 = vsel %vm561_vm1, %v10081_v62, -inf }
 0x2df   : > { %v10088_v40 = vpop.permute.xlu0 %4213 }
 0x2e0   : > { %11684 = vst [vmem:[#allocation95_spill] sm:$0xff] %v10088_v40 }
 0x2e3   : > { %v10090_v11 = vpop.permute.xlu0 %4306 }
 0x2e4   : > { %11685 = vst [vmem:[#allocation96_spill] sm:$0xff] %v10090_v11 }
 0x2e7   : > { %v10096_v59 = vpop.permute.xlu0 %2888 }
 0x2e8   : > { %11687 = vst [vmem:[#allocation98_spill] sm:$0xff] %v10096_v59 }
 0x2ef   : > { %v2017_v50 = vpop.xlane.xlu1 %2016 }
 0x2f0   : > { %v2109_v52 = vsub.f32 %v9861_v34, %v2017_v50 }
 0x2f2   : > { %v2142_v3 = vmul.f32 1.442695, %v2109_v52  ;;  %v10098_v52 = vpop.permute.xlu0 %3584 }
 0x2f3   : > { %11688 = vst [vmem:[#allocation99_spill] sm:$0xff] %v10098_v52 }
 0x2f4   : > { %8735 = vpow2.f32 %v2142_v3  ;;  %2103 = vmax.xlane.f32.xlu1 %v2102_v28 }
 0x301   : > { %v10092_v35 = vpop.eup %8735 }
 0x302   : > { %11686 = vst [vmem:[#allocation97_spill] sm:$0xff] %v10092_v35  ;;  %v2207_v20 = vsel %vm561_vm1, %v10092_v35, 0.0 }
 0x303   : > { %2208 = vadd.xlane.f32.xlu0 %v2207_v20 }
 0x310   : > { %v2065_v34 = vpop.xlane.xlu0 %2064 }
 0x311   : > { %v2125_v50 = vsub.f32 %v9893_v55, %v2065_v34 }
 0x312   : > { %v2062_v14 = vpop.xlane.xlu1 %2061 }
 0x313   : > { %v2174_v3 = vmul.f32 1.442695, %v2125_v50  ;;  %v2124_v28 = vsub.f32 %v9899_v43, %v2062_v14 }
 0x314   : > { %v2014_v40 = vpop.xlane.xlu0 %2013 }
 0x315   : > { %8737 = vpow2.f32 %v2174_v3  ;;  %v2108_v11 = vsub.f32 %v9883_v58, %v2014_v40  ;;  %v2172_v53 = vmul.f32 1.442695, %v2124_v28 }
 0x317   : > { %v2140_v57 = vmul.f32 1.442695, %v2108_v11 }
 0x318   : > { %v2023_v51 = vpop.xlane.xlu0 %2022 }
 0x319   : > { %8739 = vpow2.f32 %v2140_v57  ;;  %v2111_v20 = vsub.f32 %v9885_v60, %v2023_v51 }
 0x31a   : > { %8741 = vpow2.f32 %v2172_v53 }
 0x31b   : > { %v2146_v59 = vmul.f32 1.442695, %v2111_v20  ;;  %v2074_v52 = vpop.xlane.xlu1 %2073 }
 0x31c   : > { %v2077_v35 = vpop.xlane.xlu0 %2076  ;;  %v2128_v34 = vsub.f32 %v9919_v63, %v2074_v52 }
 0x31d   : > { %8743 = vpow2.f32 %v2146_v59  ;;  %v2129_v55 = vsub.f32 %v9915_v26, %v2077_v35 }
 0x31e   : > { %v2180_v57 = vmul.f32 1.442695, %v2128_v34 }
 0x31f   : > { %v2182_v43 = vmul.f32 1.442695, %v2129_v55  ;;  %v2026_v14 = vpop.xlane.xlu1 %2025 }
 0x320   : > { %v2020_v50 = vpop.xlane.xlu0 %2019  ;;  %v2112_v26 = vsub.f32 %v9909_v47, %v2026_v14 }
 0x321   : > { %8745 = vpow2.f32 %v2182_v43  ;;  %v2110_v58 = vsub.f32 %v9891_v41, %v2020_v50 }
 0x322   : > { %v10107_v11 = vpop.eup %8737 }
 0x323   : > { %v2144_v40 = vmul.f32 1.442695, %v2110_v58  ;;  %v2086_v51 = vpop.xlane.xlu1 %2085  ;;  %v2255_v60 = vsel %vm561_vm1, %v10107_v11, 0.0 }
 0x324   : > { %v2029_v53 = vpop.xlane.xlu0 %2028  ;;  %2256 = vadd.xlane.f32.xlu0 %v2255_v60  ;;  %v2132_v34 = vsub.f32 %v9943_v12, %v2086_v51 }
 0x325   : > { %8747 = vpow2.f32 %v2144_v40  ;;  %v2113_v59 = vsub.f32 %v9897_v9, %v2029_v53  ;;  %v2148_v9 = vmul.f32 1.442695, %v2112_v26 }
 0x326   : > { %v10112_v63 = vpop.eup %8739  ;;  %8749 = vpow2.f32 %v2180_v57  ;;  %v2188_v40 = vmul.f32 1.442695, %v2132_v34 }
 0x327   : > { %v2150_v35 = vmul.f32 1.442695, %v2113_v59  ;;  %v2032_v41 = vpop.xlane.xlu1 %2031  ;;  %v2204_v52 = vsel %vm561_vm1, %v10112_v63, 0.0  ;;  %v10117_v3 = vpop.eup %8741 }
 0x328   : > { %v2089_v28 = vpop.xlane.xlu0 %2088  ;;  %2205 = vadd.xlane.f32.xlu1 %v2204_v52  ;;  %v2252_v14 = vsel %vm561_vm1, %v10117_v3, 0.0  ;;  %v2114_v59 = vsub.f32 %v9923_v18, %v2032_v41 }
 0x329   : > { %8751 = vpow2.f32 %v2150_v35  ;;  %v2133_v20 = vsub.f32 %v9935_v37, %v2089_v28 }
 0x32a   : > { %v10120_v55 = vpop.eup %8743  ;;  %v2152_v34 = vmul.f32 1.442695, %v2114_v59 }
 0x32b   : > { %v2190_v43 = vmul.f32 1.442695, %v2133_v20  ;;  %v2213_v47 = vsel %vm561_vm1, %v10120_v55, 0.0 }
 0x32c   : > { %v2098_v50 = vpop.xlane.xlu1 %2097  ;;  %v2035_v58 = vpop.xlane.xlu0 %2034  ;;  %2214 = vadd.xlane.f32.xlu0 %v2213_v47  ;;  %2253 = vadd.xlane.f32.xlu1 %v2252_v14 }
 0x32d   : > { %8753 = vpow2.f32 %v2190_v43  ;;  %v2115_v57 = vsub.f32 %v9911_v32, %v2035_v58  ;;  %v2136_v43 = vsub.f32 %v9967_v19, %v2098_v50 }
 0x32e   : > { %v10128_v37 = vpop.eup %8745  ;;  %8755 = vpow2.f32 %v2148_v9 }
 0x32f   : > { %v2154_v60 = vmul.f32 1.442695, %v2115_v57  ;;  %v2267_v12 = vsel %vm561_vm1, %v10128_v37, 0.0  ;;  %v2196_v57 = vmul.f32 1.442695, %v2136_v43 }
 0x330   : > { %v2038_v51 = vpop.xlane.xlu1 %2037  ;;  %v2101_v53 = vpop.xlane.xlu0 %2100  ;;  %2268 = vadd.xlane.f32.xlu0 %v2267_v12 }
 0x331   : > { %v2137_v26 = vsub.f32 %v9963_v15, %v2101_v53  ;;  %8757 = vpow2.f32 %v2154_v60  ;;  %v2116_v50 = vsub.f32 %v9941_v38, %v2038_v51 }
 0x332   : > { %v10134_v35 = vpop.eup %8747  ;;  %8759 = vpow2.f32 %v2188_v40 }
 0x333   : > { %v2198_v32 = vmul.f32 1.442695, %v2137_v26  ;;  %v2210_v52 = vsel %vm561_vm1, %v10134_v35, 0.0  ;;  %v10138_v28 = vpop.eup %8749 }
 0x334   : > { %v2044_v20 = vpop.xlane.xlu1 %2043  ;;  %v2041_v9 = vpop.xlane.xlu0 %2040  ;;  %2211 = vadd.xlane.f32.xlu1 %v2210_v52  ;;  %v2264_v14 = vsel %vm561_vm1, %v10138_v28, 0.0  ;;  %v2156_v52 = vmul.f32 1.442695, %v2116_v50 }
 0x335   : > { %v2117_v18 = vsub.f32 %v9929_v16, %v2041_v9  ;;  %8761 = vpow2.f32 %v2198_v32  ;;  %v2118_v26 = vsub.f32 %v9955_v6, %v2044_v20 }
 0x336   : > { %v10142_v41 = vpop.eup %8751  ;;  %8763 = vpow2.f32 %v2152_v34 }
 0x337   : > { %v2158_v15 = vmul.f32 1.442695, %v2117_v18  ;;  %v2219_v47 = vsel %vm561_vm1, %v10142_v41, 0.0 }
 0x338   : > { %v2047_v58 = vpop.xlane.xlu0 %2046  ;;  %2220 = vadd.xlane.f32.xlu0 %v2219_v47  ;;  %2265 = vadd.xlane.f32.xlu1 %v2264_v14  ;;  %v2050_v16 = vpop.xlane.xlu1 %2049 }
 0x339   : > { %v2119_v40 = vsub.f32 %v9945_v7, %v2047_v58  ;;  %8765 = vpow2.f32 %v2158_v15  ;;  %v2160_v15 = vmul.f32 1.442695, %v2118_v26 }
 0x33a   : > { %v10149_v19 = vpop.eup %8753  ;;  %8767 = vpow2.f32 %v2196_v57 }
 0x33b   : > { %v2162_v60 = vmul.f32 1.442695, %v2119_v40  ;;  %v2279_v12 = vsel %vm561_vm1, %v10149_v19, 0.0  ;;  %v10154_v53 = vpop.eup %8755 }
 0x33c   : > { %v2053_v59 = vpop.xlane.xlu0 %2052  ;;  %2280 = vadd.xlane.f32.xlu1 %v2279_v12  ;;  %v2216_v38 = vsel %vm561_vm1, %v10154_v53, 0.0  ;;  %v2056_v34 = vpop.xlane.xlu1 %2055 }
 0x33d   : > { %v2121_v32 = vsub.f32 %v9961_v10, %v2053_v59  ;;  %8769 = vpow2.f32 %v2162_v60  ;;  %v2120_v10 = vsub.f32 %v9975_v25, %v2050_v16  ;;  %v2122_v25 = vsub.f32 %v9987_v4, %v2056_v34 }
 0x33e   : > { %v10158_v7 = vpop.eup %8757 }
 0x33f   : > { %v2166_v9 = vmul.f32 1.442695, %v2121_v32  ;;  %v10162_v51 = vpop.eup %8759  ;;  %v2225_v18 = vsel %vm561_vm1, %v10158_v7, 0.0  ;;  %v2164_v60 = vmul.f32 1.442695, %v2120_v10 }
 0x340   : > { %v2059_v43 = vpop.xlane.xlu0 %2058  ;;  %2217 = vadd.xlane.f32.xlu1 %v2216_v38  ;;  %2226 = vadd.xlane.f32.xlu0 %v2225_v18  ;;  %v2276_v47 = vsel %vm561_vm1, %v10162_v51, 0.0  ;;  %v2068_v50 = vpop.xlane.xlu1 %2067  ;;  %v2168_v4 = vmul.f32 1.442695, %v2122_v25 }
 0x341   : > { %v2123_v6 = vsub.f32 %v9977_v27, %v2059_v43  ;;  %8771 = vpow2.f32 %v2166_v9  ;;  %v2126_v38 = vsub.f32 %v10003_v2, %v2068_v50 }
 0x342   : > { %8773 = vpow2.f32 %v2156_v52  ;;  %v10170_v14 = vpop.eup %8761 }
 0x343   : > { %v2170_v20 = vmul.f32 1.442695, %v2123_v6  ;;  %8775 = vpow2.f32 %v2160_v15  ;;  %v10173_v40 = vpop.eup %8763  ;;  %v2291_v12 = vsel %vm561_vm1, %v10170_v14, 0.0 }
 0x344   : > { %v2071_v58 = vpop.xlane.xlu0 %2070  ;;  %2277 = vadd.xlane.f32.xlu1 %v2276_v47  ;;  %v2222_v52 = vsel %vm561_vm1, %v10173_v40, 0.0  ;;  %v2080_v43 = vpop.xlane.xlu1 %2079 }
 0x345   : > { %v2127_v57 = vsub.f32 %v9993_v30, %v2071_v58  ;;  %8777 = vpow2.f32 %v2170_v20  ;;  %v2176_v20 = vmul.f32 1.442695, %v2126_v38  ;;  %v2130_v2 = vsub.f32 %v10015_v8, %v2080_v43 }
 0x346   : > { %v10175_v27 = vpop.eup %8765 }
 0x347   : > { %v2178_v16 = vmul.f32 1.442695, %v2127_v57  ;;  %v2231_v26 = vsel %vm561_vm1, %v10175_v27, 0.0  ;;  %v10183_v32 = vpop.eup %8767 }
 0x348   : > { %v2083_v59 = vpop.xlane.xlu0 %2082  ;;  %2292 = vadd.xlane.f32.xlu1 %v2291_v12  ;;  %2232 = vadd.xlane.f32.xlu0 %v2231_v26  ;;  %v2288_v6 = vsel %vm561_vm1, %v10183_v32, 0.0 }
 0x349   : > { %v2131_v30 = vsub.f32 %v10005_v44, %v2083_v59  ;;  %8779 = vpow2.f32 %v2178_v16 }
 0x34a   : > { %v10187_v9 = vpop.eup %8769  ;;  %8781 = vpow2.f32 %v2164_v60  ;;  %v2184_v60 = vmul.f32 1.442695, %v2130_v2  ;;  %v2092_v2 = vpop.xlane.xlu1 %2091 }
 0x34b   : > { %v2186_v34 = vmul.f32 1.442695, %v2131_v30  ;;  %v2237_v15 = vsel %vm561_vm1, %v10187_v9, 0.0 }
 0x34c   : > { %v2095_v18 = vpop.xlane.xlu0 %2094  ;;  %2223 = vadd.xlane.f32.xlu1 %v2222_v52  ;;  %2238 = vadd.xlane.f32.xlu0 %v2237_v15 }
 0x34d   : > { %v2135_v44 = vsub.f32 %v10021_v29, %v2095_v18  ;;  %8783 = vpow2.f32 %v2186_v34 }
 0x34e   : > { %v10195_v10 = vpop.eup %8771  ;;  %8785 = vpow2.f32 %v2168_v4 }
 0x34f   : > { %v2194_v47 = vmul.f32 1.442695, %v2135_v44  ;;  %v10198_v58 = vpop.eup %8773  ;;  %v2243_v57 = vsel %vm561_vm1, %v10195_v10, 0.0 }
 0x350   : > { %2289 = vadd.xlane.f32.xlu1 %v2288_v6  ;;  %2244 = vadd.xlane.f32.xlu0 %v2243_v57  ;;  %v10202_v29 = vpop.eup %8775  ;;  %v2228_v25 = vsel %vm561_vm1, %v10198_v58, 0.0  ;;  %v2107_v57 = vpop.xlane.xlu0 %2106 }
 0x351   : > { %8787 = vpow2.f32 %v2194_v47  ;;  %v2234_v12 = vsel %vm561_vm1, %v10202_v29, 0.0  ;;  %v10255_v47 = vpop.permute.xlu1 %4304 }
 0x352   : > { %v10204_v50 = vpop.eup %8777  ;;  %8789 = vpow2.f32 %v2176_v20 }
 0x353   : > { %v2249_v8 = vsel %vm561_vm1, %v10204_v50, 0.0  ;;  %8791 = vpow2.f32 %v2184_v60  ;;  %v2139_v60 = vsub.f32 %v10043_v1, %v2107_v57 }
 0x354   : > { %2229 = vadd.xlane.f32.xlu1 %v2228_v25  ;;  %2250 = vadd.xlane.f32.xlu0 %v2249_v8 }
 0x356   : > { %v10210_v16 = vpop.eup %8779 }
 0x357   : > { %v10214_v59 = vpop.eup %8781  ;;  %v2261_v26 = vsel %vm561_vm1, %v10210_v16, 0.0 }
 0x358   : > { %2235 = vadd.xlane.f32.xlu1 %v2234_v12  ;;  %2262 = vadd.xlane.f32.xlu0 %v2261_v26  ;;  %v2240_v52 = vsel %vm561_vm1, %v10214_v59, 0.0 }
 0x35a   : > { %v10218_v30 = vpop.eup %8783 }
 0x35b   : > { %v10222_v4 = vpop.eup %8785  ;;  %v2273_v38 = vsel %vm561_vm1, %v10218_v30, 0.0 }
 0x35c   : > { %2241 = vadd.xlane.f32.xlu1 %v2240_v52  ;;  %2274 = vadd.xlane.f32.xlu0 %v2273_v38  ;;  %v2246_v18 = vsel %vm561_vm1, %v10222_v4, 0.0  ;;  %v11690_v38 = vld [vmem:[#allocation16_spill] sm:$0xff] }
 0x35e   : > { %v10226_v34 = vpop.eup %8787 }
 0x35f   : > { %v2285_v43 = vsel %vm561_vm1, %v10226_v34, 0.0  ;;  %v10232_v15 = vpop.eup %8789 }
 0x360   : > { %2247 = vadd.xlane.f32.xlu1 %v2246_v18  ;;  %2286 = vadd.xlane.f32.xlu0 %v2285_v43  ;;  %v2258_v44 = vsel %vm561_vm1, %v10232_v15, 0.0  ;;  %v10236_v6 = vpop.eup %8791 }
 0x361   : > { %v2270_v20 = vsel %vm561_vm1, %v10236_v6, 0.0 }
 0x364   : > { %2259 = vadd.xlane.f32.xlu1 %v2258_v44 }
 0x368   : > { %2271 = vadd.xlane.f32.xlu1 %v2270_v20 }
 0x376   : > { %4393 = vrot.lane.b32.xlu0 %v9743_v36, %s9151_s5  ;;  %v2134_v36 = vsub.f32 %v10031_v33, %v2092_v2 }
 0x379   : > { %4490 = vrot.lane.b32.xlu1 %v9419_v0, %s9150_s29 }
 0x37a   : > { %4395 = vrot.lane.b32.xlu0 %v9763_v45, %s9151_s5  ;;  %v2192_v45 = vmul.f32 1.442695, %v2134_v36  ;;  %v11693_v36 = vld [vmem:[#allocation97_spill] sm:$0xff] }
 0x37c   : > { %8793 = vpow2.f32 %v2192_v45 }
 0x37d   : > { %4581 = vrot.lane.b32.xlu1 %v9409_v61, %s9150_s29  ;;  %v2104_v25 = vpop.xlane.xlu1 %2103 }
 0x37e   : > { %4488 = vrot.lane.b32.xlu0 %v9382_v54, %s9150_s29  ;;  %v2138_v8 = vsub.f32 %v10081_v62, %v2104_v25  ;;  %v10287_v62 = vpop.permute.xlu0 %4302  ;;  %v11695_v25 = vld [vmem:[#allocation20_spill] sm:$0xff] }
 0x382   : > { %4484 = vrot.lane.b32.xlu0 %v9387_v56, %s9151_s5  ;;  %v2202_v56 = vmul.f32 1.442695, %v2139_v60  ;;  %v11694_v60 = vld [vmem:[#allocation31_spill] sm:$0xff] }
 0x384   : > { %8795 = vpow2.f32 %v2202_v56  ;;  %v11696_v56 = vld [vmem:[#allocation42_spill] sm:$0xff] }
 0x386   : > { %4575 = vrot.lane.b32.xlu0 %v9774_v49, %s9151_s5  ;;  %v2200_v49 = vmul.f32 1.442695, %v2138_v8  ;;  %v11697_v8 = vld [vmem:[#allocation47_spill] sm:$0xff] }
 0x388   : > { %8797 = vpow2.f32 %v2200_v49 }
 0x389   : > { %v10269_v1 = vpop.eup %8793 }
 0x38a   : > { %4577 = vrot.lane.b32.xlu0 %v9794_v42, %s9151_s5  ;;  %v2282_v42 = vsel %vm561_vm1, %v10269_v1, 0.0 }
 0x38c   : > { %v2209_v12 = vpop.xlane.xlu0 %2208 }
 0x38d   : > { %8799 = vrcp.f32 %v2209_v12 }
 0x38e   : > { %4670 = vrot.lane.b32.xlu0 %v9435_v5, %s9150_s29 }
 0x391   : > { %v10275_v33 = vpop.eup %8795 }
 0x392   : > { %4666 = vrot.lane.b32.xlu0 %v9670_v23, %s9151_s5  ;;  %v2297_v23 = vsel %vm561_vm1, %v10275_v33, 0.0 }
 0x396   : > { %4757 = vrot.lane.b32.xlu0 %v9799_v21, %s9151_s5  ;;  %v10281_v21 = vpop.eup %8797 }
 0x39a   : > { %4759 = vrot.lane.b32.xlu0 %v9814_v46, %s9151_s5  ;;  %v2294_v46 = vsel %vm561_vm1, %v10281_v21, 0.0  ;;  %v8800_v18 = vpop.eup %8799 }
 0x39b   : > { %v2333_v57 = vmul.f32 %v8800_v18, %v11693_v36  ;;  %v11704_v36 = vld [vmem:[#allocation22_spill] sm:$0xff] }
 0x39e   : > { %4852 = vrot.lane.b32.xlu0 %v9465_v13, %s9150_s29 }
 0x3a1   : > { %2283 = vadd.xlane.f32.xlu1 %v2282_v42  ;;  %v11698_v42 = vld [vmem:[#allocation28_spill] sm:$0xff] }
 0x3a2   : > { %4848 = vrot.lane.b32.xlu0 %v9709_v31, %s9151_s5 }
 0x3a5   : > { %2298 = vadd.xlane.f32.xlu1 %v2297_v23  ;;  %v11699_v23 = vld [vmem:[#allocation18_spill] sm:$0xff] }
 0x3a6   : > { %4939 = vrot.lane.b32.xlu0 %v9819_v24, %s9151_s5 }
 0x3a9   : > { %2295 = vadd.xlane.f32.xlu1 %v2294_v46  ;;  %v11700_v46 = vld [vmem:[#allocation49_spill] sm:$0xff] }
 0x3aa   : > { %4941 = vrot.lane.b32.xlu0 %v9832_v48, %s9151_s5  ;;  %v11689_v48 = vld [vmem:[#allocation13_spill] sm:$0xff] }
 0x3ad   : > { %v10295_v24 = vpop.xlane.xlu0 %2256 }
 0x3ae   : > { %5034 = vrot.lane.b32.xlu0 %v9489_v17, %s9150_s29 }
 0x3b1   : > { %v2206_v31 = vpop.xlane.xlu1 %2205 }
 0x3b2   : > { %8801 = vrcp.f32 %v2206_v31  ;;  %5030 = vrot.lane.b32.xlu0 %v9749_v39, %s9151_s5  ;;  %v11691_v39 = vld [vmem:[#allocation38_spill] sm:$0xff] }
 0x3b5   : > { %v10299_v26 = vpop.xlane.xlu1 %2253  ;;  %v2215_v52 = vpop.xlane.xlu0 %2214 }
 0x3b6   : > { %5121 = vrot.lane.b32.xlu0 %v9837_v22, %s9151_s5  ;;  %8803 = vrcp.f32 %v2215_v52  ;;  %v11692_v22 = vld [vmem:[#allocation14_spill] sm:$0xff]  ;;  %v11701_v52 = vld [vmem:[#allocation23_spill] sm:$0xff] }
 0x3b9   : > { %v10313_v45 = vpop.xlane.xlu0 %2268 }
 0x3ba   : > { %4579 = vrot.lane.b32.xlu1 %v11689_v48, %s9150_s29  ;;  %5566 = vrot.lane.b32.xlu0 %v11690_v38, %s9152_s6 }
 0x3bd   : > { %v2212_v43 = vpop.xlane.xlu1 %2211 }
 0x3be   : > { %8805 = vrcp.f32 %v2212_v43  ;;  %4486 = vrot.lane.b32.xlu1 %v11691_v39, %s9151_s5  ;;  %5564 = vrot.lane.b32.xlu0 %v11692_v22, %s9152_s6  ;;  %v11702_v43 = vld [vmem:[#allocation25_spill] sm:$0xff]  ;;  %v11703_v22 = vld [vmem:[#allocation39_spill] sm:$0xff] }
 0x3bf   : > { %v8802_v44 = vpop.eup %8801 }
 0x3c0   : > { %v2332_v20 = vmul.f32 %v8802_v44, %v10112_v63 }
 0x3c1   : > { %v10310_v2 = vpop.xlane.xlu1 %2265  ;;  %v2221_v49 = vpop.xlane.xlu0 %2220 }
 0x3c2   : > { %4672 = vrot.lane.b32.xlu1 %v11694_v60, %s9150_s29  ;;  %8200 = vmatprep.mubr.msk.f32.mxu0 %vm561_vm1, %v2332_v20  ;;  %8807 = vrcp.f32 %v2221_v49  ;;  %v11709_v49 = vld [vmem:[#allocation51_spill] sm:$0xff] }
 0x3c3   : > { %5740 = vrot.lane.b32.xlu0 %v11695_v25, %s9152_s6  ;;  %8201 = vmatmul.mubr.msk.f32.vlgmr.msra.gmra.mxu0 %vm561_vm1, %v2333_v57  ;;  %v8804_v31 = vpop.eup %8803  ;;  %v11705_v57 = vld [vmem:[#allocation44_spill] sm:$0xff]  ;;  %v11706_v25 = vld [vmem:[#allocation45_spill] sm:$0xff] }
 0x3c4   : > { %8211 = vmatpush3.msra.mxu0 %v11696_v56  ;;  %v2335_v44 = vmul.f32 %v8804_v31, %v10120_v55  ;;  %v11707_v55 = vld [vmem:[#allocation34_spill] sm:$0xff]  ;;  %v11710_v31 = vld [vmem:[#allocation33_spill] sm:$0xff] }
 0x3c5   : > { %8212 = vmatprep.subr.mxu0 %v11697_v8  ;;  %v10323_v63 = vpop.xlane.xlu1 %2280 }
 0x3c6   : > { %8213 = vmatpush3.msra.mxu0 %v11697_v8  ;;  %4763 = vrot.lane.b32.xlu1 %v11698_v42, %s9150_s29  ;;  %v11708_v8 = vld [vmem:[#allocation30_spill] sm:$0xff] }
 0x3c7   : > { %5738 = vrot.lane.b32.xlu0 %v11699_v23, %s9152_s6  ;;  %8224 = vmatprep.subr.mxu0 %v11700_v46 }
 0x3c9   : > { %v2218_v12 = vpop.xlane.xlu1 %2217  ;;  %v2227_v20 = vpop.xlane.xlu0 %2226 }
 0x3ca   : > { %8809 = vrcp.f32 %v2218_v12  ;;  %4761 = vrot.lane.b32.xlu1 %v11701_v52, %s9150_s29 }
 0x3cb   : > { %v8806_v38 = vpop.eup %8805  ;;  %5914 = vrot.lane.b32.xlu0 %v11702_v43, %s9152_s6  ;;  %8811 = vrcp.f32 %v2227_v20  ;;  %v11711_v43 = vld [vmem:[#allocation27_spill] sm:$0xff]  ;;  %v11713_v20 = vld [vmem:[#allocation53_spill] sm:$0xff] }
 0x3cc   : > { %v2334_v18 = vmul.f32 %v8806_v38, %v10134_v35 }
 0x3cd   : > { %v10336_v39 = vpop.xlane.xlu1 %2277 }
 0x3ce   : > { %4668 = vrot.lane.b32.xlu1 %v11703_v22, %s9151_s5  ;;  %8207 = vmatprep.mubr.msk.f32.mxu1 %vm561_vm1, %v2334_v18 }
 0x3cf   : > { %5912 = vrot.lane.b32.xlu0 %v11704_v36, %s9152_s6  ;;  %8208 = vmatmul.mubr.msk.f32.vlgmr.msra.gmra.mxu1 %vm561_vm1, %v2335_v44  ;;  %v8808_v12 = vpop.eup %8807 }
 0x3d0   : > { %8218 = vmatpush3.msra.mxu1 %v11705_v57  ;;  %v2337_v36 = vmul.f32 %v8808_v12, %v10142_v41  ;;  %v11712_v57 = vld [vmem:[#allocation32_spill] sm:$0xff] }
 0x3d1   : > { %8219 = vmatprep.subr.mxu1 %v11706_v25  ;;  %v10347_v35 = vpop.xlane.xlu1 %2292  ;;  %v2233_v56 = vpop.xlane.xlu0 %2232  ;;  %v11714_v41 = vld [vmem:[#allocation40_spill] sm:$0xff] }
 0x3d2   : > { %8220 = vmatpush3.msra.mxu1 %v11706_v25  ;;  %4854 = vrot.lane.b32.xlu1 %v11707_v55, %s9150_s29 }
 0x3d3   : > { %6088 = vrot.lane.b32.xlu0 %v11708_v8, %s9152_s6  ;;  %8231 = vmatprep.subr.mxu1 %v11709_v49  ;;  %v11715_v8 = vld [vmem:[#allocation98_spill] sm:$0xff] }
 0x3d5   : > { %v2224_v23 = vpop.xlane.xlu1 %2223  ;;  %v2239_v44 = vpop.xlane.xlu0 %2238 }
 0x3d6   : > { %8813 = vrcp.f32 %v2224_v23  ;;  %4945 = vrot.lane.b32.xlu1 %v11710_v31, %s9150_s29 }
 0x3d7   : > { %v8810_v38 = vpop.eup %8809  ;;  %6086 = vrot.lane.b32.xlu0 %v11711_v43, %s9152_s6  ;;  %8815 = vrcp.f32 %v2233_v56 }
 0x3d8   : > { %v2336_v18 = vmul.f32 %v8810_v38, %v10154_v53  ;;  %v8812_v23 = vpop.eup %8811 }
 0x3d9   : > { %v10360_v22 = vpop.xlane.xlu1 %2289  ;;  %v2245_v25 = vpop.xlane.xlu0 %2244 }
 0x3da   : > { %4943 = vrot.lane.b32.xlu1 %v11712_v57, %s9150_s29  ;;  %8214 = vmatprep.mubr.msk.f32.mxu0 %vm561_vm1, %v2336_v18  ;;  %v11717_v18 = vld [vmem:[#allocation36_spill] sm:$0xff] }
 0x3db   : > { %6262 = vrot.lane.b32.xlu0 %v9419_v0, %s9152_s6  ;;  %8215 = vmatmul.mubr.msk.f32.vlgmr.msra.gmra.mxu0 %vm561_vm1, %v2337_v36 }
 0x3dc   : > { %8225 = vmatpush3.msra.mxu0 %v11700_v46  ;;  %v11716_v46 = vld [vmem:[#allocation37_spill] sm:$0xff] }
 0x3dd   : > { %8226 = vmatprep.subr.mxu0 %v11713_v20  ;;  %v2230_v53 = vpop.xlane.xlu1 %2229  ;;  %v2251_v38 = vpop.xlane.xlu0 %2250 }
 0x3de   : > { %8227 = vmatpush3.msra.mxu0 %v11713_v20  ;;  %8817 = vrcp.f32 %v2230_v53  ;;  %4850 = vrot.lane.b32.xlu1 %v11714_v41, %s9151_s5 }
 0x3df   : > { %6260 = vrot.lane.b32.xlu0 %v9382_v54, %s9152_s6  ;;  %8238 = vmatprep.subr.mxu0 %v11715_v8  ;;  %8819 = vrcp.f32 %v2239_v44  ;;  %v2339_v54 = vmul.f32 %v8812_v23, %v10158_v7  ;;  %v11719_v44 = vld [vmem:[#allocation35_spill] sm:$0xff] }
 0x3e0   : > { %v11723_v23 = vld [vmem:[#allocation43_spill] sm:$0xff] }
 0x3e1   : > { %v2236_v0 = vpop.xlane.xlu1 %2235 }
 0x3e2   : > { %8821 = vrcp.f32 %v2236_v0  ;;  %5036 = vrot.lane.b32.xlu1 %v11716_v46, %s9150_s29 }
 0x3e3   : > { %v8814_v56 = vpop.eup %8813  ;;  %6436 = vrot.lane.b32.xlu0 %v11694_v60, %s9152_s6  ;;  %8823 = vrcp.f32 %v2245_v25  ;;  %v11721_v25 = vld [vmem:[#allocation41_spill] sm:$0xff] }
 0x3e4   : > { %v2338_v12 = vmul.f32 %v8814_v56, %v10173_v40  ;;  %v11718_v40 = vld [vmem:[#allocation55_spill] sm:$0xff]  ;;  %v8816_v7 = vpop.eup %8815 }
 0x3e5   : > { %v2242_v43 = vpop.xlane.xlu1 %2241  ;;  %v2341_v53 = vmul.f32 %v8816_v7, %v10175_v27 }
 0x3e6   : > { %8825 = vrcp.f32 %v2242_v43  ;;  %5127 = vrot.lane.b32.xlu1 %v11717_v18, %s9150_s29  ;;  %8221 = vmatprep.mubr.msk.f32.mxu1 %vm561_vm1, %v2338_v12 }
 0x3e7   : > { %8827 = vrcp.f32 %v10299_v26  ;;  %6434 = vrot.lane.b32.xlu0 %v9435_v5, %s9152_s6  ;;  %8222 = vmatmul.mubr.msk.f32.vlgmr.msra.gmra.mxu1 %vm561_vm1, %v2339_v54  ;;  %v2263_v26 = vpop.xlane.xlu0 %2262  ;;  %v11720_v5 = vld [vmem:[#allocation46_spill] sm:$0xff] }
 0x3e8   : > { %8232 = vmatpush3.msra.mxu1 %v11709_v49  ;;  %8829 = vrcp.f32 %v2251_v38  ;;  %v11725_v38 = vld [vmem:[#allocation48_spill] sm:$0xff] }
 0x3e9   : > { %8233 = vmatprep.subr.mxu1 %v11718_v40  ;;  %v2248_v60 = vpop.xlane.xlu1 %2247 }
 0x3ea   : > { %8234 = vmatpush3.msra.mxu1 %v11718_v40  ;;  %8831 = vrcp.f32 %v2248_v60  ;;  %5125 = vrot.lane.b32.xlu1 %v11719_v44, %s9150_s29  ;;  %v11727_v60 = vld [vmem:[#allocation50_spill] sm:$0xff] }
 0x3eb   : > { %v8818_v36 = vpop.eup %8817  ;;  %8833 = vrcp.f32 %v10295_v24  ;;  %6610 = vrot.lane.b32.xlu0 %v11707_v55, %s9152_s6  ;;  %8245 = vmatprep.subr.mxu1 %v11720_v5  ;;  %v2275_v27 = vpop.xlane.xlu0 %2274 }
 0x3ec   : > { %v2340_v49 = vmul.f32 %v8818_v36, %v10198_v58  ;;  %8835 = vrcp.f32 %v10310_v2  ;;  %v8820_v41 = vpop.eup %8819  ;;  %v11722_v2 = vld [vmem:[#allocation57_spill] sm:$0xff] }
 0x3ed   : > { %v2260_v20 = vpop.xlane.xlu1 %2259  ;;  %v11728_v36 = vld [vmem:[#allocation61_spill] sm:$0xff] }
 0x3ee   : > { %8837 = vrcp.f32 %v2260_v20  ;;  %5032 = vrot.lane.b32.xlu1 %v11721_v25, %s9151_s5  ;;  %8228 = vmatprep.mubr.msk.f32.mxu0 %vm561_vm1, %v2340_v49 }
 0x3ef   : > { %v8822_v24 = vpop.eup %8821  ;;  %6608 = vrot.lane.b32.xlu0 %v9465_v13, %s9152_s6  ;;  %8229 = vmatmul.mubr.msk.f32.vlgmr.msra.gmra.mxu0 %vm561_vm1, %v2341_v53  ;;  %8839 = vrcp.f32 %v10313_v45  ;;  %v2343_v13 = vmul.f32 %v8820_v41, %v10187_v9  ;;  %v11724_v45 = vld [vmem:[#allocation59_spill] sm:$0xff]  ;;  %v10426_v54 = vpop.xlane.xlu0 %2286  ;;  %v11732_v41 = vld [vmem:[#allocation65_spill] sm:$0xff] }
 0x3f0   : > { %8239 = vmatpush3.msra.mxu0 %v11715_v8  ;;  %v2342_v58 = vmul.f32 %v8822_v24, %v10202_v29  ;;  %8841 = vrcp.f32 %v2263_v26  ;;  %v8824_v0 = vpop.eup %8823  ;;  %v11726_v9 = vld [vmem:[#allocation15_spill] sm:$0xff] }
 0x3f1   : > { %8240 = vmatprep.subr.mxu0 %v11722_v2  ;;  %v2272_v55 = vpop.xlane.xlu1 %2271  ;;  %8843 = vrcp.f32 %v10336_v39  ;;  %v2345_v39 = vmul.f32 %v8824_v0, %v10195_v10  ;;  %v11733_v24 = vld [vmem:[#allocation19_spill] sm:$0xff] }
 0x3f2   : > { %8241 = vmatpush3.msra.mxu0 %v11722_v2  ;;  %5123 = vrot.lane.b32.xlu1 %v11723_v23, %s9151_s5  ;;  %8845 = vrcp.f32 %v2272_v55  ;;  %v11736_v23 = vld [vmem:[#allocation56_spill] sm:$0xff] }
 0x3f3   : > { %v8826_v56 = vpop.eup %8825  ;;  %8235 = vmatprep.mubr.msk.f32.mxu1 %vm561_vm1, %v2342_v58  ;;  %8252 = vmatprep.subr.mxu0 %v11724_v45  ;;  %8847 = vrcp.f32 %v2275_v27  ;;  %v11734_v58 = vld [vmem:[#allocation54_spill] sm:$0xff]  ;;  %v11735_v27 = vld [vmem:[#allocation67_spill] sm:$0xff] }
 0x3f4   : > { %v8828_v29 = vpop.eup %8827  ;;  %8236 = vmatmul.mubr.msk.f32.vlgmr.msra.gmra.mxu1 %vm561_vm1, %v2343_v13  ;;  %v2344_v8 = vmul.f32 %v8826_v56, %v10214_v59  ;;  %8849 = vrcp.f32 %v10323_v63  ;;  %v11737_v13 = vld [vmem:[#allocation69_spill] sm:$0xff] }
 0x3f5   : > { %8246 = vmatpush3.msra.mxu1 %v11720_v5  ;;  %v8830_v12 = vpop.eup %8829  ;;  %v2348_v59 = vmul.f32 %v8828_v29, %v10117_v3  ;;  %8851 = vrcp.f32 %v10360_v22  ;;  %v11729_v3 = vld [vmem:[#allocation12_spill] sm:$0xff]  ;;  %v11730_v5 = vld [vmem:[#allocation63_spill] sm:$0xff]  ;;  %v10448_v22 = vpop.permute.xlu0 %4393 }
 0x3f6   : > { %8247 = vmatprep.subr.mxu1 %v11725_v38  ;;  %5653 = vrot.lane.b32.xlu1 %v11726_v9, %s9152_s6  ;;  %v2347_v63 = vmul.f32 %v8830_v12, %v10204_v50  ;;  %8853 = vrcp.f32 %v10347_v35  ;;  %v11740_v12 = vld [vmem:[#allocation99_spill] sm:$0xff] }
 0x3f7   : > { %v8832_v43 = vpop.eup %8831  ;;  %8248 = vmatpush3.msra.mxu1 %v11725_v38  ;;  %8242 = vmatprep.mubr.msk.f32.mxu0 %vm561_vm1, %v2344_v8  ;;  %8855 = vrcp.f32 %v10426_v54 }
 0x3f8   : > { %v8834_v40 = vpop.eup %8833  ;;  %8259 = vmatprep.subr.mxu1 %v11727_v60  ;;  %8243 = vmatmul.mubr.msk.f32.vlgmr.msra.gmra.mxu0 %vm561_vm1, %v2345_v39  ;;  %v2346_v7 = vmul.f32 %v8832_v43, %v10222_v4  ;;  %v11742_v39 = vld [vmem:[#allocation71_spill] sm:$0xff]  ;;  %v11743_v43 = vld [vmem:[#allocation24_spill] sm:$0xff] }
 0x3f9   : > { %8253 = vmatpush3.msra.mxu0 %v11724_v45  ;;  %8256 = vmatprep.mubr.msk.f32.mxu0 %vm561_vm1, %v2348_v59  ;;  %v8836_v10 = vpop.eup %8835  ;;  %v2349_v4 = vmul.f32 %v8834_v40, %v10107_v11  ;;  %v11731_v11 = vld [vmem:[#allocation52_spill] sm:$0xff]  ;;  %v10467_v2 = vpop.permute.xlu0 %4395  ;;  %v11738_v45 = vld [vmem:[#allocation17_spill] sm:$0xff]  ;;  %v11744_v59 = vld [vmem:[#allocation62_spill] sm:$0xff] }
 0x3fa   : > { %8254 = vmatprep.subr.mxu0 %v11728_v36  ;;  %5651 = vrot.lane.b32.xlu1 %v11729_v3, %s9152_s6  ;;  %v2352_v50 = vmul.f32 %v8836_v10, %v10138_v28  ;;  %v11745_v40 = vld [vmem:[#allocation73_spill] sm:$0xff] }
 0x3fb   : > { %v8838_v26 = vpop.eup %8837  ;;  %8255 = vmatpush3.msra.mxu0 %v11728_v36  ;;  %8249 = vmatprep.mubr.msk.f32.mxu1 %vm561_vm1, %v2346_v7  ;;  %v11747_v7 = vld [vmem:[#allocation75_spill] sm:$0xff]  ;;  %v11749_v36 = vld [vmem:[#allocation72_spill] sm:$0xff]  ;;  %v11750_v3 = vld [vmem:[#allocation29_spill] sm:$0xff] }
 0x3fc   : > { %8266 = vmatprep.subr.mxu0 %v11730_v5  ;;  %8250 = vmatmul.mubr.msk.f32.vlgmr.msra.gmra.mxu1 %vm561_vm1, %v2347_v63  ;;  %v8840_v49 = vpop.eup %8839  ;;  %v2350_v20 = vmul.f32 %v8838_v26, %v10232_v15  ;;  %v11751_v63 = vld [vmem:[#allocation70_spill] sm:$0xff]  ;;  %v11752_v26 = vld [vmem:[#allocation85_spill] sm:$0xff] }
 0x3fd   : > { %8257 = vmatmul.mubr.msk.f32.vlgmr.msra.gmra.mxu0 %vm561_vm1, %v2349_v4  ;;  %8260 = vmatpush3.msra.mxu1 %v11727_v60  ;;  %v8842_v53 = vpop.eup %8841  ;;  %v2353_v15 = vmul.f32 %v8840_v49, %v10128_v37  ;;  %v10486_v8 = vpop.permute.xlu0 %4488  ;;  %v11746_v60 = vld [vmem:[#allocation77_spill] sm:$0xff]  ;;  %v11753_v4 = vld [vmem:[#allocation83_spill] sm:$0xff] }
 0x3fe   : > { %8267 = vmatpush3.msra.mxu0 %v11730_v5  ;;  %8261 = vmatprep.subr.mxu1 %v11731_v11  ;;  %v8844_v35 = vpop.eup %8843  ;;  %v2351_v28 = vmul.f32 %v8842_v53, %v10210_v16  ;;  %v11754_v5 = vld [vmem:[#allocation26_spill] sm:$0xff]  ;;  %v4491_v53 = vpop.permute.xlu1 %4490 }
 0x3ff   : > { %8268 = vmatprep.subr.mxu0 %v11732_v41  ;;  %8270 = vmatprep.mubr.msk.f32.mxu0 %vm561_vm1, %v2352_v50  ;;  %v8846_v25 = vpop.eup %8845  ;;  %v2356_v0 = vmul.f32 %v8844_v35, %v10162_v51  ;;  %v11739_v51 = vld [vmem:[#allocation58_spill] sm:$0xff]  ;;  %v11755_v50 = vld [vmem:[#allocation80_spill] sm:$0xff]  ;;  %v11758_v35 = vld [vmem:[#allocation91_spill] sm:$0xff] }
 0x400   : > { %8262 = vmatpush3.msra.mxu1 %v11731_v11  ;;  %8269 = vmatpush3.msra.mxu0 %v11732_v41  ;;  %v8848_v55 = vpop.eup %8847  ;;  %v2354_v16 = vmul.f32 %v8846_v25, %v10236_v6  ;;  %v11757_v11 = vld [vmem:[#allocation93_spill] sm:$0xff] }
 0x401   : > { %5827 = vrot.lane.b32.xlu1 %v11733_v24, %s9152_s6  ;;  %8263 = vmatprep.mubr.msk.f32.mxu1 %vm561_vm1, %v2350_v20  ;;  %v8850_v37 = vpop.eup %8849  ;;  %v2355_v29 = vmul.f32 %v8848_v55, %v10218_v30  ;;  %v11741_v30 = vld [vmem:[#allocation60_spill] sm:$0xff]  ;;  %v11756_v20 = vld [vmem:[#allocation78_spill] sm:$0xff] }
 0x402   : > { %8273 = vmatprep.subr.mxu1 %v11734_v58  ;;  %8280 = vmatprep.subr.mxu0 %v11735_v27  ;;  %v8852_v56 = vpop.eup %8851  ;;  %v2357_v6 = vmul.f32 %v8850_v37, %v10149_v19  ;;  %v10554_v25 = vpop.permute.xlu1 %4581 }
 0x403   : > { %8264 = vmatmul.mubr.msk.f32.vlgmr.msra.gmra.mxu1 %vm561_vm1, %v2351_v28  ;;  %8271 = vmatmul.mubr.msk.f32.vlgmr.msra.gmra.mxu0 %vm561_vm1, %v2353_v15  ;;  %v8854_v38 = vpop.eup %8853  ;;  %v2360_v9 = vmul.f32 %v8852_v56, %v10183_v32  ;;  %v4485_v32 = vpop.permute.xlu0 %4484  ;;  %v11760_v28 = vld [vmem:[#allocation86_spill] sm:$0xff] }
 0x404   : > { %8274 = vmatpush3.msra.mxu1 %v11734_v58  ;;  %8281 = vmatpush3.msra.mxu0 %v11735_v27  ;;  %v2361_v19 = vmul.f32 %v8854_v38, %v10170_v14  ;;  %v11748_v14 = vld [vmem:[#allocation21_spill] sm:$0xff] }
 0x405   : > { %8275 = vmatprep.subr.mxu1 %v11736_v23  ;;  %8282 = vmatprep.subr.mxu0 %v11737_v13 }
 0x406   : > { %8284 = vmatprep.mubr.msk.f32.mxu0 %vm561_vm1, %v2356_v0  ;;  %8276 = vmatpush3.msra.mxu1 %v11736_v23 }
 0x407   : > { %8283 = vmatpush3.msra.mxu0 %v11737_v13  ;;  %5825 = vrot.lane.b32.xlu1 %v11738_v45, %s9152_s6  ;;  %v10516_v10 = vpop.permute.xlu0 %4575 }
 0x408   : > { %8277 = vmatprep.mubr.msk.f32.mxu1 %vm561_vm1, %v2354_v16  ;;  %8287 = vmatprep.subr.mxu1 %v11739_v51 }
 0x409   : > { %8294 = vmatprep.subr.mxu0 %v11740_v12  ;;  %8278 = vmatmul.mubr.msk.f32.vlgmr.msra.gmra.mxu1 %vm561_vm1, %v2355_v29 }
 0x40a   : > { %8285 = vmatmul.mubr.msk.f32.vlgmr.msra.gmra.mxu0 %vm561_vm1, %v2357_v6  ;;  %8288 = vmatpush3.msra.mxu1 %v11739_v51  ;;  %v11764_v6 = vld [vmem:[#allocation79_spill] sm:$0xff] }
 0x40b   : > { %8295 = vmatpush3.msra.mxu0 %v11740_v12  ;;  %8289 = vmatprep.subr.mxu1 %v11741_v30  ;;  %v10532_v49 = vpop.permute.xlu0 %4577 }
 0x40c   : > { %8296 = vmatprep.subr.mxu0 %v11742_v39  ;;  %8298 = vmatprep.mubr.msk.f32.mxu0 %vm561_vm1, %v2360_v9  ;;  %v11767_v9 = vld [vmem:[#allocation81_spill] sm:$0xff] }
 0x40d   : > { %8290 = vmatpush3.msra.mxu1 %v11741_v30  ;;  %8297 = vmatpush3.msra.mxu0 %v11742_v39  ;;  %v11768_v30 = vld [vmem:[#allocation87_spill] sm:$0xff]  ;;  %v11769_v39 = vld [vmem:[#allocation76_spill] sm:$0xff] }
 0x40e   : > { %6001 = vrot.lane.b32.xlu1 %v11743_v43, %s9152_s6  ;;  %8301 = vmatprep.subr.mxu1 %v11744_v59 }
 0x40f   : > { %8308 = vmatprep.subr.msk.mxu0 %vm561_vm1, %v11745_v40  ;;  %8299 = vmatmul.mubr.msk.f32.vlgmr.msra.gmra.mxu0 %vm561_vm1, %v2361_v19  ;;  %v4671_v41 = vpop.permute.xlu0 %4670 }
 0x410   : > { %8309 = vmatpush3.xpose.msk.msra.mxu0 %vm561_vm1, %v11745_v40  ;;  %8312 = vmatprep.mubr.msk.f32.mxu0 %vm561_vm1, %v11746_v60  ;;  %v11771_v40 = vld [vmem:[#allocation89_spill] sm:$0xff]  ;;  %v11772_v60 = vld [vmem:[#allocation94_spill] sm:$0xff] }
 0x411   : > { %8310 = vmatprep.subr.msk.mxu0 %vm561_vm1, %v11747_v7 }
 0x412   : > { %5999 = vrot.lane.b32.xlu1 %v11748_v14, %s9152_s6 }
 0x413   : > { %v4667_v24 = vpop.permute.xlu0 %4666 }
 0x414   : > { %8311 = vmatpush3.xpose.msk.msra.mxu0 %vm561_vm1, %v11747_v7  ;;  %v11773_v7 = vld [vmem:[#allocation84_spill] sm:$0xff] }
 0x415   : > { %8322 = vmatprep.subr.msk.mxu0 %vm561_vm1, %v11749_v36 }
 0x416   : > { %6175 = vrot.lane.b32.xlu1 %v11750_v3, %s9152_s6  ;;  %v11774_v3 = vld [vmem:[#allocation88_spill] sm:$0xff] }
 0x417   : > { %8313 = vmatmul.mubr.msk.f32.vlgmr.msra.gmra.mxu0 %vm561_vm1, %v11751_v63 }
 0x418   : > { %8323 = vmatpush3.xpose.msk.msra.mxu0 %vm561_vm1, %v11749_v36  ;;  %8326 = vmatprep.mubr.msk.f32.mxu0 %vm561_vm1, %v11752_v26  ;;  %v11775_v26 = vld [vmem:[#allocation95_spill] sm:$0xff] }
 0x419   : > { %8324 = vmatprep.subr.msk.mxu0 %vm561_vm1, %v11753_v4 }
 0x41a   : > { %6173 = vrot.lane.b32.xlu1 %v11754_v5, %s9152_s6  ;;  %v11776_v5 = vld [vmem:[#allocation90_spill] sm:$0xff] }
 0x41c   : > { %8325 = vmatpush3.xpose.msk.msra.mxu0 %vm561_vm1, %v11753_v4 }
 0x41d   : > { %8336 = vmatprep.subr.msk.mxu0 %vm561_vm1, %v11755_v50 }
 0x41e   : > { %6349 = vrot.lane.b32.xlu1 %v9409_v61, %s9152_s6  ;;  %v11759_v61 = vld [vmem:[#allocation92_spill] sm:$0xff] }
 0x41f   : > { %8327 = vmatmul.mubr.msk.f32.vlgmr.msra.gmra.mxu0 %vm561_vm1, %v11756_v20 }
 0x420   : > { %8337 = vmatpush3.xpose.msk.msra.mxu0 %vm561_vm1, %v11755_v50  ;;  %8340 = vmatprep.mubr.msk.f32.mxu0 %vm561_vm1, %v11757_v11 }
 0x421   : > { %8338 = vmatprep.subr.msk.mxu0 %vm561_vm1, %v11758_v35 }
 0x422   : > { %6347 = vrot.lane.b32.xlu1 %v11689_v48, %s9152_s6  ;;  %v11761_v48 = vld [vmem:[#allocation96_spill] sm:$0xff] }
 0x424   : > { %8339 = vmatpush3.xpose.msk.msra.mxu0 %vm561_vm1, %v11758_v35 }
 0x425   : > { %8350 = vmatprep.subr.msk.mxu0 %vm561_vm1, %v11759_v61 }
 0x426   : > { %6523 = vrot.lane.b32.xlu1 %v11698_v42, %s9152_s6  ;;  %v10571_v42 = vpop.permute.xlu0 %4757 }
 0x427   : > { %8341 = vmatmul.mubr.msk.f32.vlgmr.msra.gmra.mxu0 %vm561_vm1, %v11760_v28 }
 0x428   : > { %8351 = vmatpush3.xpose.msk.msra.mxu0 %vm561_vm1, %v11759_v61  ;;  %8354 = vmatprep.mubr.msk.f32.mxu0 %vm561_vm1, %v10287_v62 }
 0x429   : > { %8352 = vmatprep.subr.msk.mxu0 %vm561_vm1, %v11761_v48 }
 0x42a   : > { %6521 = vrot.lane.b32.xlu1 %v11701_v52, %s9152_s6  ;;  %v2284_v15 = vpop.xlane.xlu1 %2283  ;;  %v10584_v54 = vpop.permute.xlu0 %4759 }
 0x42b   : > { %8857 = vrcp.f32 %v2284_v15 }
 0x42c   : > { %8353 = vmatpush3.xpose.msk.msra.mxu0 %vm561_vm1, %v11761_v48 }
 0x42d   : > { %8364 = vmatprep.subr.msk.mxu0 %vm561_vm1, %v4491_v53 }
 0x42e   : > { %6697 = vrot.lane.b32.xlu1 %v11710_v31, %s9152_s6  ;;  %v2299_v62 = vpop.xlane.xlu1 %2298  ;;  %v4853_v27 = vpop.permute.xlu0 %4852 }
 0x42f   : > { %8355 = vmatmul.mubr.msk.f32.vlgmr.msra.gmra.mxu0 %vm561_vm1, %v10255_v47  ;;  %8859 = vrcp.f32 %v2299_v62  ;;  %v8856_v47 = vpop.eup %8855 }
 0x430   : > { %8365 = vmatpush3.xpose.msk.msra.mxu0 %vm561_vm1, %v4491_v53  ;;  %8368 = vmatprep.mubr.msk.f32.mxu0 %vm561_vm1, %v4485_v32  ;;  %v2359_v16 = vmul.f32 %v8856_v47, %v10226_v34 }
 0x431   : > { %8366 = vmatprep.subr.msk.mxu0 %vm561_vm1, %v10486_v8 }
 0x432   : > { %6695 = vrot.lane.b32.xlu1 %v11712_v57, %s9152_s6  ;;  %v2296_v52 = vpop.xlane.xlu1 %2295  ;;  %v11762_v57 = vld [vmem:[#allocation64_spill] sm:$0xff]  ;;  %v4849_v13 = vpop.permute.xlu0 %4848 }
 0x433   : > { %8861 = vrcp.f32 %v2296_v52 }
 0x434   : > { %8367 = vmatpush3.xpose.msk.msra.mxu0 %vm561_vm1, %v10486_v8  ;;  %v11765_v8 = vld [vmem:[#allocation68_spill] sm:$0xff] }
 0x436   : > { %v10588_v31 = vpop.permute.xlu1 %4579  ;;  %v10611_v51 = vpop.permute.xlu0 %4939 }
 0x438   : > { %v8858_v58 = vpop.eup %8857 }
 0x439   : > { %v2358_v55 = vmul.f32 %v8858_v58, %v10269_v1  ;;  %v11763_v1 = vld [vmem:[#allocation66_spill] sm:$0xff] }
 0x43a   : > { %v4487_v0 = vpop.permute.xlu1 %4486  ;;  %v10625_v38 = vpop.permute.xlu0 %4941 }
 0x43b   : > { %8291 = vmatprep.mubr.msk.f32.mxu1 %vm561_vm1, %v2358_v55  ;;  %8369 = vmatmul.mubr.msk.f32.vlgmr.msra.gmra.mxu0 %vm561_vm1, %v4487_v0 }
 0x43c   : > { %8292 = vmatmul.mubr.msk.f32.vlgmr.msra.gmra.mxu1 %vm561_vm1, %v2359_v16  ;;  %8382 = vmatprep.mubr.msk.f32.mxu0 %vm561_vm1, %v4667_v24  ;;  %v8860_v23 = vpop.eup %8859 }
 0x43d   : > { %8302 = vmatpush3.msra.mxu1 %v11744_v59  ;;  %v2363_v29 = vmul.f32 %v8860_v23, %v10275_v33  ;;  %v11766_v33 = vld [vmem:[#allocation74_spill] sm:$0xff] }
 0x43e   : > { %8303 = vmatprep.subr.mxu1 %v11762_v57  ;;  %v4673_v37 = vpop.permute.xlu1 %4672  ;;  %v5035_v43 = vpop.permute.xlu0 %5034  ;;  %v11770_v59 = vld [vmem:[#allocation82_spill] sm:$0xff] }
 0x43f   : > { %8304 = vmatpush3.msra.mxu1 %v11762_v57  ;;  %8378 = vmatprep.subr.msk.mxu0 %vm561_vm1, %v4673_v37 }
 0x440   : > { %v8862_v34 = vpop.eup %8861  ;;  %8315 = vmatprep.subr.msk.mxu1 %vm561_vm1, %v11763_v1  ;;  %8379 = vmatpush3.xpose.msk.msra.mxu0 %vm561_vm1, %v4673_v37 }
 0x441   : > { %8380 = vmatprep.subr.msk.mxu0 %vm561_vm1, %v4671_v41  ;;  %v2362_v56 = vmul.f32 %v8862_v34, %v10281_v21 }
 0x442   : > { %v10605_v45 = vpop.permute.xlu1 %4763  ;;  %v5031_v36 = vpop.permute.xlu0 %5030 }
 0x443   : > { %8305 = vmatprep.mubr.msk.f32.mxu1 %vm561_vm1, %v2362_v56 }
 0x444   : > { %8306 = vmatmul.mubr.msk.f32.vlgmr.msra.gmra.mxu1 %vm561_vm1, %v2363_v29  ;;  %8381 = vmatpush3.xpose.msk.msra.mxu0 %vm561_vm1, %v4671_v41 }
 0x445   : > { %8316 = vmatpush3.xpose.msk.msra.mxu1 %vm561_vm1, %v11763_v1  ;;  %8319 = vmatprep.mubr.msk.f32.mxu1 %vm561_vm1, %v11764_v6 }
 0x446   : > { %8317 = vmatprep.subr.msk.mxu1 %vm561_vm1, %v11765_v8  ;;  %v10619_v21 = vpop.permute.xlu1 %4761  ;;  %v5122_v4 = vpop.permute.xlu0 %5121 }
 0x449   : > { %8318 = vmatpush3.xpose.msk.msra.mxu1 %vm561_vm1, %v11765_v8 }
 0x44a   : > { %8329 = vmatprep.subr.msk.mxu1 %vm561_vm1, %v11766_v33  ;;  %v4669_v12 = vpop.permute.xlu1 %4668  ;;  %v5567_v53 = vpop.permute.xlu0 %5566 }
 0x44b   : > { %8383 = vmatmul.mubr.msk.f32.vlgmr.msra.gmra.mxu0 %vm561_vm1, %v4669_v12 }
 0x44c   : > { %8320 = vmatmul.mubr.msk.f32.vlgmr.msra.gmra.mxu1 %vm561_vm1, %v11767_v9  ;;  %8396 = vmatprep.mubr.msk.f32.mxu0 %vm561_vm1, %v4849_v13 }
 0x44d   : > { %8330 = vmatpush3.xpose.msk.msra.mxu1 %vm561_vm1, %v11766_v33  ;;  %8333 = vmatprep.mubr.msk.f32.mxu1 %vm561_vm1, %v11768_v30 }
 0x44e   : > { %8331 = vmatprep.subr.msk.mxu1 %vm561_vm1, %v11769_v39  ;;  %v4855_v19 = vpop.permute.xlu1 %4854  ;;  %v5565_v11 = vpop.permute.xlu0 %5564 }
 0x44f   : > { %8392 = vmatprep.subr.msk.mxu0 %vm561_vm1, %v4855_v19 }
 0x450   : > { %8393 = vmatpush3.xpose.msk.msra.mxu0 %vm561_vm1, %v4855_v19 }
 0x451   : > { %8332 = vmatpush3.xpose.msk.msra.mxu1 %vm561_vm1, %v11769_v39  ;;  %8394 = vmatprep.subr.msk.mxu0 %vm561_vm1, %v4853_v27 }
 0x452   : > { %8343 = vmatprep.subr.msk.mxu1 %vm561_vm1, %v11770_v59  ;;  %v4946_v32 = vpop.permute.xlu1 %4945 }
 0x454   : > { %8334 = vmatmul.mubr.msk.f32.vlgmr.msra.gmra.mxu1 %vm561_vm1, %v11771_v40  ;;  %8395 = vmatpush3.xpose.msk.msra.mxu0 %vm561_vm1, %v4853_v27 }
 0x455   : > { %8344 = vmatpush3.xpose.msk.msra.mxu1 %vm561_vm1, %v11770_v59  ;;  %8347 = vmatprep.mubr.msk.f32.mxu1 %vm561_vm1, %v11772_v60 }
 0x456   : > { %8345 = vmatprep.subr.msk.mxu1 %vm561_vm1, %v11773_v7  ;;  %v4944_v14 = vpop.permute.xlu1 %4943 }
 0x459   : > { %8346 = vmatpush3.xpose.msk.msra.mxu1 %vm561_vm1, %v11773_v7 }
 0x45a   : > { %8357 = vmatprep.subr.msk.mxu1 %vm561_vm1, %v11774_v3  ;;  %v4851_v63 = vpop.permute.xlu1 %4850 }
 0x45b   : > { %8397 = vmatmul.mubr.msk.f32.vlgmr.msra.gmra.mxu0 %vm561_vm1, %v4851_v63 }
 0x45c   : > { %8348 = vmatmul.mubr.msk.f32.vlgmr.msra.gmra.mxu1 %vm561_vm1, %v11775_v26  ;;  %8410 = vmatprep.mubr.msk.f32.mxu0 %vm561_vm1, %v5031_v36 }
 0x45d   : > { %8358 = vmatpush3.xpose.msk.msra.mxu1 %vm561_vm1, %v11774_v3  ;;  %8361 = vmatprep.mubr.msk.f32.mxu1 %vm561_vm1, %v10448_v22 }
 0x45e   : > { %8359 = vmatprep.subr.msk.mxu1 %vm561_vm1, %v11776_v5  ;;  %v5037_v50 = vpop.permute.xlu1 %5036 }
 0x45f   : > { %8406 = vmatprep.subr.msk.mxu0 %vm561_vm1, %v5037_v50 }
 0x460   : > { %8407 = vmatpush3.xpose.msk.msra.mxu0 %vm561_vm1, %v5037_v50 }
 0x461   : > { %8360 = vmatpush3.xpose.msk.msra.mxu1 %vm561_vm1, %v11776_v5  ;;  %8408 = vmatprep.subr.msk.mxu0 %vm561_vm1, %v5035_v43 }
 0x462   : > { %8371 = vmatprep.subr.msk.mxu1 %vm561_vm1, %v10554_v25  ;;  %v5128_v20 = vpop.permute.xlu1 %5127 }
 0x464   : > { %8362 = vmatmul.mubr.msk.f32.vlgmr.msra.gmra.mxu1 %vm561_vm1, %v10467_v2  ;;  %8409 = vmatpush3.xpose.msk.msra.mxu0 %vm561_vm1, %v5035_v43 }
 0x465   : > { %8372 = vmatpush3.xpose.msk.msra.mxu1 %vm561_vm1, %v10554_v25  ;;  %8375 = vmatprep.mubr.msk.f32.mxu1 %vm561_vm1, %v10516_v10  ;;  %v10696_v10 = vpop.permute.xlu0 %5740 }
 0x466   : > { %8373 = vmatprep.subr.msk.mxu1 %vm561_vm1, %v10588_v31  ;;  %8420 = vmatprep.subr.mxu0 %v5567_v53  ;;  %v5126_v22 = vpop.permute.xlu1 %5125 }
 0x469   : > { %8374 = vmatpush3.xpose.msk.msra.mxu1 %vm561_vm1, %v10588_v31 }
 0x46a   : > { %8385 = vmatprep.subr.msk.mxu1 %vm561_vm1, %v10605_v45  ;;  %v5033_v2 = vpop.permute.xlu1 %5032 }
 0x46b   : > { %8411 = vmatmul.mubr.msk.f32.vlgmr.msra.gmra.mxu0 %vm561_vm1, %v5033_v2 }
 0x46c   : > { %8376 = vmatmul.mubr.msk.f32.vlgmr.msra.gmra.mxu1 %vm561_vm1, %v10532_v49  ;;  %8421 = vmatpush3.msra.mxu0 %v5567_v53 }
 0x46d   : > { %8386 = vmatpush3.xpose.msk.msra.mxu1 %vm561_vm1, %v10605_v45  ;;  %8389 = vmatprep.mubr.msk.f32.mxu1 %vm561_vm1, %v10571_v42 }
 0x46e   : > { %8422 = vmatprep.subr.mxu0 %v5565_v11  ;;  %8387 = vmatprep.subr.msk.mxu1 %vm561_vm1, %v10619_v21  ;;  %v5124_v49 = vpop.permute.xlu1 %5123 }
 0x46f   : > { %8423 = vmatpush3.msra.mxu0 %v5565_v11 }
 0x470   : > { %8434 = vmatprep.subr.mxu0 %v10696_v10 }
 0x471   : > { %8388 = vmatpush3.xpose.msk.msra.mxu1 %vm561_vm1, %v10619_v21 }
 0x472   : > { %8399 = vmatprep.subr.msk.mxu1 %vm561_vm1, %v4946_v32  ;;  %v5654_v41 = vpop.permute.xlu1 %5653 }
 0x474   : > { %8390 = vmatmul.mubr.msk.f32.vlgmr.msra.gmra.mxu1 %vm561_vm1, %v10584_v54 }
 0x475   : > { %8400 = vmatpush3.xpose.msk.msra.mxu1 %vm561_vm1, %v4946_v32  ;;  %8403 = vmatprep.mubr.msk.f32.mxu1 %vm561_vm1, %v10611_v51 }
 0x476   : > { %8401 = vmatprep.subr.msk.mxu1 %vm561_vm1, %v4944_v14  ;;  %v5652_v35 = vpop.permute.xlu1 %5651 }
 0x479   : > { %8402 = vmatpush3.xpose.msk.msra.mxu1 %vm561_vm1, %v4944_v14 }
 0x47a   : > { %8413 = vmatprep.subr.msk.mxu1 %vm561_vm1, %v5128_v20  ;;  %v10717_v61 = vpop.permute.xlu1 %5827 }
 0x47c   : > { %8404 = vmatmul.mubr.msk.f32.vlgmr.msra.gmra.mxu1 %vm561_vm1, %v10625_v38 }
 0x47d   : > { %8414 = vmatpush3.xpose.msk.msra.mxu1 %vm561_vm1, %v5128_v20  ;;  %8417 = vmatprep.mubr.msk.f32.mxu1 %vm561_vm1, %v5122_v4 }
 0x47e   : > { %8415 = vmatprep.subr.msk.mxu1 %vm561_vm1, %v5126_v22 }
 0x481   : > { %8416 = vmatpush3.xpose.msk.msra.mxu1 %vm561_vm1, %v5126_v22 }
 0x482   : > { %8427 = vmatprep.subr.mxu1 %v5654_v41 }
 0x483   : > { %v10720_v25 = vpop.f32.mrf.mxu0 }
 0x484   : > { %8418 = vmatmul.mubr.msk.f32.vlgmr.msra.gmra.mxu1 %vm561_vm1, %v5124_v49  ;;  %11777 = vst [vmem:[#allocation13_spill] sm:$0xff] %v10720_v25 }
 0x485   : > { %8428 = vmatpush3.msra.mxu1 %v5654_v41  ;;  %v10722_v24 = vpop.f32.mrf.mxu0 }
 0x486   : > { %8429 = vmatprep.subr.mxu1 %v5652_v35  ;;  %11778 = vst [vmem:[#allocation16_spill] sm:$0xff] %v10722_v24 }
 0x487   : > { %8430 = vmatpush3.msra.mxu1 %v5652_v35 }
 0x488   : > { %8441 = vmatprep.subr.mxu1 %v10717_v61 }
 0x48f   : > { %v10754_v37 = vpop.f32.mrf.mxu1 }
 0x490   : > { %11793 = vst [vmem:[#allocation44_spill] sm:$0xff] %v10754_v37 }
 0x491   : > { %v10762_v1 = vpop.f32.mrf.mxu1 }
 0x492   : > { %11794 = vst [vmem:[#allocation45_spill] sm:$0xff] %v10762_v1 }
 0x49b   : > { %v10724_v28 = vpop.f32.mrf.mxu0 }
 0x49c   : > { %11779 = vst [vmem:[#allocation38_spill] sm:$0xff] %v10724_v28 }
 0x49d   : > { %v10726_v48 = vpop.f32.mrf.mxu0 }
 0x49e   : > { %11780 = vst [vmem:[#allocation14_spill] sm:$0xff] %v10726_v48 }
 0x4a7   : > { %v10764_v56 = vpop.f32.mrf.mxu1 }
 0x4a8   : > { %11795 = vst [vmem:[#allocation34_spill] sm:$0xff] %v10764_v56 }
 0x4a9   : > { %v10772_v6 = vpop.f32.mrf.mxu1 }
 0x4aa   : > { %11796 = vst [vmem:[#allocation30_spill] sm:$0xff] %v10772_v6 }
 0x4af   : > { %v10728_v15 = vpop.f32.mrf.mxu0 }
 0x4b0   : > { %11781 = vst [vmem:[#allocation97_spill] sm:$0xff] %v10728_v15 }
 0x4b1   : > { %v10730_v42 = vpop.f32.mrf.mxu0 }
 0x4b2   : > { %11782 = vst [vmem:[#allocation31_spill] sm:$0xff] %v10730_v42 }
 0x4b4   : > { %v10776_v21 = vpop.f32.mrf.mxu1 }
 0x4b5   : > { %11797 = vst [vmem:[#allocation51_spill] sm:$0xff] %v10776_v21 }
 0x4b6   : > { %v10780_v12 = vpop.f32.mrf.mxu1 }
 0x4b7   : > { %11798 = vst [vmem:[#allocation33_spill] sm:$0xff] %v10780_v12 }
 0x4b8   : > { %v10732_v62 = vpop.f32.mrf.mxu0 }
 0x4b9   : > { %11783 = vst [vmem:[#allocation20_spill] sm:$0xff] %v10732_v62 }
 0x4ba   : > { %v10734_v52 = vpop.f32.mrf.mxu0 }
 0x4bb   : > { %11784 = vst [vmem:[#allocation42_spill] sm:$0xff] %v10734_v52 }
 0x4bc   : > { %v10786_v30 = vpop.f32.mrf.mxu1 }
 0x4bd   : > { %v10736_v54 = vpop.f32.mrf.mxu0  ;;  %11799 = vst [vmem:[#allocation27_spill] sm:$0xff] %v10786_v30 }
 0x4be   : > { %11785 = vst [vmem:[#allocation47_spill] sm:$0xff] %v10736_v54  ;;  %v10790_v19 = vpop.f32.mrf.mxu1 }
 0x4bf   : > { %v10738_v31 = vpop.f32.mrf.mxu0  ;;  %11800 = vst [vmem:[#allocation32_spill] sm:$0xff] %v10790_v19 }
 0x4c0   : > { %11786 = vst [vmem:[#allocation28_spill] sm:$0xff] %v10738_v31 }
 0x4c3   : > { %v10740_v47 = vpop.f32.mrf.mxu0  ;;  %v10796_v32 = vpop.f32.mrf.mxu1 }
 0x4c4   : > { %11787 = vst [vmem:[#allocation18_spill] sm:$0xff] %v10740_v47  ;;  %11801 = vst [vmem:[#allocation53_spill] sm:$0xff] %v10796_v32 }
 0x4c5   : > { %v10742_v58 = vpop.f32.mrf.mxu0  ;;  %v10800_v60 = vpop.f32.mrf.mxu1 }
 0x4c6   : > { %11788 = vst [vmem:[#allocation49_spill] sm:$0xff] %v10742_v58  ;;  %11802 = vst [vmem:[#allocation40_spill] sm:$0xff] %v10800_v60 }
 0x4c9   : > { %v10802_v7 = vpop.f32.mrf.mxu1 }
 0x4ca   : > { %v10744_v27 = vpop.f32.mrf.mxu0  ;;  %11803 = vst [vmem:[#allocation98_spill] sm:$0xff] %v10802_v7 }
 0x4cb   : > { %11789 = vst [vmem:[#allocation23_spill] sm:$0xff] %v10744_v27  ;;  %v10804_v14 = vpop.f32.mrf.mxu1 }
 0x4cc   : > { %v10746_v55 = vpop.f32.mrf.mxu0  ;;  %11804 = vst [vmem:[#allocation37_spill] sm:$0xff] %v10804_v14 }
 0x4cd   : > { %11790 = vst [vmem:[#allocation25_spill] sm:$0xff] %v10746_v55 }
 0x4cf   : > { %v10748_v0 = vpop.f32.mrf.mxu0 }
 0x4d0   : > { %11791 = vst [vmem:[#allocation39_spill] sm:$0xff] %v10748_v0 }
 0x4d1   : > { %v10750_v16 = vpop.f32.mrf.mxu0 }
 0x4d2   : > { %11792 = vst [vmem:[#allocation22_spill] sm:$0xff] %v10750_v16 }
 0x4d7   : > { %v10752_v57 = vpop.f32.mrf.mxu0 }
 0x4d8   : > { %v5215_v23 = vsel %vm561_vm1, %v10752_v57, -inf }
 0x4d9   : > { %5216 = vmax.xlane.f32.xlu1 %v5215_v23  ;;  %v10758_v13 = vpop.f32.mrf.mxu0 }
 0x4da   : > { %v5212_v34 = vsel %vm561_vm1, %v10758_v13, -inf }
 0x4db   : > { %5213 = vmax.xlane.f32.xlu0 %v5212_v34 }
 0x4df   : > { %v10766_v45 = vpop.f32.mrf.mxu0 }
 0x4e0   : > { %v5227_v29 = vsel %vm561_vm1, %v10766_v45, -inf }
 0x4e1   : > { %5228 = vmax.xlane.f32.xlu0 %v5227_v29  ;;  %v10770_v51 = vpop.f32.mrf.mxu0 }
 0x4e2   : > { %v5224_v8 = vsel %vm561_vm1, %v10770_v51, -inf }
 0x4e3   : > { %5225 = vmax.xlane.f32.xlu1 %v5224_v8 }
 0x4e7   : > { %v10778_v33 = vpop.f32.mrf.mxu0 }
 0x4e8   : > { %v5239_v38 = vsel %vm561_vm1, %v10778_v33, -inf }
 0x4e9   : > { %5240 = vmax.xlane.f32.xlu0 %v5239_v38  ;;  %v10784_v9 = vpop.f32.mrf.mxu0 }
 0x4ea   : > { %v5236_v39 = vsel %vm561_vm1, %v10784_v9, -inf }
 0x4eb   : > { %5237 = vmax.xlane.f32.xlu1 %v5236_v39 }
 0x4ef   : > { %v10792_v43 = vpop.f32.mrf.mxu0 }
 0x4f0   : > { %v5251_v50 = vsel %vm561_vm1, %v10792_v43, -inf }
 0x4f1   : > { %v10794_v59 = vpop.f32.mrf.mxu0 }
 0x4f2   : > { %v5248_v40 = vsel %vm561_vm1, %v10794_v59, -inf }
 0x4f3   : > { %5249 = vmax.xlane.f32.xlu1 %v5248_v40 }
 0x4fb   : > { %v10822_v53 = vpop.f32.mrf.mxu0 }
 0x4fc   : > { %v10806_v36 = vpop.f32.mrf.mxu1  ;;  %v5263_v8 = vsel %vm561_vm1, %v10822_v53, -inf }
 0x4fd   : > { %11805 = vst [vmem:[#allocation36_spill] sm:$0xff] %v10806_v36  ;;  %v10832_v41 = vpop.f32.mrf.mxu0 }
 0x4fe   : > { %v10808_v3 = vpop.f32.mrf.mxu1  ;;  %v5260_v23 = vsel %vm561_vm1, %v10832_v41, -inf }
 0x4ff   : > { %11806 = vst [vmem:[#allocation55_spill] sm:$0xff] %v10808_v3 }
 0x504   : > { %v10810_v63 = vpop.f32.mrf.mxu1 }
 0x505   : > { %11807 = vst [vmem:[#allocation35_spill] sm:$0xff] %v10810_v63 }
 0x506   : > { %v10812_v26 = vpop.f32.mrf.mxu1 }
 0x507   : > { %11808 = vst [vmem:[#allocation46_spill] sm:$0xff] %v10812_v26 }
 0x50b   : > { %v10838_v34 = vpop.f32.mrf.mxu0 }
 0x50c   : > { %v10814_v4 = vpop.f32.mrf.mxu1 }
 0x50d   : > { %v5221_v5 = vsel %vm561_vm1, %v10814_v4, -inf  ;;  %v10848_v40 = vpop.f32.mrf.mxu0 }
 0x50e   : > { %5222 = vmax.xlane.f32.xlu0 %v5221_v5  ;;  %v10820_v20 = vpop.f32.mrf.mxu1 }
 0x50f   : > { %v5218_v11 = vsel %vm561_vm1, %v10820_v20, -inf }
 0x512   : > { %5252 = vmax.xlane.f32.xlu0 %v5251_v50  ;;  %v10852_v50 = vpop.permute.xlu1 %5825 }
 0x514   : > { %v10824_v22 = vpop.f32.mrf.mxu1 }
 0x515   : > { %v5233_v35 = vsel %vm561_vm1, %v10824_v22, -inf }
 0x516   : > { %5219 = vmax.xlane.f32.xlu0 %v5218_v11  ;;  %v10828_v2 = vpop.f32.mrf.mxu1  ;;  %v10854_v11 = vpop.permute.xlu0 %5738 }
 0x517   : > { %v5230_v49 = vsel %vm561_vm1, %v10828_v2, -inf }
 0x518   : > { %5231 = vmax.xlane.f32.xlu1 %v5230_v49  ;;  %v5272_v49 = vsel %vm561_vm1, %v10848_v40, -inf }
 0x51a   : > { %5234 = vmax.xlane.f32.xlu0 %v5233_v35  ;;  %v10874_v36 = vpop.permute.xlu0 %5914 }
 0x51b   : > { %v10858_v35 = vpop.f32.mrf.mxu0 }
 0x51c   : > { %v10840_v29 = vpop.f32.mrf.mxu1  ;;  %5261 = vmax.xlane.f32.xlu1 %v5260_v23  ;;  %v5287_v0 = vsel %vm561_vm1, %v10858_v35, -inf }
 0x51d   : > { %v5245_v5 = vsel %vm561_vm1, %v10840_v29, -inf  ;;  %v10870_v63 = vpop.f32.mrf.mxu0 }
 0x51e   : > { %v10844_v38 = vpop.f32.mrf.mxu1  ;;  %5264 = vmax.xlane.f32.xlu0 %v5263_v8  ;;  %v5275_v8 = vsel %vm561_vm1, %v10838_v34, -inf }
 0x51f   : > { %v5242_v39 = vsel %vm561_vm1, %v10844_v38, -inf }
 0x520   : > { %5243 = vmax.xlane.f32.xlu1 %v5242_v39 }
 0x522   : > { %5246 = vmax.xlane.f32.xlu0 %v5245_v5  ;;  %v10868_v5 = vpop.permute.xlu1 %6001 }
 0x524   : > { %v10860_v23 = vpop.f32.mrf.mxu1  ;;  %5273 = vmax.xlane.f32.xlu1 %v5272_v49  ;;  %v5284_v49 = vsel %vm561_vm1, %v10870_v63, -inf }
 0x525   : > { %v5257_v3 = vsel %vm561_vm1, %v10860_v23, -inf }
 0x526   : > { %v10864_v39 = vpop.f32.mrf.mxu1  ;;  %5276 = vmax.xlane.f32.xlu0 %v5275_v8  ;;  %v10884_v55 = vpop.permute.xlu1 %5999 }
 0x527   : > { %v5254_v26 = vsel %vm561_vm1, %v10864_v39, -inf  ;;  %11809 = vst [vmem:[#allocation41_spill] sm:$0xff] %v10884_v55 }
 0x528   : > { %5255 = vmax.xlane.f32.xlu1 %v5254_v26 }
 0x52a   : > { %5258 = vmax.xlane.f32.xlu0 %v5257_v3  ;;  %v10890_v3 = vpop.permute.xlu0 %5912  ;;  %v10898_v58 = vpop.permute.xlu1 %6175 }
 0x52b   : > { %v10880_v8 = vpop.f32.mrf.mxu0  ;;  %11810 = vst [vmem:[#allocation57_spill] sm:$0xff] %v10898_v58 }
 0x52c   : > { %v10878_v16 = vpop.f32.mrf.mxu1  ;;  %5285 = vmax.xlane.f32.xlu1 %v5284_v49 }
 0x52d   : > { %v10892_v14 = vpop.f32.mrf.mxu0  ;;  %v5269_v49 = vsel %vm561_vm1, %v10878_v16, -inf }
 0x52e   : > { %v10886_v26 = vpop.f32.mrf.mxu1  ;;  %5288 = vmax.xlane.f32.xlu0 %v5287_v0  ;;  %v5296_v7 = vsel %vm561_vm1, %v10892_v14, -inf  ;;  %v5299_v0 = vsel %vm561_vm1, %v10880_v8, -inf  ;;  %v10904_v60 = vpop.permute.xlu0 %6088 }
 0x52f   : > { %v5266_v27 = vsel %vm561_vm1, %v10886_v26, -inf  ;;  %v10912_v19 = vpop.permute.xlu1 %6173 }
 0x530   : > { %5267 = vmax.xlane.f32.xlu1 %v5266_v27  ;;  %11811 = vst [vmem:[#allocation43_spill] sm:$0xff] %v10912_v19 }
 0x532   : > { %5270 = vmax.xlane.f32.xlu0 %v5269_v49  ;;  %v10914_v30 = vpop.permute.xlu0 %6086 }
 0x534   : > { %v10900_v47 = vpop.f32.mrf.mxu1  ;;  %5297 = vmax.xlane.f32.xlu1 %v5296_v7 }
 0x535   : > { %v5281_v49 = vsel %vm561_vm1, %v10900_v47, -inf }
 0x536   : > { %v10906_v32 = vpop.f32.mrf.mxu1  ;;  %5300 = vmax.xlane.f32.xlu0 %v5299_v0  ;;  %v10926_v12 = vpop.permute.xlu0 %6262 }
 0x537   : > { %v5278_v27 = vsel %vm561_vm1, %v10906_v32, -inf }
 0x538   : > { %5279 = vmax.xlane.f32.xlu1 %v5278_v27  ;;  %v10924_v27 = vpop.permute.xlu1 %6349 }
 0x539   : > { %11812 = vst [vmem:[#allocation59_spill] sm:$0xff] %v10924_v27 }
 0x53a   : > { %5282 = vmax.xlane.f32.xlu0 %v5281_v49  ;;  %v10938_v6 = vpop.permute.xlu0 %6260 }
 0x53c   : > { %v10916_v7 = vpop.f32.mrf.mxu1  ;;  %v10932_v52 = vpop.permute.xlu1 %6347 }
 0x53d   : > { %v5293_v31 = vsel %vm561_vm1, %v10916_v7, -inf  ;;  %11813 = vst [vmem:[#allocation48_spill] sm:$0xff] %v10932_v52 }
 0x53e   : > { %v10920_v54 = vpop.f32.mrf.mxu1  ;;  %5294 = vmax.xlane.f32.xlu0 %v5293_v31 }
 0x53f   : > { %v5290_v0 = vsel %vm561_vm1, %v10920_v54, -inf }
 0x540   : > { %5291 = vmax.xlane.f32.xlu1 %v5290_v0  ;;  %v10940_v56 = vpop.permute.xlu1 %6523  ;;  %v10942_v0 = vpop.permute.xlu0 %6436 }
 0x541   : > { %11814 = vst [vmem:[#allocation15_spill] sm:$0xff] %v10940_v56 }
 0x544   : > { %v10928_v21 = vpop.f32.mrf.mxu1  ;;  %v10944_v42 = vpop.permute.xlu1 %6521 }
 0x545   : > { %v5305_v49 = vsel %vm561_vm1, %v10928_v21, -inf  ;;  %11815 = vst [vmem:[#allocation50_spill] sm:$0xff] %v10944_v42  ;;  %v10946_v15 = vpop.permute.xlu0 %6434 }
 0x546   : > { %5306 = vmax.xlane.f32.xlu0 %v5305_v49  ;;  %v10934_v62 = vpop.f32.mrf.mxu1 }
 0x547   : > { %v5302_v31 = vsel %vm561_vm1, %v10934_v62, -inf }
 0x548   : > { %5303 = vmax.xlane.f32.xlu1 %v5302_v31  ;;  %v10948_v1 = vpop.permute.xlu1 %6697 }
 0x549   : > { %11816 = vst [vmem:[#allocation61_spill] sm:$0xff] %v10948_v1  ;;  %v10950_v37 = vpop.permute.xlu0 %6610 }
 0x54c   : > { %v10952_v49 = vpop.permute.xlu1 %6695 }
 0x54d   : > { %11817 = vst [vmem:[#allocation12_spill] sm:$0xff] %v10952_v49  ;;  %v10954_v48 = vpop.permute.xlu0 %6608 }
 0x54e   : > { %11818 = vst [vmem:[#allocation63_spill] sm:$0xff] %v10954_v48 }
 0x562   : > { %v5217_v28 = vpop.xlane.xlu1 %5216 }
 0x563   : > { %v5309_v24 = vsub.f32 %v10752_v57, %v5217_v28 }
 0x564   : > { %v5214_v31 = vpop.xlane.xlu0 %5213 }
 0x565   : > { %v5342_v25 = vmul.f32 1.442695, %v5309_v24  ;;  %v5308_v56 = vsub.f32 %v10758_v13, %v5214_v31 }
 0x567   : > { %8863 = vpow2.f32 %v5342_v25  ;;  %v5340_v52 = vmul.f32 1.442695, %v5308_v56 }
 0x569   : > { %8865 = vpow2.f32 %v5340_v52 }
 0x56a   : > { %v5229_v42 = vpop.xlane.xlu0 %5228 }
 0x56b   : > { %v5313_v27 = vsub.f32 %v10766_v45, %v5229_v42 }
 0x56c   : > { %v5226_v1 = vpop.xlane.xlu1 %5225 }
 0x56d   : > { %v5350_v19 = vmul.f32 1.442695, %v5313_v27  ;;  %v5312_v58 = vsub.f32 %v10770_v51, %v5226_v1 }
 0x56f   : > { %8867 = vpow2.f32 %v5350_v19  ;;  %v5348_v49 = vmul.f32 1.442695, %v5312_v58 }
 0x571   : > { %8869 = vpow2.f32 %v5348_v49 }
 0x572   : > { %v5241_v48 = vpop.xlane.xlu0 %5240 }
 0x573   : > { %v5317_v28 = vsub.f32 %v10778_v33, %v5241_v48 }
 0x574   : > { %v10961_v57 = vpop.eup %8863  ;;  %v5238_v24 = vpop.xlane.xlu1 %5237 }
 0x575   : > { %v5358_v13 = vmul.f32 1.442695, %v5317_v28  ;;  %v5316_v25 = vsub.f32 %v10784_v9, %v5238_v24  ;;  %v5407_v52 = vsel %vm561_vm1, %v10961_v57, 0.0 }
 0x576   : > { %v10966_v42 = vpop.eup %8865  ;;  %5408 = vadd.xlane.f32.xlu0 %v5407_v52 }
 0x577   : > { %8871 = vpow2.f32 %v5358_v13  ;;  %v5356_v1 = vmul.f32 1.442695, %v5316_v25  ;;  %v5404_v58 = vsel %vm561_vm1, %v10966_v42, 0.0 }
 0x578   : > { %5405 = vadd.xlane.f32.xlu1 %v5404_v58 }
 0x579   : > { %8873 = vpow2.f32 %v5356_v1 }
 0x57c   : > { %v10970_v48 = vpop.eup %8867  ;;  %v5250_v28 = vpop.xlane.xlu1 %5249 }
 0x57d   : > { %v5419_v56 = vsel %vm561_vm1, %v10970_v48, 0.0  ;;  %v5320_v52 = vsub.f32 %v10794_v59, %v5250_v28 }
 0x57e   : > { %v10974_v45 = vpop.eup %8869  ;;  %5420 = vadd.xlane.f32.xlu0 %v5419_v56 }
 0x57f   : > { %v5416_v51 = vsel %vm561_vm1, %v10974_v45, 0.0 }
 0x580   : > { %5417 = vadd.xlane.f32.xlu1 %v5416_v51  ;;  %v5364_v51 = vmul.f32 1.442695, %v5320_v52 }
 0x584   : > { %v10978_v33 = vpop.eup %8871 }
 0x585   : > { %v5431_v9 = vsel %vm561_vm1, %v10978_v33, 0.0 }
 0x586   : > { %v10982_v19 = vpop.eup %8873  ;;  %5432 = vadd.xlane.f32.xlu0 %v5431_v9 }
 0x587   : > { %v5428_v27 = vsel %vm561_vm1, %v10982_v19, 0.0 }
 0x588   : > { %5429 = vadd.xlane.f32.xlu1 %v5428_v27 }
 0x597   : > { %v5223_v49 = vpop.xlane.xlu0 %5222 }
 0x598   : > { %v5311_v31 = vsub.f32 %v10814_v4, %v5223_v49 }
 0x59a   : > { %v5346_v24 = vmul.f32 1.442695, %v5311_v31 }
 0x59b   : > { %v5253_v13 = vpop.xlane.xlu0 %5252 }
 0x59c   : > { %8875 = vpow2.f32 %v5346_v24  ;;  %v5321_v25 = vsub.f32 %v10792_v43, %v5253_v13 }
 0x59e   : > { %v5366_v1 = vmul.f32 1.442695, %v5321_v25 }
 0x59f   : > { %v5220_v58 = vpop.xlane.xlu0 %5219 }
 0x5a0   : > { %8877 = vpow2.f32 %v5366_v1  ;;  %v5310_v56 = vsub.f32 %v10820_v20, %v5220_v58 }
 0x5a1   : > { %v5232_v9 = vpop.xlane.xlu1 %5231 }
 0x5a2   : > { %v5344_v55 = vmul.f32 1.442695, %v5310_v56  ;;  %v5314_v49 = vsub.f32 %v10828_v2, %v5232_v9 }
 0x5a3   : > { %v5235_v27 = vpop.xlane.xlu0 %5234 }
 0x5a4   : > { %8879 = vpow2.f32 %v5344_v55  ;;  %v5315_v4 = vsub.f32 %v10824_v22, %v5235_v27  ;;  %v5352_v25 = vmul.f32 1.442695, %v5314_v49 }
 0x5a5   : > { %8881 = vpow2.f32 %v5364_v51  ;;  %v5262_v31 = vpop.xlane.xlu1 %5261 }
 0x5a6   : > { %v5354_v24 = vmul.f32 1.442695, %v5315_v4  ;;  %v5324_v43 = vsub.f32 %v10832_v41, %v5262_v31 }
 0x5a7   : > { %v5265_v59 = vpop.xlane.xlu0 %5264 }
 0x5a8   : > { %8883 = vpow2.f32 %v5354_v24  ;;  %v5372_v28 = vmul.f32 1.442695, %v5324_v43  ;;  %v5325_v13 = vsub.f32 %v10822_v53, %v5265_v59 }
 0x5a9   : > { %v10994_v20 = vpop.eup %8875  ;;  %v5244_v52 = vpop.xlane.xlu1 %5243 }
 0x5aa   : > { %8885 = vpow2.f32 %v5372_v28  ;;  %v5374_v55 = vmul.f32 1.442695, %v5325_v13  ;;  %v5413_v22 = vsel %vm561_vm1, %v10994_v20, 0.0  ;;  %v5318_v53 = vsub.f32 %v10844_v38, %v5244_v52 }
 0x5ab   : > { %v5247_v1 = vpop.xlane.xlu0 %5246  ;;  %5414 = vadd.xlane.f32.xlu0 %v5413_v22 }
 0x5ac   : > { %8887 = vpow2.f32 %v5374_v55  ;;  %v5319_v2 = vsub.f32 %v10840_v29, %v5247_v1  ;;  %v5360_v43 = vmul.f32 1.442695, %v5318_v53 }
 0x5ad   : > { %v10999_v41 = vpop.eup %8877  ;;  %8889 = vpow2.f32 %v5352_v25  ;;  %v5274_v58 = vpop.xlane.xlu1 %5273 }
 0x5ae   : > { %v5362_v56 = vmul.f32 1.442695, %v5319_v2  ;;  %v5328_v51 = vsub.f32 %v10848_v40, %v5274_v58  ;;  %v5443_v9 = vsel %vm561_vm1, %v10999_v41, 0.0 }
 0x5af   : > { %v5277_v27 = vpop.xlane.xlu0 %5276  ;;  %5444 = vadd.xlane.f32.xlu0 %v5443_v9 }
 0x5b0   : > { %8891 = vpow2.f32 %v5362_v56  ;;  %v5380_v4 = vmul.f32 1.442695, %v5328_v51  ;;  %v5329_v49 = vsub.f32 %v10838_v34, %v5277_v27 }
 0x5b1   : > { %v11006_v31 = vpop.eup %8879  ;;  %v5256_v29 = vpop.xlane.xlu1 %5255 }
 0x5b2   : > { %v11008_v24 = vpop.eup %8881  ;;  %8893 = vpow2.f32 %v5380_v4  ;;  %v5382_v38 = vmul.f32 1.442695, %v5329_v49  ;;  %v5410_v40 = vsel %vm561_vm1, %v11006_v31, 0.0  ;;  %v5322_v56 = vsub.f32 %v10864_v39, %v5256_v29 }
 0x5b3   : > { %v5259_v59 = vpop.xlane.xlu0 %5258  ;;  %5411 = vadd.xlane.f32.xlu1 %v5410_v40  ;;  %v5440_v34 = vsel %vm561_vm1, %v11008_v24, 0.0 }
 0x5b4   : > { %8895 = vpow2.f32 %v5382_v38  ;;  %v5323_v28 = vsub.f32 %v10860_v23, %v5259_v59  ;;  %v5368_v39 = vmul.f32 1.442695, %v5322_v56 }
 0x5b5   : > { %v11013_v13 = vpop.eup %8883  ;;  %v5286_v25 = vpop.xlane.xlu1 %5285  ;;  %8897 = vpow2.f32 %v5360_v43 }
 0x5b6   : > { %v5370_v52 = vmul.f32 1.442695, %v5323_v28  ;;  %v5332_v55 = vsub.f32 %v10870_v63, %v5286_v25  ;;  %v5425_v22 = vsel %vm561_vm1, %v11013_v13, 0.0 }
 0x5b7   : > { %v11020_v1 = vpop.eup %8885  ;;  %v5289_v2 = vpop.xlane.xlu0 %5288  ;;  %5426 = vadd.xlane.f32.xlu0 %v5425_v22  ;;  %5441 = vadd.xlane.f32.xlu1 %v5440_v34 }
 0x5b8   : > { %v5388_v58 = vmul.f32 1.442695, %v5332_v55  ;;  %v5333_v23 = vsub.f32 %v10858_v35, %v5289_v2  ;;  %8899 = vpow2.f32 %v5370_v52  ;;  %v5452_v63 = vsel %vm561_vm1, %v11020_v1, 0.0 }
 0x5b9   : > { %v11023_v53 = vpop.eup %8887  ;;  %v5268_v51 = vpop.xlane.xlu1 %5267 }
 0x5ba   : > { %v11028_v9 = vpop.eup %8889  ;;  %8901 = vpow2.f32 %v5388_v58  ;;  %v5390_v27 = vmul.f32 1.442695, %v5333_v23  ;;  %v5326_v4 = vsub.f32 %v10886_v26, %v5268_v51  ;;  %v5455_v49 = vsel %vm561_vm1, %v11023_v53, 0.0 }
 0x5bb   : > { %v5271_v43 = vpop.xlane.xlu0 %5270  ;;  %5456 = vadd.xlane.f32.xlu1 %v5455_v49  ;;  %5453 = vadd.xlane.f32.xlu0 %v5452_v63  ;;  %v5422_v26 = vsel %vm561_vm1, %v11028_v9, 0.0 }
 0x5bc   : > { %v5376_v35 = vmul.f32 1.442695, %v5326_v4  ;;  %8903 = vpow2.f32 %v5390_v27  ;;  %v5327_v29 = vsub.f32 %v10878_v16, %v5271_v43 }
 0x5bd   : > { %v11033_v38 = vpop.eup %8891  ;;  %v5298_v40 = vpop.xlane.xlu1 %5297 }
 0x5be   : > { %8905 = vpow2.f32 %v5376_v35  ;;  %v5336_v59 = vsub.f32 %v10892_v14, %v5298_v40  ;;  %v5437_v28 = vsel %vm561_vm1, %v11033_v38, 0.0  ;;  %v5378_v16 = vmul.f32 1.442695, %v5327_v29 }
 0x5bf   : > { %v11041_v25 = vpop.eup %8893  ;;  %v5301_v34 = vpop.xlane.xlu0 %5300  ;;  %5423 = vadd.xlane.f32.xlu1 %v5422_v26  ;;  %5438 = vadd.xlane.f32.xlu0 %v5437_v28  ;;  %8907 = vpow2.f32 %v5368_v39 }
 0x5c0   : > { %v5396_v52 = vmul.f32 1.442695, %v5336_v59  ;;  %v5337_v22 = vsub.f32 %v10880_v8, %v5301_v34  ;;  %v5464_v23 = vsel %vm561_vm1, %v11041_v25, 0.0 }
 0x5c1   : > { %v11043_v55 = vpop.eup %8895  ;;  %v5280_v2 = vpop.xlane.xlu1 %5279 }
 0x5c2   : > { %8909 = vpow2.f32 %v5396_v52  ;;  %v5330_v14 = vsub.f32 %v10906_v32, %v5280_v2  ;;  %v5467_v58 = vsel %vm561_vm1, %v11043_v55, 0.0  ;;  %v11051_v56 = vpop.eup %8897  ;;  %v5398_v8 = vmul.f32 1.442695, %v5337_v22 }
 0x5c3   : > { %v5283_v51 = vpop.xlane.xlu0 %5282  ;;  %5468 = vadd.xlane.f32.xlu1 %v5467_v58  ;;  %5465 = vadd.xlane.f32.xlu0 %v5464_v23  ;;  %8911 = vpow2.f32 %v5378_v16  ;;  %v5434_v32 = vsel %vm561_vm1, %v11051_v56, 0.0 }
 0x5c4   : > { %v5384_v63 = vmul.f32 1.442695, %v5330_v14  ;;  %v5331_v4 = vsub.f32 %v10900_v47, %v5283_v51 }
 0x5c5   : > { %v11053_v27 = vpop.eup %8899 }
 0x5c6   : > { %8913 = vpow2.f32 %v5384_v63  ;;  %v5386_v39 = vmul.f32 1.442695, %v5331_v4  ;;  %v5449_v29 = vsel %vm561_vm1, %v11053_v27, 0.0 }
 0x5c7   : > { %v11058_v49 = vpop.eup %8901  ;;  %5435 = vadd.xlane.f32.xlu1 %v5434_v32  ;;  %8915 = vpow2.f32 %v5398_v8 }
 0x5c8   : > { %v5476_v43 = vsel %vm561_vm1, %v11058_v49, 0.0  ;;  %8917 = vpow2.f32 %v5386_v39 }
 0x5c9   : > { %5477 = vadd.xlane.f32.xlu0 %v5476_v43  ;;  %v11062_v35 = vpop.eup %8903  ;;  %v5292_v8 = vpop.xlane.xlu1 %5291 }
 0x5ca   : > { %v5479_v26 = vsel %vm561_vm1, %v11062_v35, 0.0  ;;  %v5334_v4 = vsub.f32 %v10920_v54, %v5292_v8 }
 0x5cb   : > { %v11066_v40 = vpop.eup %8905  ;;  %5450 = vadd.xlane.f32.xlu1 %v5449_v29  ;;  %v5295_v29 = vpop.xlane.xlu0 %5294 }
 0x5cc   : > { %v5458_v47 = vsel %vm561_vm1, %v11066_v40, 0.0  ;;  %v11070_v59 = vpop.eup %8907  ;;  %v5392_v43 = vmul.f32 1.442695, %v5334_v4 }
 0x5cd   : > { %5459 = vadd.xlane.f32.xlu0 %v5458_v47  ;;  %v5446_v16 = vsel %vm561_vm1, %v11070_v59, 0.0 }
 0x5ce   : > { %8919 = vpow2.f32 %v5392_v43 }
 0x5cf   : > { %v11074_v28 = vpop.eup %8909  ;;  %5480 = vadd.xlane.f32.xlu1 %v5479_v26  ;;  %v5335_v26 = vsub.f32 %v10916_v7, %v5295_v29 }
 0x5d0   : > { %v5488_v34 = vsel %vm561_vm1, %v11074_v28, 0.0  ;;  %v11078_v52 = vpop.eup %8911 }
 0x5d1   : > { %5489 = vadd.xlane.f32.xlu0 %v5488_v34  ;;  %v5461_v14 = vsel %vm561_vm1, %v11078_v52, 0.0  ;;  %v5304_v32 = vpop.xlane.xlu1 %5303  ;;  %v5307_v34 = vpop.xlane.xlu0 %5306 }
 0x5d2   : > { %v5338_v39 = vsub.f32 %v10934_v62, %v5304_v32 }
 0x5d3   : > { %v11082_v22 = vpop.eup %8913  ;;  %5447 = vadd.xlane.f32.xlu1 %v5446_v16  ;;  %v5394_v16 = vmul.f32 1.442695, %v5335_v26 }
 0x5d4   : > { %v5470_v2 = vsel %vm561_vm1, %v11082_v22, 0.0  ;;  %v11088_v58 = vpop.eup %8915  ;;  %v5400_v47 = vmul.f32 1.442695, %v5338_v39 }
 0x5d5   : > { %5471 = vadd.xlane.f32.xlu0 %v5470_v2  ;;  %v5491_v23 = vsel %vm561_vm1, %v11088_v58, 0.0  ;;  %v11092_v51 = vpop.eup %8917 }
 0x5d6   : > { %v5473_v63 = vsel %vm561_vm1, %v11092_v51, 0.0  ;;  %8921 = vpow2.f32 %v5400_v47 }
 0x5d7   : > { %5462 = vadd.xlane.f32.xlu1 %v5461_v14 }
 0x5db   : > { %5492 = vadd.xlane.f32.xlu1 %v5491_v23  ;;  %v11104_v54 = vpop.eup %8919 }
 0x5dc   : > { %v5482_v7 = vsel %vm561_vm1, %v11104_v54, 0.0 }
 0x5df   : > { %5474 = vadd.xlane.f32.xlu1 %v5473_v63 }
 0x5e3   : > { %v11108_v63 = vpop.eup %8921 }
 0x5eb   : > { %6784 = vrot.lane.b32.xlu0 %v11716_v46, %s9152_s6  ;;  %v5339_v46 = vsub.f32 %v10928_v21, %v5307_v34  ;;  %v5494_v21 = vsel %vm561_vm1, %v11108_v63, 0.0 }
 0x5f0   : > { %6871 = vrot.lane.b32.xlu1 %v11717_v18, %s9152_s6  ;;  %v5402_v18 = vmul.f32 1.442695, %v5339_v46 }
 0x5ff   : > { %v5409_v2 = vpop.xlane.xlu0 %5408 }
 0x600   : > { %8923 = vrcp.f32 %v5409_v2 }
 0x601   : > { %v5406_v14 = vpop.xlane.xlu1 %5405 }
 0x602   : > { %8925 = vrcp.f32 %v5406_v14 }
 0x603   : > { %8927 = vpow2.f32 %v5394_v16 }
 0x604   : > { %8929 = vpow2.f32 %v5402_v18 }
 0x607   : > { %v5421_v62 = vpop.xlane.xlu0 %5420 }
 0x608   : > { %8931 = vrcp.f32 %v5421_v62 }
 0x609   : > { %v5418_v23 = vpop.xlane.xlu1 %5417 }
 0x60a   : > { %8933 = vrcp.f32 %v5418_v23  ;;  %5483 = vadd.xlane.f32.xlu0 %v5482_v7 }
 0x60d   : > { %v8924_v8 = vpop.eup %8923 }
 0x60e   : > { %5495 = vadd.xlane.f32.xlu0 %v5494_v21  ;;  %v5533_v47 = vmul.f32 %v8924_v8, %v10961_v57 }
 0x60f   : > { %v8926_v4 = vpop.eup %8925  ;;  %v5433_v32 = vpop.xlane.xlu0 %5432 }
 0x610   : > { %v11112_v43 = vpop.eup %8927  ;;  %v5532_v39 = vmul.f32 %v8926_v4, %v10966_v42  ;;  %8935 = vrcp.f32 %v5433_v32 }
 0x611   : > { %v5430_v29 = vpop.xlane.xlu1 %5429  ;;  %v5485_v26 = vsel %vm561_vm1, %v11112_v43, 0.0  ;;  %v11120_v34 = vpop.eup %8929 }
 0x612   : > { %8937 = vrcp.f32 %v5430_v29  ;;  %8424 = vmatprep.mubr.msk.f32.mxu0 %vm561_vm1, %v5532_v39  ;;  %v5497_v57 = vsel %vm561_vm1, %v11120_v34, 0.0 }
 0x613   : > { %8425 = vmatmul.mubr.msk.f32.vlgmr.msra.gmra.mxu0 %vm561_vm1, %v5533_v47 }
 0x614   : > { %8435 = vmatpush3.msra.mxu0 %v10696_v10  ;;  %5486 = vadd.xlane.f32.xlu1 %v5485_v26 }
 0x615   : > { %8436 = vmatprep.subr.mxu0 %v10854_v11  ;;  %v8932_v42 = vpop.eup %8931 }
 0x616   : > { %8437 = vmatpush3.msra.mxu0 %v10854_v11  ;;  %v5537_v2 = vmul.f32 %v8932_v42, %v10970_v48 }
 0x617   : > { %v8934_v16 = vpop.eup %8933  ;;  %8448 = vmatprep.subr.mxu0 %v10874_v36 }
 0x618   : > { %v5536_v46 = vmul.f32 %v8934_v16, %v10974_v45  ;;  %5498 = vadd.xlane.f32.xlu1 %v5497_v57 }
 0x61a   : > { %8438 = vmatprep.mubr.msk.f32.mxu0 %vm561_vm1, %v5536_v46 }
 0x61b   : > { %8439 = vmatmul.mubr.msk.f32.vlgmr.msra.gmra.mxu0 %vm561_vm1, %v5537_v2 }
 0x61c   : > { %8449 = vmatpush3.msra.mxu0 %v10874_v36 }
 0x61d   : > { %8450 = vmatprep.subr.mxu0 %v10890_v3  ;;  %v8936_v10 = vpop.eup %8935 }
 0x61e   : > { %8451 = vmatpush3.msra.mxu0 %v10890_v3  ;;  %v5541_v45 = vmul.f32 %v8936_v10, %v10978_v33  ;;  %v11819_v10 = vld [vmem:[#allocation41_spill] sm:$0xff] }
 0x61f   : > { %v8938_v11 = vpop.eup %8937  ;;  %8462 = vmatprep.subr.mxu0 %v10904_v60 }
 0x620   : > { %v5540_v14 = vmul.f32 %v8938_v11, %v10982_v19 }
 0x622   : > { %8452 = vmatprep.mubr.msk.f32.mxu0 %vm561_vm1, %v5540_v14  ;;  %v11820_v14 = vld [vmem:[#allocation57_spill] sm:$0xff] }
 0x623   : > { %8453 = vmatmul.mubr.msk.f32.vlgmr.msra.gmra.mxu0 %vm561_vm1, %v5541_v45 }
 0x624   : > { %8463 = vmatpush3.msra.mxu0 %v10904_v60  ;;  %6782 = vrot.lane.b32.xlu0 %v9489_v17, %s9152_s6 }
 0x625   : > { %8464 = vmatprep.subr.mxu0 %v10914_v30 }
 0x626   : > { %8465 = vmatpush3.msra.mxu0 %v10914_v30 }
 0x627   : > { %8476 = vmatprep.subr.mxu0 %v10926_v12 }
 0x629   : > { %6869 = vrot.lane.b32.xlu1 %v11719_v44, %s9152_s6 }
 0x634   : > { %v5415_v36 = vpop.xlane.xlu0 %5414 }
 0x635   : > { %8939 = vrcp.f32 %v5415_v36 }
 0x638   : > { %v5445_v3 = vpop.xlane.xlu0 %5444 }
 0x63c   : > { %v5412_v48 = vpop.xlane.xlu1 %5411 }
 0x63d   : > { %8941 = vrcp.f32 %v5412_v48 }
 0x63e   : > { %8943 = vrcp.f32 %v5445_v3 }
 0x640   : > { %v5427_v33 = vpop.xlane.xlu0 %5426  ;;  %v5442_v19 = vpop.xlane.xlu1 %5441 }
 0x641   : > { %8945 = vrcp.f32 %v5442_v19 }
 0x642   : > { %v8940_v62 = vpop.eup %8939 }
 0x643   : > { %v5535_v8 = vmul.f32 %v8940_v62, %v10994_v20 }
 0x644   : > { %v5454_v60 = vpop.xlane.xlu0 %5453  ;;  %v5457_v17 = vpop.xlane.xlu1 %5456 }
 0x645   : > { %8947 = vrcp.f32 %v5454_v60 }
 0x646   : > { %8949 = vrcp.f32 %v5457_v17 }
 0x647   : > { %8951 = vrcp.f32 %v5427_v33  ;;  %v11823_v33 = vld [vmem:[#allocation59_spill] sm:$0xff] }
 0x648   : > { %v5439_v18 = vpop.xlane.xlu0 %5438  ;;  %v5424_v30 = vpop.xlane.xlu1 %5423 }
 0x649   : > { %8953 = vrcp.f32 %v5424_v30 }
 0x64a   : > { %v8942_v23 = vpop.eup %8941 }
 0x64b   : > { %v5534_v44 = vmul.f32 %v8942_v23, %v11006_v31  ;;  %v8944_v4 = vpop.eup %8943 }
 0x64c   : > { %v5466_v7 = vpop.xlane.xlu0 %5465  ;;  %v5469_v21 = vpop.xlane.xlu1 %5468  ;;  %v5545_v20 = vmul.f32 %v8944_v4, %v10999_v41 }
 0x64d   : > { %8955 = vrcp.f32 %v5466_v7  ;;  %8431 = vmatprep.mubr.msk.f32.mxu1 %vm561_vm1, %v5534_v44 }
 0x64e   : > { %8957 = vrcp.f32 %v5469_v21  ;;  %8432 = vmatmul.mubr.msk.f32.vlgmr.msra.gmra.mxu1 %vm561_vm1, %v5535_v8  ;;  %v8946_v32 = vpop.eup %8945  ;;  %v11824_v8 = vld [vmem:[#allocation48_spill] sm:$0xff] }
 0x64f   : > { %8442 = vmatpush3.msra.mxu1 %v10717_v61  ;;  %8959 = vrcp.f32 %v5439_v18  ;;  %v5544_v31 = vmul.f32 %v8946_v32, %v11008_v24 }
 0x650   : > { %8443 = vmatprep.subr.mxu1 %v10852_v50  ;;  %v5436_v39 = vpop.xlane.xlu1 %5435 }
 0x651   : > { %8444 = vmatpush3.msra.mxu1 %v10852_v50  ;;  %8961 = vrcp.f32 %v5436_v39  ;;  %8466 = vmatprep.mubr.msk.f32.mxu0 %vm561_vm1, %v5544_v31 }
 0x652   : > { %v8948_v29 = vpop.eup %8947  ;;  %8455 = vmatprep.subr.mxu1 %v10868_v5  ;;  %v5478_v47 = vpop.xlane.xlu0 %5477  ;;  %8467 = vmatmul.mubr.msk.f32.vlgmr.msra.gmra.mxu0 %vm561_vm1, %v5545_v20 }
 0x653   : > { %v8950_v26 = vpop.eup %8949  ;;  %8963 = vrcp.f32 %v5478_v47  ;;  %v5548_v61 = vmul.f32 %v8948_v29, %v11020_v1  ;;  %8477 = vmatpush3.msra.mxu0 %v10926_v12 }
 0x654   : > { %v5451_v24 = vpop.xlane.xlu1 %5450  ;;  %v5549_v50 = vmul.f32 %v8950_v26, %v11023_v53  ;;  %8478 = vmatprep.subr.mxu0 %v10938_v6  ;;  %v8952_v41 = vpop.eup %8951 }
 0x655   : > { %8480 = vmatprep.mubr.msk.f32.mxu0 %vm561_vm1, %v5548_v61  ;;  %8479 = vmatpush3.msra.mxu0 %v10938_v6  ;;  %v5539_v53 = vmul.f32 %v8952_v41, %v11013_v13 }
 0x656   : > { %v5460_v42 = vpop.xlane.xlu0 %5459  ;;  %v8954_v16 = vpop.eup %8953  ;;  %8490 = vmatprep.subr.mxu0 %v10942_v0  ;;  %8481 = vmatmul.mubr.msk.f32.vlgmr.msra.gmra.mxu0 %vm561_vm1, %v5549_v50 }
 0x657   : > { %8491 = vmatpush3.msra.mxu0 %v10942_v0  ;;  %v5538_v12 = vmul.f32 %v8954_v16, %v11028_v9 }
 0x658   : > { %v5481_v1 = vpop.xlane.xlu1 %5480  ;;  %8492 = vmatprep.subr.mxu0 %v10946_v15 }
 0x659   : > { %8965 = vrcp.f32 %v5481_v1  ;;  %8493 = vmatpush3.msra.mxu0 %v10946_v15  ;;  %8445 = vmatprep.mubr.msk.f32.mxu1 %vm561_vm1, %v5538_v12 }
 0x65a   : > { %v8956_v57 = vpop.eup %8955  ;;  %8967 = vrcp.f32 %v5451_v24  ;;  %v5490_v6 = vpop.xlane.xlu0 %5489  ;;  %8504 = vmatprep.subr.mxu0 %v10950_v37  ;;  %8446 = vmatmul.mubr.msk.f32.vlgmr.msra.gmra.mxu1 %vm561_vm1, %v5539_v53 }
 0x65b   : > { %v8958_v46 = vpop.eup %8957  ;;  %8969 = vrcp.f32 %v5490_v6  ;;  %v5552_v0 = vmul.f32 %v8956_v57, %v11041_v25  ;;  %8456 = vmatpush3.msra.mxu1 %v10868_v5 }
 0x65c   : > { %8971 = vrcp.f32 %v5460_v42  ;;  %v5448_v9 = vpop.xlane.xlu1 %5447  ;;  %v5553_v13 = vmul.f32 %v8958_v46, %v11043_v55  ;;  %v8960_v2 = vpop.eup %8959  ;;  %8457 = vmatprep.subr.mxu1 %v11819_v10  ;;  %v11821_v55 = vld [vmem:[#allocation63_spill] sm:$0xff] }
 0x65d   : > { %8973 = vrcp.f32 %v5448_v9  ;;  %8494 = vmatprep.mubr.msk.f32.mxu0 %vm561_vm1, %v5552_v0  ;;  %8458 = vmatpush3.msra.mxu1 %v11819_v10  ;;  %v5543_v36 = vmul.f32 %v8960_v2, %v11033_v38  ;;  %v8734_v2 = vld [vmem:[#allocation7] sm:$0xff]  }
 0x65e   : > { %v8962_v15 = vpop.eup %8961  ;;  %v5472_v11 = vpop.xlane.xlu0 %5471  ;;  %8495 = vmatmul.mubr.msk.f32.vlgmr.msra.gmra.mxu0 %vm561_vm1, %v5553_v13  ;;  %8469 = vmatprep.subr.mxu1 %v11820_v14 }
 0x65f   : > { %8505 = vmatpush3.msra.mxu0 %v10950_v37  ;;  %v5542_v5 = vmul.f32 %v8962_v15, %v11051_v56  ;;  %8975 = vrcp.f32 %v5472_v11  ;;  %v11822_v37 = vld [vmem:[#allocation43_spill] sm:$0xff] }
 0x660   : > { %v8964_v25 = vpop.eup %8963  ;;  %8506 = vmatprep.subr.mxu0 %v11821_v55  ;;  %v5463_v45 = vpop.xlane.xlu1 %5462 }
 0x661   : > { %8507 = vmatpush3.msra.mxu0 %v11821_v55  ;;  %8977 = vrcp.f32 %v5463_v45  ;;  %8459 = vmatprep.mubr.msk.f32.mxu1 %vm561_vm1, %v5542_v5  ;;  %v5556_v3 = vmul.f32 %v8964_v25, %v11058_v49 }
 0x662   : > { %v6785_v48 = vpop.permute.xlu0 %6784  ;;  %8460 = vmatmul.mubr.msk.f32.vlgmr.msra.gmra.mxu1 %vm561_vm1, %v5543_v36 }
 0x663   : > { %8470 = vmatpush3.msra.mxu1 %v11820_v14  ;;  %8508 = vmatprep.mubr.msk.f32.mxu0 %vm561_vm1, %v5556_v3 }
 0x664   : > { %8471 = vmatprep.subr.mxu1 %v11822_v37  ;;  %8518 = vmatprep.subr.mxu0 %v6785_v48  ;;  %v5493_v56 = vpop.xlane.xlu1 %5492 }
 0x665   : > { %8472 = vmatpush3.msra.mxu1 %v11822_v37 }
 0x666   : > { %v8966_v38 = vpop.eup %8965  ;;  %8483 = vmatprep.subr.mxu1 %v11823_v33 }
 0x667   : > { %v8968_v19 = vpop.eup %8967  ;;  %v5557_v60 = vmul.f32 %v8966_v38, %v11062_v35 }
 0x668   : > { %v8970_v49 = vpop.eup %8969  ;;  %v5475_v17 = vpop.xlane.xlu1 %5474  ;;  %v5547_v44 = vmul.f32 %v8968_v19, %v11053_v27 }
 0x669   : > { %v8972_v18 = vpop.eup %8971  ;;  %8979 = vrcp.f32 %v5475_v17  ;;  %8509 = vmatmul.mubr.msk.f32.vlgmr.msra.gmra.mxu0 %vm561_vm1, %v5557_v60  ;;  %v5560_v30 = vmul.f32 %v8970_v49, %v11074_v28 }
 0x66a   : > { %v8974_v62 = vpop.eup %8973  ;;  %8519 = vmatpush3.msra.mxu0 %v6785_v48  ;;  %v5550_v35 = vmul.f32 %v8972_v18, %v11066_v40  ;;  %v11826_v40 = vld [vmem:[#allocation50_spill] sm:$0xff]  ;;  %8981 = vrcp.f32 %v5493_v56 }
 0x66b   : > { %8522 = vmatprep.mubr.msk.f32.mxu0 %vm561_vm1, %v5560_v30  ;;  %v5546_v23 = vmul.f32 %v8974_v62, %v11070_v59  ;;  %v11825_v59 = vld [vmem:[#allocation15_spill] sm:$0xff] }
 0x66c   : > { %v8976_v7 = vpop.eup %8975  ;;  %v6872_v39 = vpop.permute.xlu1 %6871 }
 0x66d   : > { %8473 = vmatprep.mubr.msk.f32.mxu1 %vm561_vm1, %v5546_v23  ;;  %v5554_v27 = vmul.f32 %v8976_v7, %v11082_v22  ;;  %v11828_v22 = vld [vmem:[#allocation12_spill] sm:$0xff] }
 0x66e   : > { %v8978_v21 = vpop.eup %8977  ;;  %8474 = vmatmul.mubr.msk.f32.vlgmr.msra.gmra.mxu1 %vm561_vm1, %v5547_v44 }
 0x66f   : > { %8484 = vmatpush3.msra.mxu1 %v11823_v33  ;;  %8487 = vmatprep.mubr.msk.f32.mxu1 %vm561_vm1, %v5550_v35  ;;  %v5551_v28 = vmul.f32 %v8978_v21, %v11078_v52  ;;  %v11827_v52 = vld [vmem:[#allocation61_spill] sm:$0xff] }
 0x670   : > { %8485 = vmatprep.subr.mxu1 %v11824_v8 }
 0x671   : > { %8486 = vmatpush3.msra.mxu1 %v11824_v8 }
 0x672   : > { %8497 = vmatprep.subr.mxu1 %v11825_v59  ;;  %8488 = vmatmul.mubr.msk.f32.vlgmr.msra.gmra.mxu1 %vm561_vm1, %v5551_v28 }
 0x673   : > { %8498 = vmatpush3.msra.mxu1 %v11825_v59  ;;  %8501 = vmatprep.mubr.msk.f32.mxu1 %vm561_vm1, %v5554_v27 }
 0x674   : > { %8499 = vmatprep.subr.mxu1 %v11826_v40 }
 0x675   : > { %8500 = vmatpush3.msra.mxu1 %v11826_v40 }
 0x676   : > { %v8980_v4 = vpop.eup %8979  ;;  %8511 = vmatprep.subr.mxu1 %v11827_v52 }
 0x677   : > { %v5555_v32 = vmul.f32 %v8980_v4, %v11092_v51  ;;  %v8982_v29 = vpop.eup %8981 }
 0x678   : > { %v5561_v26 = vmul.f32 %v8982_v29, %v11088_v58 }
 0x679   : > { %8502 = vmatmul.mubr.msk.f32.vlgmr.msra.gmra.mxu1 %vm561_vm1, %v5555_v32 }
 0x67a   : > { %8512 = vmatpush3.msra.mxu1 %v11827_v52  ;;  %v11829_v52 = vld [vmem:[#allocation13_spill] sm:$0xff] }
 0x67b   : > { %8513 = vmatprep.subr.mxu1 %v11828_v22 }
 0x67c   : > { %8514 = vmatpush3.msra.mxu1 %v11828_v22  ;;  %v11830_v22 = vld [vmem:[#allocation16_spill] sm:$0xff] }
 0x67d   : > { %8525 = vmatprep.subr.mxu1 %v6872_v39 }
 0x693   : > { %v5484_v31 = vpop.xlane.xlu0 %5483 }
 0x694   : > { %8983 = vrcp.f32 %v5484_v31 }
 0x697   : > { %v5496_v20 = vpop.xlane.xlu0 %5495 }
 0x698   : > { %8985 = vrcp.f32 %v5496_v20 }
 0x69b   : > { %v6783_v47 = vpop.permute.xlu0 %6782 }
 0x69c   : > { %8520 = vmatprep.subr.mxu0 %v6783_v47 }
 0x69d   : > { %8521 = vmatpush3.msra.mxu0 %v6783_v47  ;;  %v5487_v51 = vpop.xlane.xlu1 %5486 }
 0x69e   : > { %8987 = vrcp.f32 %v5487_v51  ;;  %8523 = vmatmul.mubr.msk.f32.vlgmr.msra.gmra.mxu0 %vm561_vm1, %v5561_v26 }
 0x6a1   : > { %v8984_v61 = vpop.eup %8983  ;;  %v5499_v24 = vpop.xlane.xlu1 %5498 }
 0x6a2   : > { %8989 = vrcp.f32 %v5499_v24  ;;  %v5558_v50 = vmul.f32 %v8984_v61, %v11104_v54 }
 0x6a4   : > { %8515 = vmatprep.mubr.msk.f32.mxu1 %vm561_vm1, %v5558_v50 }
 0x6a5   : > { %v8986_v41 = vpop.eup %8985  ;;  %v6870_v12 = vpop.permute.xlu1 %6869 }
 0x6a6   : > { %v5562_v1 = vmul.f32 %v8986_v41, %v11108_v63 }
 0x6ab   : > { %v8988_v42 = vpop.eup %8987 }
 0x6ac   : > { %v5559_v16 = vmul.f32 %v8988_v42, %v11112_v43 }
 0x6ae   : > { %8516 = vmatmul.mubr.msk.f32.vlgmr.msra.gmra.mxu1 %vm561_vm1, %v5559_v16 }
 0x6af   : > { %v8990_v58 = vpop.eup %8989  ;;  %8526 = vmatpush3.msra.mxu1 %v6872_v39  ;;  %8529 = vmatprep.mubr.msk.f32.mxu1 %vm561_vm1, %v5562_v1 }
 0x6b0   : > { %8527 = vmatprep.subr.mxu1 %v6870_v12  ;;  %v5563_v53 = vmul.f32 %v8990_v58, %v11120_v34  ;;  %v8733_v34 = vld [vmem:[#allocation7 + $0x8] sm:$0xff]  }
 0x6b1   : > { %8528 = vmatpush3.msra.mxu1 %v6870_v12  ;;  %8532 = vmatprep.subr.bf16.mxu0 %v8733_v34 }
 0x6b2   : > { %8530 = vmatmul.mubr.msk.f32.vlgmr.msra.gmra.mxu1 %vm561_vm1, %v5563_v53  ;;  %8533 = vmatpush3.bf16.msra.mxu0 %v8733_v34 }
 0x6b3   : > { %8534 = vmatprep.subr.bf16.mxu0 %v8734_v2 }
 0x6b6   : > { %8535 = vmatpush3.bf16.msra.mxu0 %v8734_v2 }
 0x6d3   : > { %v8426_v54 = vpop.f32.mrf.mxu0 }
 0x6d5   : > { %v5642_v57 = vpop.f32.mrf.mxu0 }
 0x6d6   : > { %v8651_v6 = vpack.i.bf16 %v8426_v54, %v5642_v57  ;;  %v11831_v54 = vld [vmem:[#allocation38_spill] sm:$0xff] }
 0x6d8   : > { %8652 = vrot.lane.b32.xlu0 %v8651_v6, %s9153_s7  ;;  %v11832_v6 = vld [vmem:[#allocation14_spill] sm:$0xff] }
 0x6db   : > { %v8440_v63 = vpop.f32.mrf.mxu0 }
 0x6dd   : > { %v5816_v43 = vpop.f32.mrf.mxu0 }
 0x6de   : > { %v8661_v46 = vpack.i.bf16 %v8440_v63, %v5816_v43  ;;  %v11833_v43 = vld [vmem:[#allocation44_spill] sm:$0xff] }
 0x6e0   : > { %8662 = vrot.lane.b32.xlu0 %v8661_v46, %s9153_s7 }
 0x6e3   : > { %v8454_v0 = vpop.f32.mrf.mxu0 }
 0x6e5   : > { %v5990_v9 = vpop.f32.mrf.mxu0 }
 0x6e6   : > { %v8671_v13 = vpack.i.bf16 %v8454_v0, %v5990_v9  ;;  %v11834_v0 = vld [vmem:[#allocation45_spill] sm:$0xff] }
 0x6e8   : > { %8672 = vrot.lane.b32.xlu0 %v8671_v13, %s9153_s7 }
 0x70e   : > { %v8433_v10 = vpop.f32.mrf.mxu1 }
 0x710   : > { %v5729_v15 = vpop.f32.mrf.mxu1 }
 0x711   : > { %v8656_v11 = vpack.i.bf16 %v8433_v10, %v5729_v15 }
 0x712   : > { %v8468_v14 = vpop.f32.mrf.mxu0 }
 0x713   : > { %8657 = vrot.lane.b32.xlu1 %v8656_v11, %s9153_s7 }
 0x714   : > { %v6164_v5 = vpop.f32.mrf.mxu0 }
 0x715   : > { %v8681_v25 = vpack.i.bf16 %v8468_v14, %v6164_v5 }
 0x716   : > { %v8482_v55 = vpop.f32.mrf.mxu0 }
 0x717   : > { %8682 = vrot.lane.b32.xlu0 %v8681_v25, %s9153_s7  ;;  %v11835_v25 = vld [vmem:[#allocation97_spill] sm:$0xff] }
 0x718   : > { %v6338_v45 = vpop.f32.mrf.mxu0 }
 0x719   : > { %v8691_v36 = vpack.i.bf16 %v8482_v55, %v6338_v45  ;;  %v11836_v45 = vld [vmem:[#allocation31_spill] sm:$0xff] }
 0x71a   : > { %v8447_v3 = vpop.f32.mrf.mxu1 }
 0x71b   : > { %8692 = vrot.lane.b32.xlu0 %v8691_v36, %s9153_s7 }
 0x71c   : > { %v5903_v48 = vpop.f32.mrf.mxu1 }
 0x71d   : > { %v8666_v37 = vpack.i.bf16 %v8447_v3, %v5903_v48  ;;  %v11837_v48 = vld [vmem:[#allocation34_spill] sm:$0xff] }
 0x71e   : > { %v8496_v56 = vpop.f32.mrf.mxu0 }
 0x71f   : > { %8667 = vrot.lane.b32.xlu1 %v8666_v37, %s9153_s7 }
 0x720   : > { %v6512_v38 = vpop.f32.mrf.mxu0 }
 0x721   : > { %v8701_v33 = vpack.i.bf16 %v8496_v56, %v6512_v38  ;;  %v11838_v56 = vld [vmem:[#allocation30_spill] sm:$0xff] }
 0x722   : > { %v8461_v19 = vpop.f32.mrf.mxu1 }
 0x723   : > { %8702 = vrot.lane.b32.xlu0 %v8701_v33, %s9153_s7 }
 0x724   : > { %v6077_v60 = vpop.f32.mrf.mxu1 }
 0x725   : > { %v8676_v49 = vpack.i.bf16 %v8461_v19, %v6077_v60 }
 0x727   : > { %8677 = vrot.lane.b32.xlu1 %v8676_v49, %s9153_s7 }
 0x729   : > { %v8510_v17 = vpop.f32.mrf.mxu0 }
 0x72b   : > { %v6686_v18 = vpop.f32.mrf.mxu0 }
 0x72c   : > { %v8711_v30 = vpack.i.bf16 %v8510_v17, %v6686_v18 }
 0x72e   : > { %8712 = vrot.lane.b32.xlu0 %v8711_v30, %s9153_s7  ;;  %v8475_v62 = vpop.f32.mrf.mxu1 }
 0x730   : > { %v6251_v23 = vpop.f32.mrf.mxu1 }
 0x731   : > { %v8686_v44 = vpack.i.bf16 %v8475_v62, %v6251_v23  ;;  %v11839_v62 = vld [vmem:[#allocation20_spill] sm:$0xff] }
 0x732   : > { %v8489_v7 = vpop.f32.mrf.mxu1 }
 0x733   : > { %8687 = vrot.lane.b32.xlu1 %v8686_v44, %s9153_s7  ;;  %v11840_v44 = vld [vmem:[#allocation42_spill] sm:$0xff] }
 0x734   : > { %v6425_v35 = vpop.f32.mrf.mxu1 }
 0x735   : > { %v8696_v21 = vpack.i.bf16 %v8489_v7, %v6425_v35  ;;  %v11841_v35 = vld [vmem:[#allocation51_spill] sm:$0xff] }
 0x737   : > { %8697 = vrot.lane.b32.xlu1 %v8696_v21, %s9153_s7 }
 0x739   : > { %v8503_v28 = vpop.f32.mrf.mxu1 }
 0x73b   : > { %v6599_v8 = vpop.f32.mrf.mxu1 }
 0x73c   : > { %v8706_v27 = vpack.i.bf16 %v8503_v28, %v6599_v8  ;;  %v11842_v28 = vld [vmem:[#allocation33_spill] sm:$0xff] }
 0x73e   : > { %8707 = vrot.lane.b32.xlu1 %v8706_v27, %s9153_s7 }
 0x74a   : > { %v8653_v59 = vpop.permute.xlu0 %8652 }
 0x74b   : > { %v8655_v40 = vunpack.i.h.bf16 %v8653_v59  ;;  %v8654_v4 = vunpack.i.l.bf16 %v8653_v59 }
 0x74d   : > { %v7085_v32 = vsel %vm561_vm1, %v11829_v52, %v8655_v40  ;;  %v7084_v39 = vsel %vm561_vm1, %v11830_v22, %v8654_v4 }
 0x74e   : > { %v7116_v31 = vpack.c.bf16 %v7085_v32, %v7084_v39 }
 0x750   : > { %8536 = vmatprep.mubr.msk.bf16.mxu0 %vm313_vm0, %v7116_v31  ;;  %v11843_v31 = vld [vmem:[#allocation47_spill] sm:$0xff] }
 0x752   : > { %v8663_v42 = vpop.permute.xlu0 %8662 }
 0x753   : > { %v8665_v16 = vunpack.i.h.bf16 %v8663_v42  ;;  %v8664_v1 = vunpack.i.l.bf16 %v8663_v42 }
 0x755   : > { %v7089_v57 = vsel %vm561_vm1, %v11831_v54, %v8665_v16  ;;  %v7088_v63 = vsel %vm561_vm1, %v11832_v6, %v8664_v1  ;;  %v11847_v54 = vld [vmem:[#allocation53_spill] sm:$0xff]  ;;  %v11848_v6 = vld [vmem:[#allocation40_spill] sm:$0xff] }
 0x756   : > { %v7118_v34 = vpack.c.bf16 %v7089_v57, %v7088_v63 }
 0x75a   : > { %v8673_v2 = vpop.permute.xlu0 %8672 }
 0x75b   : > { %v8675_v10 = vunpack.i.h.bf16 %v8673_v2  ;;  %v8674_v15 = vunpack.i.l.bf16 %v8673_v2 }
 0x75d   : > { %v7093_v55 = vsel %vm561_vm1, %v11835_v25, %v8675_v10  ;;  %v7092_v36 = vsel %vm561_vm1, %v11836_v45, %v8674_v15  ;;  %v11851_v25 = vld [vmem:[#allocation98_spill] sm:$0xff]  ;;  %v11852_v45 = vld [vmem:[#allocation37_spill] sm:$0xff] }
 0x75e   : > { %v8524_v20 = vpop.f32.mrf.mxu0  ;;  %v7120_v19 = vpack.c.bf16 %v7093_v55, %v7092_v36 }
 0x760   : > { %v6860_v29 = vpop.f32.mrf.mxu0 }
 0x761   : > { %v8721_v47 = vpack.i.bf16 %v8524_v20, %v6860_v29  ;;  %v11844_v29 = vld [vmem:[#allocation28_spill] sm:$0xff] }
 0x763   : > { %8722 = vrot.lane.b32.xlu0 %v8721_v47, %s9153_s7 }
 0x76e   : > { %v8517_v26 = vpop.f32.mrf.mxu1 }
 0x770   : > { %v6773_v51 = vpop.f32.mrf.mxu1 }
 0x771   : > { %v8716_v61 = vpack.i.bf16 %v8517_v26, %v6773_v51  ;;  %v11845_v51 = vld [vmem:[#allocation27_spill] sm:$0xff] }
 0x772   : > { %v8531_v24 = vpop.f32.mrf.mxu1 }
 0x773   : > { %8717 = vrot.lane.b32.xlu1 %v8716_v61, %s9153_s7 }
 0x774   : > { %v6947_v50 = vpop.f32.mrf.mxu1 }
 0x775   : > { %v8726_v41 = vpack.i.bf16 %v8531_v24, %v6947_v50  ;;  %v11846_v24 = vld [vmem:[#allocation32_spill] sm:$0xff] }
 0x777   : > { %8727 = vrot.lane.b32.xlu1 %v8726_v41, %s9153_s7 }
 0x785   : > { %v8658_v58 = vpop.permute.xlu1 %8657 }
 0x786   : > { %v8660_v12 = vunpack.i.h.bf16 %v8658_v58  ;;  %v8659_v53 = vunpack.i.l.bf16 %v8658_v58 }
 0x788   : > { %v7087_v46 = vsel %vm561_vm1, %v11833_v43, %v8660_v12  ;;  %v7086_v9 = vsel %vm561_vm1, %v11834_v0, %v8659_v53  ;;  %v11849_v43 = vld [vmem:[#allocation18_spill] sm:$0xff]  ;;  %v11850_v0 = vld [vmem:[#allocation49_spill] sm:$0xff] }
 0x789   : > { %v7117_v13 = vpack.c.bf16 %v7087_v46, %v7086_v9  ;;  %v8683_v3 = vpop.permute.xlu0 %8682 }
 0x78a   : > { %v8685_v60 = vunpack.i.h.bf16 %v8683_v3  ;;  %v8684_v49 = vunpack.i.l.bf16 %v8683_v3  ;;  %v11853_v3 = vld [vmem:[#allocation23_spill] sm:$0xff] }
 0x78b   : > { %8537 = vmatmul.mubr.msk.bf16.vlgmr.msra.gmra.mxu0 %vm313_vm0, %v7117_v13 }
 0x78c   : > { %8540 = vmatprep.mubr.msk.bf16.mxu0 %vm313_vm0, %v7118_v34  ;;  %v7097_v23 = vsel %vm561_vm1, %v11839_v62, %v8685_v60  ;;  %v7096_v7 = vsel %vm561_vm1, %v11840_v44, %v8684_v49  ;;  %v11855_v62 = vld [vmem:[#allocation39_spill] sm:$0xff]  ;;  %v11856_v44 = vld [vmem:[#allocation22_spill] sm:$0xff] }
 0x78d   : > { %v7122_v59 = vpack.c.bf16 %v7097_v23, %v7096_v7  ;;  %v8693_v40 = vpop.permute.xlu0 %8692 }
 0x78e   : > { %v8695_v4 = vunpack.i.h.bf16 %v8693_v40  ;;  %v8694_v52 = vunpack.i.l.bf16 %v8693_v40 }
 0x790   : > { %v7101_v20 = vsel %vm561_vm1, %v11843_v31, %v8695_v4  ;;  %v7100_v47 = vsel %vm561_vm1, %v11844_v29, %v8694_v52  ;;  %v11333_v29 = vld [vmem:[%s11488_s3] ss:$0 sm:$0xff] }
 0x791   : > { %v8668_v11 = vpop.permute.xlu1 %8667  ;;  %v7124_v16 = vpack.c.bf16 %v7101_v20, %v7100_v47 }
 0x792   : > { %v8670_v14 = vunpack.i.h.bf16 %v8668_v11  ;;  %v8669_v5 = vunpack.i.l.bf16 %v8668_v11 }
 0x794   : > { %v7091_v37 = vsel %vm561_vm1, %v11837_v48, %v8670_v14  ;;  %v7090_v38 = vsel %vm561_vm1, %v11838_v56, %v8669_v5 }
 0x795   : > { %v7119_v33 = vpack.c.bf16 %v7091_v37, %v7090_v38  ;;  %v8703_v26 = vpop.permute.xlu0 %8702  ;;  %v11854_v37 = vld [vmem:[#allocation25_spill] sm:$0xff] }
 0x796   : > { %v8705_v12 = vunpack.i.h.bf16 %v8703_v26  ;;  %v8704_v53 = vunpack.i.l.bf16 %v8703_v26 }
 0x797   : > { %8541 = vmatmul.mubr.msk.bf16.gmra.mxu0 %vm313_vm0, %v7119_v33 }
 0x798   : > { %8544 = vmatprep.mubr.msk.bf16.mxu0 %vm313_vm0, %v7120_v19  ;;  %v7105_v46 = vsel %vm561_vm1, %v11849_v43, %v8705_v12  ;;  %v7104_v9 = vsel %vm561_vm1, %v11850_v0, %v8704_v53 }
 0x799   : > { %v8678_v17 = vpop.permute.xlu1 %8677  ;;  %v7126_v10 = vpack.c.bf16 %v7105_v46, %v7104_v9 }
 0x79a   : > { %v8680_v18 = vunpack.i.h.bf16 %v8678_v17  ;;  %v8679_v30 = vunpack.i.l.bf16 %v8678_v17 }
 0x79c   : > { %v7095_v21 = vsel %vm561_vm1, %v11841_v35, %v8680_v18  ;;  %v7094_v8 = vsel %vm561_vm1, %v11842_v28, %v8679_v30  ;;  %v11857_v35 = vld [vmem:[#allocation36_spill] sm:$0xff]  ;;  %v11858_v28 = vld [vmem:[#allocation55_spill] sm:$0xff] }
 0x79d   : > { %v7121_v27 = vpack.c.bf16 %v7095_v21, %v7094_v8 }
 0x79f   : > { %8545 = vmatmul.mubr.msk.bf16.gmra.mxu0 %vm313_vm0, %v7121_v27 }
 0x7a0   : > { %8548 = vmatprep.mubr.msk.bf16.mxu0 %vm313_vm0, %v7122_v59  ;;  %v8713_v13 = vpop.permute.xlu0 %8712 }
 0x7a1   : > { %v8715_v14 = vunpack.i.h.bf16 %v8713_v13  ;;  %v8714_v5 = vunpack.i.l.bf16 %v8713_v13 }
 0x7a3   : > { %v7109_v48 = vsel %vm561_vm1, %v11853_v3, %v8715_v14  ;;  %v7108_v56 = vsel %vm561_vm1, %v11854_v37, %v8714_v5 }
 0x7a4   : > { %v7128_v33 = vpack.c.bf16 %v7109_v48, %v7108_v56 }
 0x7a5   : > { %v8688_v32 = vpop.permute.xlu1 %8687 }
 0x7a6   : > { %v8690_v22 = vunpack.i.h.bf16 %v8688_v32  ;;  %v8689_v39 = vunpack.i.l.bf16 %v8688_v32  ;;  %v11859_v32 = vld [vmem:[#allocation35_spill] sm:$0xff] }
 0x7a8   : > { %v7099_v61 = vsel %vm561_vm1, %v11845_v51, %v8690_v22  ;;  %v7098_v50 = vsel %vm561_vm1, %v11846_v24, %v8689_v39  ;;  %v11860_v39 = vld [vmem:[#allocation46_spill] sm:$0xff] }
 0x7a9   : > { %v7123_v41 = vpack.c.bf16 %v7099_v61, %v7098_v50  ;;  %v8698_v42 = vpop.permute.xlu1 %8697 }
 0x7aa   : > { %v8700_v1 = vunpack.i.h.bf16 %v8698_v42  ;;  %v8699_v58 = vunpack.i.l.bf16 %v8698_v42 }
 0x7ab   : > { %8549 = vmatmul.mubr.msk.bf16.gmra.mxu0 %vm313_vm0, %v7123_v41 }
 0x7ac   : > { %8552 = vmatprep.mubr.msk.bf16.mxu0 %vm313_vm0, %v7124_v16  ;;  %v7103_v57 = vsel %vm561_vm1, %v11847_v54, %v8700_v1  ;;  %v7102_v63 = vsel %vm561_vm1, %v11848_v6, %v8699_v58 }
 0x7ad   : > { %v7125_v2 = vpack.c.bf16 %v7103_v57, %v7102_v63 }
 0x7b0   : > { %v8708_v34 = vpop.permute.xlu1 %8707 }
 0x7b1   : > { %v8710_v15 = vunpack.i.h.bf16 %v8708_v34  ;;  %v8709_v11 = vunpack.i.l.bf16 %v8708_v34 }
 0x7b3   : > { %8553 = vmatmul.mubr.msk.bf16.gmra.mxu0 %vm313_vm0, %v7125_v2  ;;  %v7107_v55 = vsel %vm561_vm1, %v11851_v25, %v8710_v15  ;;  %v7106_v36 = vsel %vm561_vm1, %v11852_v45, %v8709_v11 }
 0x7b4   : > { %8556 = vmatprep.mubr.msk.bf16.mxu0 %vm313_vm0, %v7126_v10  ;;  %v7127_v38 = vpack.c.bf16 %v7107_v55, %v7106_v36 }
 0x7bb   : > { %8557 = vmatmul.mubr.msk.bf16.gmra.mxu0 %vm313_vm0, %v7127_v38 }
 0x7bc   : > { %8560 = vmatprep.mubr.msk.bf16.mxu0 %vm313_vm0, %v7128_v33 }
 0x7d5   : > { %v8723_v19 = vpop.permute.xlu0 %8722 }
 0x7d6   : > { %v8725_v60 = vunpack.i.h.bf16 %v8723_v19  ;;  %v8724_v49 = vunpack.i.l.bf16 %v8723_v19 }
 0x7d8   : > { %v7113_v23 = vsel %vm561_vm1, %v11855_v62, %v8725_v60  ;;  %v7112_v7 = vsel %vm561_vm1, %v11856_v44, %v8724_v49 }
 0x7d9   : > { %v7130_v40 = vpack.c.bf16 %v7113_v23, %v7112_v7 }
 0x7e5   : > { %v8718_v17 = vpop.permute.xlu1 %8717 }
 0x7e6   : > { %v8720_v18 = vunpack.i.h.bf16 %v8718_v17  ;;  %v8719_v30 = vunpack.i.l.bf16 %v8718_v17 }
 0x7e8   : > { %v7111_v21 = vsel %vm561_vm1, %v11857_v35, %v8720_v18  ;;  %v7110_v8 = vsel %vm561_vm1, %v11858_v28, %v8719_v30 }
 0x7e9   : > { %v7129_v27 = vpack.c.bf16 %v7111_v21, %v7110_v8  ;;  %v8728_v59 = vpop.permute.xlu1 %8727 }
 0x7ea   : > { %v8730_v4 = vunpack.i.h.bf16 %v8728_v59  ;;  %v8729_v52 = vunpack.i.l.bf16 %v8728_v59 }
 0x7eb   : > { %8561 = vmatmul.mubr.msk.bf16.gmra.mxu0 %vm313_vm0, %v7129_v27 }
 0x7ec   : > { %8564 = vmatprep.mubr.msk.bf16.mxu0 %vm313_vm0, %v7130_v40  ;;  %v7115_v22 = vsel %vm561_vm1, %v11859_v32, %v8730_v4  ;;  %v7114_v31 = vsel %vm561_vm1, %v11860_v39, %v8729_v52 }
 0x7ed   : > { %v7131_v20 = vpack.c.bf16 %v7115_v22, %v7114_v31 }
 0x7f3   : > { %8565 = vmatmul.mubr.msk.bf16.gmra.mxu0 %vm313_vm0, %v7131_v20 }
 0x84b   : > { %v8538_v47 = vpop.f32.mrf.mxu0 }
 0x84c   : > { %v7246_v26 = vadd.f32 %v8538_v47, %v11333_v29 }
 0x84d   : > { %v7237_v51 = vpop.f32.mrf.mxu0 }
 0x84e   : > { %7366 = vst.msk [vmem:[%s11338_s26 + $0x10] sm:$0xff] %vm313_vm0, %v7246_v26  ;;  %v7238_v61 = vadd.f32 %v11333_v29, %v7237_v51 }
 0x84f   : > { %v8539_v24 = vpop.f32.mrf.mxu0 }
 0x850   : > { %7364 = vst.msk [vmem:[%s11338_s26] sm:$0xff] %vm313_vm0, %v7238_v61  ;;  %v7249_v50 = vadd.f32 %v8539_v24, %v11333_v29 }
 0x851   : > { %v7240_v41 = vpop.f32.mrf.mxu0 }
 0x852   : > { %7367 = vst.msk [vmem:[%s11338_s26 + $0x18] sm:$0xff] %vm313_vm0, %v7249_v50  ;;  %v7241_v42 = vadd.f32 %v11333_v29, %v7240_v41 }
 0x854   : > { %7365 = vst.msk [vmem:[%s11338_s26 + $0x8] sm:$0xff] %vm313_vm0, %v7241_v42 }
 0x857   : > { %v8542_v16 = vpop.f32.mrf.mxu0 }
 0x858   : > { %v7262_v1 = vadd.f32 %v8542_v16, %v11333_v29 }
 0x859   : > { %v7253_v58 = vpop.f32.mrf.mxu0 }
 0x85a   : > { %7370 = vst.msk [vmem:[%s11338_s26 + $0x30] sm:$0xff] %vm313_vm0, %v7262_v1  ;;  %v7254_v12 = vadd.f32 %v11333_v29, %v7253_v58 }
 0x85b   : > { %v8543_v53 = vpop.f32.mrf.mxu0 }
 0x85c   : > { %7368 = vst.msk [vmem:[%s11338_s26 + $0x20] sm:$0xff] %vm313_vm0, %v7254_v12  ;;  %v7265_v54 = vadd.f32 %v8543_v53, %v11333_v29 }
 0x85d   : > { %v7256_v57 = vpop.f32.mrf.mxu0 }
 0x85e   : > { %7371 = vst.msk [vmem:[%s11338_s26 + $0x38] sm:$0xff] %vm313_vm0, %v7265_v54  ;;  %v7257_v6 = vadd.f32 %v11333_v29, %v7256_v57 }
 0x85f   : > { %v8546_v63 = vpop.f32.mrf.mxu0 }
 0x860   : > { %7369 = vst.msk [vmem:[%s11338_s26 + $0x28] sm:$0xff] %vm313_vm0, %v7257_v6  ;;  %v7278_v43 = vadd.f32 %v8546_v63, %v11333_v29 }
 0x861   : > { %v7269_v46 = vpop.f32.mrf.mxu0 }
 0x862   : > { %7374 = vst.msk [vmem:[%s11338_s26 + $0x50] sm:$0xff] %vm313_vm0, %v7278_v43  ;;  %v7270_v0 = vadd.f32 %v11333_v29, %v7269_v46 }
 0x863   : > { %v8547_v9 = vpop.f32.mrf.mxu0 }
 0x864   : > { %7372 = vst.msk [vmem:[%s11338_s26 + $0x40] sm:$0xff] %vm313_vm0, %v7270_v0  ;;  %v7281_v13 = vadd.f32 %v8547_v9, %v11333_v29 }
 0x865   : > { %v7272_v34 = vpop.f32.mrf.mxu0 }
 0x866   : > { %7375 = vst.msk [vmem:[%s11338_s26 + $0x58] sm:$0xff] %vm313_vm0, %v7281_v13  ;;  %v7273_v2 = vadd.f32 %v11333_v29, %v7272_v34 }
 0x868   : > { %7373 = vst.msk [vmem:[%s11338_s26 + $0x48] sm:$0xff] %vm313_vm0, %v7273_v2 }
 0x86b   : > { %v8550_v10 = vpop.f32.mrf.mxu0 }
 0x86c   : > { %v7294_v15 = vadd.f32 %v8550_v10, %v11333_v29 }
 0x86d   : > { %v7285_v11 = vpop.f32.mrf.mxu0 }
 0x86e   : > { %7378 = vst.msk [vmem:[%s11338_s26 + $0x70] sm:$0xff] %vm313_vm0, %v7294_v15  ;;  %v7286_v14 = vadd.f32 %v11333_v29, %v7285_v11 }
 0x86f   : > { %v8551_v5 = vpop.f32.mrf.mxu0 }
 0x870   : > { %7376 = vst.msk [vmem:[%s11338_s26 + $0x60] sm:$0xff] %vm313_vm0, %v7286_v14  ;;  %v7297_v25 = vadd.f32 %v8551_v5, %v11333_v29 }
 0x871   : > { %v7288_v55 = vpop.f32.mrf.mxu0 }
 0x872   : > { %7379 = vst.msk [vmem:[%s11338_s26 + $0x78] sm:$0xff] %vm313_vm0, %v7297_v25  ;;  %v7289_v45 = vadd.f32 %v11333_v29, %v7288_v55 }
 0x873   : > { %v8554_v36 = vpop.f32.mrf.mxu0 }
 0x874   : > { %7377 = vst.msk [vmem:[%s11338_s26 + $0x68] sm:$0xff] %vm313_vm0, %v7289_v45  ;;  %v7310_v3 = vadd.f32 %v8554_v36, %v11333_v29 }
 0x875   : > { %v7301_v48 = vpop.f32.mrf.mxu0 }
 0x876   : > { %7382 = vst.msk [vmem:[%s11338_s26 + $0x90] sm:$0xff] %vm313_vm0, %v7310_v3  ;;  %v7302_v37 = vadd.f32 %v11333_v29, %v7301_v48 }
 0x877   : > { %v8555_v56 = vpop.f32.mrf.mxu0 }
 0x878   : > { %7380 = vst.msk [vmem:[%s11338_s26 + $0x80] sm:$0xff] %vm313_vm0, %v7302_v37  ;;  %v7313_v38 = vadd.f32 %v8555_v56, %v11333_v29 }
 0x879   : > { %v7304_v33 = vpop.f32.mrf.mxu0 }
 0x87a   : > { %7383 = vst.msk [vmem:[%s11338_s26 + $0x98] sm:$0xff] %vm313_vm0, %v7313_v38  ;;  %v7305_v19 = vadd.f32 %v11333_v29, %v7304_v33 }
 0x87b   : > { %v8558_v60 = vpop.f32.mrf.mxu0 }
 0x87c   : > { %7381 = vst.msk [vmem:[%s11338_s26 + $0x88] sm:$0xff] %vm313_vm0, %v7305_v19  ;;  %v7326_v49 = vadd.f32 %v8558_v60, %v11333_v29 }
 0x87d   : > { %v7317_v17 = vpop.f32.mrf.mxu0 }
 0x87e   : > { %7386 = vst.msk [vmem:[%s11338_s26 + $0xb0] sm:$0xff] %vm313_vm0, %v7326_v49  ;;  %v7318_v18 = vadd.f32 %v11333_v29, %v7317_v17 }
 0x87f   : > { %v8559_v30 = vpop.f32.mrf.mxu0 }
 0x880   : > { %7384 = vst.msk [vmem:[%s11338_s26 + $0xa0] sm:$0xff] %vm313_vm0, %v7318_v18  ;;  %v7329_v62 = vadd.f32 %v8559_v30, %v11333_v29 }
 0x881   : > { %v7320_v23 = vpop.f32.mrf.mxu0 }
 0x882   : > { %7387 = vst.msk [vmem:[%s11338_s26 + $0xb8] sm:$0xff] %vm313_vm0, %v7329_v62  ;;  %v7321_v44 = vadd.f32 %v11333_v29, %v7320_v23 }
 0x884   : > { %7385 = vst.msk [vmem:[%s11338_s26 + $0xa8] sm:$0xff] %vm313_vm0, %v7321_v44 }
 0x8ab   : > { %v8562_v7 = vpop.f32.mrf.mxu0 }
 0x8ac   : > { %v7342_v35 = vadd.f32 %v8562_v7, %v11333_v29 }
 0x8ad   : > { %v7333_v21 = vpop.f32.mrf.mxu0 }
 0x8ae   : > { %7390 = vst.msk [vmem:[%s11338_s26 + $0xd0] sm:$0xff] %vm313_vm0, %v7342_v35  ;;  %v7334_v28 = vadd.f32 %v11333_v29, %v7333_v21 }
 0x8af   : > { %v8563_v8 = vpop.f32.mrf.mxu0 }
 0x8b0   : > { %7388 = vst.msk [vmem:[%s11338_s26 + $0xc0] sm:$0xff] %vm313_vm0, %v7334_v28  ;;  %v7345_v27 = vadd.f32 %v8563_v8, %v11333_v29 }
 0x8b1   : > { %v7336_v59 = vpop.f32.mrf.mxu0 }
 0x8b2   : > { %7391 = vst.msk [vmem:[%s11338_s26 + $0xd8] sm:$0xff] %vm313_vm0, %v7345_v27  ;;  %v7337_v40 = vadd.f32 %v11333_v29, %v7336_v59 }
 0x8b3   : > { %v8566_v4 = vpop.f32.mrf.mxu0 }
 0x8b4   : > { %7389 = vst.msk [vmem:[%s11338_s26 + $0xc8] sm:$0xff] %vm313_vm0, %v7337_v40  ;;  %v7358_v52 = vadd.f32 %v8566_v4, %v11333_v29 }
 0x8b5   : > { %v7349_v32 = vpop.f32.mrf.mxu0 }
 0x8b6   : > { %7394 = vst.msk [vmem:[%s11338_s26 + $0xf0] sm:$0xff] %vm313_vm0, %v7358_v52  ;;  %v7350_v22 = vadd.f32 %v11333_v29, %v7349_v32 }
 0x8b7   : > { %v8567_v39 = vpop.f32.mrf.mxu0 }
 0x8b8   : > { %7392 = vst.msk [vmem:[%s11338_s26 + $0xe0] sm:$0xff] %vm313_vm0, %v7350_v22  ;;  %v7361_v31 = vadd.f32 %v8567_v39, %v11333_v29 }
 0x8b9   : > { %v7352_v20 = vpop.f32.mrf.mxu0 }
 0x8ba   : > { %7395 = vst.msk [vmem:[%s11338_s26 + $0xf8] sm:$0xff] %vm313_vm0, %v7361_v31  ;;  %v7353_v47 = vadd.f32 %v11333_v29, %v7352_v20 }
 0x8bc   : > { %7393 = vst.msk [vmem:[%s11338_s26 + $0xe8] sm:$0xff] %vm313_vm0, %v7353_v47 }
 0x8bd   : > { %9084 = shalt.err (!%p9081_p9)
}
 0x8be   : > { %s9085_s29 = scalar_lea.hbm %s11435_s10, 4096  ;;  %s9089_s7 = scalar_lea.hbm %s11489_s4, 8192 }
 0x8bf   : > { %p9086_p13 = scmp.ne.s32.totalorder %s11435_s10, %s9085_s29  ;;  %p9090_p4 = scmp.lt.s32.totalorder %s11435_s10, %s11489_s4 }
 0x8c0   : > { %p9091_p8 = scmp.lt.s32.totalorder %s9089_s7, %s9085_s29 }
 0x8c1   : > { %p9087_p5 = pnand %p9086_p13, %p11861_p10 }
 0x8c2   : > { %p9092_p3 = por %p9091_p8, %p9090_p4 }
 0x8c3   : > { %p9088_p0 = pneg %p9087_p5 }
 0x8c5   : > { %p9093_p11 = pnand %p9092_p3, %p9088_p0 }
 0x8c7   : > { %9096 = shalt.err (!%p9093_p11)
}
 0x8c8   : > { %s9155_s26 = smov 128   ;;  %s9156_s27 = smov 8  }
 0x8c9   : > { %8582 = dma.vmem_to_hbm [thread:$0]  (%p11861_p10), %s11437_s28, 4096, %s11435_s10, %s7397_s19, %s9155_s26, %s9155_s26, %s9156_s27  }
 0x8ca PF: > { %s7426_s30 = sand.u32 1, %s9127_s15   ;;  %p11862_p1 = scmp.ne.s32.totalorder %s11591_s22, 0 }
 0x8cb   : > { %p11863_p2 = scmp.ge.s32.totalorder %s9139_s18, 2  ;;  %s7427_s8 = scalar_lea.sflag [#allocation4], %s7426_s30 }
 0x8cd   : > { %p8596_p6 = pnand %p11863_p2, %p11862_p1 }
 0x8cf   : > { %p8597_p12 = pneg %p8596_p6 }
 0x8d1   : > { %9122 = dma.done.wait (%p8597_p12), %s7427_s8, 4096  }
 0x8d2   : > { %9124 = vsyncadd (%p8597_p12), %s7427_s8, 4294963200  ;;  %p18_p7 = scmp.ge.s32.totalorder %s9254_s11, 4   ;;  %s11864_s15 = smov %s9131_s16 }
 0x8d3   : > { %s11865_s16 = smov %s9135_s17  ;;  %s11866_s17 = smov %s9270_s20 }
 0x8d4   : > { %s11867_s18 = smov %s9254_s11  ;;  %20 = sbr.rel (!%p18_p7) target bundleno = 6 (0x6), region = 89 }
 0x8d9   :  { %7432 = vsyncpa [#allocation3], 1 }
 0x8da   :  { %7434 = vsyncpa [#allocation3 + $0x1], 1 }
 0x8db   :  { %7435 = vsyncpa [#allocation6], 1 }
 0x8dc   :  { %7436 = vsyncpa [#allocation4], 1 }
 0x8dd   :  { %7438 = vsyncpa [#allocation4 + $0x1], 1 }

</bundles_post_ra>
